<compile_context>
chip_gen: v7x
topology: tpu7x:2x2x1
jax: 0.10.0
libtpu: 0.0.40
codegen_flags: <defaults>
</compile_context>

<pallas_src>
import jax
import jax.numpy as jnp
from jax.experimental import pallas as pl
from jax.experimental.pallas import tpu as pltpu


def _prelu(v, a):
    # nn.PReLU with a single shared parameter `a`
    return jnp.where(v > 0, v, a * v)


def multiheads_kernel(x_ref, wi_ref, bi_ref, ai_ref,
                      w1_ref, b1_ref, a1_ref,
                      w2_ref, b2_ref, a2_ref,
                      wg_ref, bg_ref, ag_ref, expand_ref,
                      inter_ref, final_ref, prob_ref):
    F = final_ref.shape[1]
    G = prob_ref.shape[1]

    x = x_ref[...]                                                      # [TB, Din]

    # instance_fc: PReLU(Linear(x))
    h = jnp.dot(x, wi_ref[...], preferred_element_type=jnp.float32) + bi_ref[...]
    inst = jnp.where(h > 0, h, ai_ref[...] * h)                         # [TB, F] f32

    # GDN.fc1: PReLU(Linear(inst)) -> group_inter
    h1 = jnp.dot(inst.astype(w1_ref.dtype), w1_ref[...],
                 preferred_element_type=jnp.float32) + b1_ref[...]
    inter = jnp.where(h1 > 0, h1, a1_ref[...] * h1)                     # [TB, I] f32
    inter_ref[...] = inter

    # GDN.fc2: PReLU(Linear(inter)) then softmax over groups -> group_prob
    h2 = jnp.dot(inter.astype(w2_ref.dtype), w2_ref[...],
                 preferred_element_type=jnp.float32) + b2_ref[...]
    out = jnp.where(h2 > 0, h2, a2_ref[...] * h2)                       # [TB, G] f32
    m = jnp.max(out, axis=1, keepdims=True)
    e = jnp.exp(out - m)
    prob = e / jnp.sum(e, axis=1, keepdims=True)
    prob_ref[...] = prob

    # Fused group heads: one wide matmul covering all G heads at once.
    gh = jnp.dot(x, wg_ref[...], preferred_element_type=jnp.float32) + bg_ref[...]
    vg = jnp.where(gh > 0, gh, ag_ref[...] * gh)                        # [TB, G*F] f32

    # Lane-aligned broadcast of prob over each head's F lanes via one tiny matmul:
    # pw[b, k*F + f] = prob[b, k]
    pw = jnp.dot(prob, expand_ref[...], preferred_element_type=jnp.float32)
    wv = vg * pw                                                        # [TB, G*F]

    ens = wv[:, 0:F]
    for k in range(1, G):                                               # static 128-aligned slices
        ens = ens + wv[:, k * F:(k + 1) * F]
    final_ref[...] = inst + ens                                         # [TB, F]


def multiheads_forward(x, params, *, block_rows=128, matmul_dtype=jnp.bfloat16):
    B, Din = x.shape
    F = params["wi"].shape[1]
    I = params["w1"].shape[1]
    G = params["w2"].shape[1]
    a = params["alphas"]

    # --- derived / fused operands (cheap one-time XLA ops outside the kernel) ---
    wi = params["wi"].astype(matmul_dtype)
    w1 = params["w1"].astype(matmul_dtype)
    w2 = params["w2"].astype(matmul_dtype)
    wg_cat = jnp.transpose(params["wg"], (1, 0, 2)).reshape(Din, G * F).astype(matmul_dtype)
    bi = params["bi"].astype(jnp.float32)
    b1 = params["b1"].astype(jnp.float32)
    b2 = params["b2"].astype(jnp.float32)
    bg_cat = params["bg"].reshape(1, G * F).astype(jnp.float32)
    # Hoisted PReLU alphas as row vectors (no per-group scalar broadcast inside the kernel).
    ai = jnp.broadcast_to(a[0], (1, F)).astype(jnp.float32)
    a1 = jnp.broadcast_to(a[1], (1, I)).astype(jnp.float32)
    a2 = jnp.broadcast_to(a[2], (1, G)).astype(jnp.float32)
    ag = jnp.repeat(a[3:3 + G], F)[None, :].astype(jnp.float32)
    # expand[k, k*F:(k+1)*F] = 1 -> lane-aligned broadcast of prob via a tiny matmul.
    expand = jnp.repeat(jnp.eye(G, dtype=jnp.float32), F, axis=1)       # [G, G*F]

    # --- batch tiling ---
    # TODO(synk): tile size is per-generation; v6e (128 MiB VMEM) tolerates 512-1024 rows,
    # v7x (64 MiB VMEM) should stay <= 256. 128 is a safe default on all of v5e/v6e/v7x.
    tb = block_rows if B >= block_rows else ((B + 7) // 8) * 8
    B_pad = ((B + tb - 1) // tb) * tb
    xp = x.astype(matmul_dtype)
    if B_pad != B:
        xp = jnp.pad(xp, ((0, B_pad - B), (0, 0)))
    nb = B_pad // tb

    def resident(arr):
        return pl.BlockSpec(arr.shape, lambda i: (0, 0))

    def rows(cols):
        return pl.BlockSpec((tb, cols), lambda i: (i, 0))

    in_specs = [
        rows(Din),                                     # x tile
        resident(wi), resident(bi), resident(ai),
        resident(w1), resident(b1), resident(a1),
        resident(w2), resident(b2), resident(a2),
        resident(wg_cat), resident(bg_cat), resident(ag), resident(expand),
    ]
    out_specs = (rows(I), rows(F), rows(G))
    out_shape = (
        jax.ShapeDtypeStruct((B_pad, I), jnp.float32),  # group_inter
        jax.ShapeDtypeStruct((B_pad, F), jnp.float32),  # final
        jax.ShapeDtypeStruct((B_pad, G), jnp.float32),  # group_prob
    )

    flops = 2 * B_pad * (Din * F + F * I + I * G + Din * G * F + G * G * F)
    bytes_accessed = int(
        xp.nbytes + wi.nbytes + w1.nbytes + w2.nbytes + wg_cat.nbytes
        + bi.nbytes + b1.nbytes + b2.nbytes + bg_cat.nbytes
        + ai.nbytes + a1.nbytes + a2.nbytes + ag.nbytes + expand.nbytes
        + B_pad * (I + F + G) * 4)

    fn = pl.pallas_call(
        multiheads_kernel,
        out_shape=out_shape,
        grid_spec=pltpu.PrefetchScalarGridSpec(
            num_scalar_prefetch=0,
            grid=(nb,),
            in_specs=in_specs,
            out_specs=out_specs,
        ),
        compiler_params=pltpu.CompilerParams(
            dimension_semantics=("parallel",)),         # v7x: shard batch tiles over 2 TCs
        cost_estimate=pl.CostEstimate(
            flops=flops, transcendentals=B_pad * G, bytes_accessed=bytes_accessed),
    )

    inter, final, prob = fn(xp, wi, bi, ai, w1, b1, a1, w2, b2, a2,
                            wg_cat, bg_cat, ag, expand)
    inter, final, prob = inter[:B], final[:B], prob[:B]

    # group_label depends on a mean over the *entire* batch, so it is computed here
    # (plain JAX) from the kernel's prob output; this keeps the kernel batch-tileable.
    E = prob.mean(axis=0, keepdims=True)
    u = (prob - E) / G + 1.0 / G
    label = jnp.argmax(u, axis=1).astype(jnp.int32)
    return inter, final, prob, label


def init_params(key, backbone_fc_dim, feature_dim, groups, intermediate_dim):
    ks = jax.random.split(key, 8)

    def w(k, shape, fan_in):
        return jax.random.uniform(k, shape, jnp.float32, -1.0, 1.0) / jnp.sqrt(
            jnp.asarray(fan_in, jnp.float32))

    return dict(
        wi=w(ks[0], (backbone_fc_dim, feature_dim), backbone_fc_dim),
        bi=w(ks[1], (1, feature_dim), backbone_fc_dim),
        w1=w(ks[2], (feature_dim, intermediate_dim), feature_dim),
        b1=w(ks[3], (1, intermediate_dim), feature_dim),
        w2=w(ks[4], (intermediate_dim, groups), intermediate_dim),
        b2=w(ks[5], (1, groups), intermediate_dim),
        wg=w(ks[6], (groups, backbone_fc_dim, feature_dim), backbone_fc_dim),
        bg=w(ks[7], (groups, feature_dim), backbone_fc_dim),
        # PReLU params: [instance, gdn.fc1, gdn.fc2, group_0..G-1]
        # (torch default init is 0.25; distinct values here make the correctness check stronger)
        alphas=0.25 + 0.05 * jnp.arange(3 + groups, dtype=jnp.float32) / (3 + groups),
    )


def reference(x, p):
    """Pure-JAX (f32) reproduction of MultiHeads.forward (mode='S')."""
    a = p["alphas"]
    G = p["w2"].shape[1]
    inst = _prelu(x @ p["wi"] + p["bi"], a[0])
    inter = _prelu(inst @ p["w1"] + p["b1"], a[1])
    out = _prelu(inter @ p["w2"] + p["b2"], a[2])
    prob = jax.nn.softmax(out, axis=1)
    ens = jnp.zeros_like(inst)
    for k in range(G):
        vk = _prelu(x @ p["wg"][k] + p["bg"][k][None, :], a[3 + k])
        ens = ens + vk * prob[:, k:k + 1]
    final = inst + ens
    E = prob.mean(axis=0, keepdims=True)
    u = (prob - E) / G + 1.0 / G
    label = jnp.argmax(u, axis=1).astype(jnp.int32)
    return inter, final, prob, label


if __name__ == "__main__":
    # Small shapes consistent with the module (GDN keeps its default intermediate_dim=256).
    # B=256 with a 128-row tile exercises two grid steps + the parallel batch axis.
    B = 256
    backbone_fc_dim = 256
    feature_dim = 256
    groups = 4
    intermediate_dim = 256

    key = jax.random.PRNGKey(0)
    kx, kp = jax.random.split(key)
    x = jax.random.normal(kx, (B, backbone_fc_dim), jnp.float32)
    params = init_params(kp, backbone_fc_dim, feature_dim, groups, intermediate_dim)

    outs = multiheads_forward(x, params)
    outs = jax.block_until_ready(outs)
    inter, final, prob, label = outs

    ref_inter, ref_final, ref_prob, ref_label = reference(x, params)

    assert inter.shape == (B, intermediate_dim)
    assert final.shape == (B, feature_dim)
    assert prob.shape == (B, groups)
    assert label.shape == (B,)

    # bf16 matmul operands (f32 accumulation) -> loose tolerances vs the f32 reference.
    assert jnp.allclose(inter, ref_inter, rtol=5e-2, atol=5e-2)
    assert jnp.allclose(final, ref_final, rtol=5e-2, atol=5e-2)
    assert jnp.allclose(prob, ref_prob, rtol=5e-2, atol=5e-2)

    # Tie-tolerant argmax check (bf16 can flip labels only on near-ties).
    u_ref = (ref_prob - ref_prob.mean(axis=0, keepdims=True)) / groups + 1.0 / groups
    picked = jnp.take_along_axis(u_ref, label[:, None], axis=1)[:, 0]
    assert jnp.all(picked >= u_ref.max(axis=1) - 1e-2)
    assert jnp.mean((label == ref_label).astype(jnp.float32)) > 0.9

    print("KERNEL_OK")
</pallas_src>

<mosaic_0001>
module attributes {stable_mosaic.version = 11 : i64} {
  func.func @multiheads_kernel(%arg0: i32, %arg1: memref<128x256xbf16, #tpu.memory_space<vmem>>, %arg2: memref<256x256xbf16, #tpu.memory_space<vmem>>, %arg3: memref<1x256xf32, #tpu.memory_space<vmem>>, %arg4: memref<1x256xf32, #tpu.memory_space<vmem>>, %arg5: memref<256x256xbf16, #tpu.memory_space<vmem>>, %arg6: memref<1x256xf32, #tpu.memory_space<vmem>>, %arg7: memref<1x256xf32, #tpu.memory_space<vmem>>, %arg8: memref<256x4xbf16, #tpu.memory_space<vmem>>, %arg9: memref<1x4xf32, #tpu.memory_space<vmem>>, %arg10: memref<1x4xf32, #tpu.memory_space<vmem>>, %arg11: memref<256x1024xbf16, #tpu.memory_space<vmem>>, %arg12: memref<1x1024xf32, #tpu.memory_space<vmem>>, %arg13: memref<1x1024xf32, #tpu.memory_space<vmem>>, %arg14: memref<4x1024xf32, #tpu.memory_space<vmem>>, %arg15: memref<128x256xf32, #tpu.memory_space<vmem>>, %arg16: memref<128x256xf32, #tpu.memory_space<vmem>>, %arg17: memref<128x4xf32, #tpu.memory_space<vmem>>) attributes {dimension_semantics = [#tpu.dimension_semantics<parallel>], iteration_bounds = array<i64: 2>, scalar_prefetch = 0 : i64, scratch_operands = 0 : i64, tpu.core_type = #tpu.core_type<tc>, window_params = [{transform_indices = @transform_0, window_bounds = array<i64: 128, 256>}, {pipeline_mode = #tpu.pipeline_mode<synchronous>, transform_indices = @transform_1, window_bounds = array<i64: 256, 256>}, {pipeline_mode = #tpu.pipeline_mode<synchronous>, transform_indices = @transform_2, window_bounds = array<i64: 1, 256>}, {pipeline_mode = #tpu.pipeline_mode<synchronous>, transform_indices = @transform_3, window_bounds = array<i64: 1, 256>}, {pipeline_mode = #tpu.pipeline_mode<synchronous>, transform_indices = @transform_4, window_bounds = array<i64: 256, 256>}, {pipeline_mode = #tpu.pipeline_mode<synchronous>, transform_indices = @transform_5, window_bounds = array<i64: 1, 256>}, {pipeline_mode = #tpu.pipeline_mode<synchronous>, transform_indices = @transform_6, window_bounds = array<i64: 1, 256>}, {pipeline_mode = #tpu.pipeline_mode<synchronous>, transform_indices = @transform_7, window_bounds = array<i64: 256, 4>}, {pipeline_mode = #tpu.pipeline_mode<synchronous>, transform_indices = @transform_8, window_bounds = array<i64: 1, 4>}, {pipeline_mode = #tpu.pipeline_mode<synchronous>, transform_indices = @transform_9, window_bounds = array<i64: 1, 4>}, {pipeline_mode = #tpu.pipeline_mode<synchronous>, transform_indices = @transform_10, window_bounds = array<i64: 256, 1024>}, {pipeline_mode = #tpu.pipeline_mode<synchronous>, transform_indices = @transform_11, window_bounds = array<i64: 1, 1024>}, {pipeline_mode = #tpu.pipeline_mode<synchronous>, transform_indices = @transform_12, window_bounds = array<i64: 1, 1024>}, {pipeline_mode = #tpu.pipeline_mode<synchronous>, transform_indices = @transform_13, window_bounds = array<i64: 4, 1024>}, {transform_indices = @transform_14, window_bounds = array<i64: 128, 256>}, {transform_indices = @transform_15, window_bounds = array<i64: 128, 256>}, {transform_indices = @transform_16, window_bounds = array<i64: 128, 4>}]} {
    %c0 = arith.constant 0 : index
    %c0_0 = arith.constant 0 : index
    %0 = vector.load %arg1[%c0, %c0_0] : memref<128x256xbf16, #tpu.memory_space<vmem>>, vector<128x256xbf16>
    %c0_1 = arith.constant 0 : index
    %c0_2 = arith.constant 0 : index
    %1 = vector.load %arg2[%c0_1, %c0_2] : memref<256x256xbf16, #tpu.memory_space<vmem>>, vector<256x256xbf16>
    %cst = arith.constant dense<0.000000e+00> : vector<128x256xf32>
    %2 = tpu.matmul %0, %1, %cst {dimension_numbers = #tpu.dot_dimension_numbers<[1], [0], [0], [1], [0, 0, 1, 1], [], []>} : vector<128x256xbf16>, vector<256x256xbf16>, vector<128x256xf32> -> vector<128x256xf32>
    %c0_3 = arith.constant 0 : index
    %c0_4 = arith.constant 0 : index
    %3 = vector.load %arg3[%c0_3, %c0_4] : memref<1x256xf32, #tpu.memory_space<vmem>>, vector<1x256xf32>
    %4 = vector.broadcast %3 : vector<1x256xf32> to vector<128x256xf32>
    %5 = arith.addf %2, %4 : vector<128x256xf32>
    %cst_5 = arith.constant 0.000000e+00 : f32
    %6 = vector.broadcast %cst_5 : f32 to vector<128x256xf32>
    %7 = arith.cmpf ogt, %5, %6 : vector<128x256xf32>
    %c0_6 = arith.constant 0 : index
    %c0_7 = arith.constant 0 : index
    %8 = vector.load %arg4[%c0_6, %c0_7] : memref<1x256xf32, #tpu.memory_space<vmem>>, vector<1x256xf32>
    %9 = vector.broadcast %8 : vector<1x256xf32> to vector<128x256xf32>
    %10 = arith.mulf %9, %5 : vector<128x256xf32>
    %11 = arith.select %7, %5, %10 : vector<128x256xi1>, vector<128x256xf32>
    %12 = arith.truncf %11 : vector<128x256xf32> to vector<128x256xbf16>
    %c0_8 = arith.constant 0 : index
    %c0_9 = arith.constant 0 : index
    %13 = vector.load %arg5[%c0_8, %c0_9] : memref<256x256xbf16, #tpu.memory_space<vmem>>, vector<256x256xbf16>
    %cst_10 = arith.constant dense<0.000000e+00> : vector<128x256xf32>
    %14 = tpu.matmul %12, %13, %cst_10 {dimension_numbers = #tpu.dot_dimension_numbers<[1], [0], [0], [1], [0, 0, 1, 1], [], []>} : vector<128x256xbf16>, vector<256x256xbf16>, vector<128x256xf32> -> vector<128x256xf32>
    %c0_11 = arith.constant 0 : index
    %c0_12 = arith.constant 0 : index
    %15 = vector.load %arg6[%c0_11, %c0_12] : memref<1x256xf32, #tpu.memory_space<vmem>>, vector<1x256xf32>
    %16 = vector.broadcast %15 : vector<1x256xf32> to vector<128x256xf32>
    %17 = arith.addf %14, %16 : vector<128x256xf32>
    %cst_13 = arith.constant 0.000000e+00 : f32
    %18 = vector.broadcast %cst_13 : f32 to vector<128x256xf32>
    %19 = arith.cmpf ogt, %17, %18 : vector<128x256xf32>
    %c0_14 = arith.constant 0 : index
    %c0_15 = arith.constant 0 : index
    %20 = vector.load %arg7[%c0_14, %c0_15] : memref<1x256xf32, #tpu.memory_space<vmem>>, vector<1x256xf32>
    %21 = vector.broadcast %20 : vector<1x256xf32> to vector<128x256xf32>
    %22 = arith.mulf %21, %17 : vector<128x256xf32>
    %23 = arith.select %19, %17, %22 : vector<128x256xi1>, vector<128x256xf32>
    %c0_16 = arith.constant 0 : index
    %c0_17 = arith.constant 0 : index
    %24 = vector.load %arg15[%c0_16, %c0_17] : memref<128x256xf32, #tpu.memory_space<vmem>>, vector<128x256xf32>
    tpu.vector_store %arg15[%c0_16, %c0_17], %23 {strides = array<i32>} : memref<128x256xf32, #tpu.memory_space<vmem>>, vector<128x256xf32>,
    %25 = arith.truncf %23 : vector<128x256xf32> to vector<128x256xbf16>
    %c0_18 = arith.constant 0 : index
    %c0_19 = arith.constant 0 : index
    %26 = vector.load %arg8[%c0_18, %c0_19] : memref<256x4xbf16, #tpu.memory_space<vmem>>, vector<256x4xbf16>
    %cst_20 = arith.constant dense<0.000000e+00> : vector<128x4xf32>
    %27 = tpu.matmul %25, %26, %cst_20 {dimension_numbers = #tpu.dot_dimension_numbers<[1], [0], [0], [1], [0, 0, 1, 1], [], []>} : vector<128x256xbf16>, vector<256x4xbf16>, vector<128x4xf32> -> vector<128x4xf32>
    %c0_21 = arith.constant 0 : index
    %c0_22 = arith.constant 0 : index
    %28 = vector.load %arg9[%c0_21, %c0_22] : memref<1x4xf32, #tpu.memory_space<vmem>>, vector<1x4xf32>
    %29 = vector.broadcast %28 : vector<1x4xf32> to vector<128x4xf32>
    %30 = arith.addf %27, %29 : vector<128x4xf32>
    %cst_23 = arith.constant 0.000000e+00 : f32
    %31 = vector.broadcast %cst_23 : f32 to vector<128x4xf32>
    %32 = arith.cmpf ogt, %30, %31 : vector<128x4xf32>
    %c0_24 = arith.constant 0 : index
    %c0_25 = arith.constant 0 : index
    %33 = vector.load %arg10[%c0_24, %c0_25] : memref<1x4xf32, #tpu.memory_space<vmem>>, vector<1x4xf32>
    %34 = vector.broadcast %33 : vector<1x4xf32> to vector<128x4xf32>
    %35 = arith.mulf %34, %30 : vector<128x4xf32>
    %36 = arith.select %32, %30, %35 : vector<128x4xi1>, vector<128x4xf32>
    %cst_26 = arith.constant dense<0xFF800000> : vector<128xf32>
    %37 = vector.multi_reduction <maximumf>, %36, %cst_26 [1] : vector<128x4xf32> to vector<128xf32>
    %38 = vector.shape_cast %37 : vector<128xf32> to vector<128x1xf32>
    %39 = vector.broadcast %38 : vector<128x1xf32> to vector<128x4xf32>
    %40 = arith.subf %36, %39 : vector<128x4xf32>
    %41 = math.exp %40 : vector<128x4xf32>
    %cst_27 = arith.constant dense<0.000000e+00> : vector<128xf32>
    %42 = vector.multi_reduction <add>, %41, %cst_27 [1] : vector<128x4xf32> to vector<128xf32>
    %43 = vector.shape_cast %42 : vector<128xf32> to vector<128x1xf32>
    %44 = vector.broadcast %43 : vector<128x1xf32> to vector<128x4xf32>
    %45 = arith.divf %41, %44 : vector<128x4xf32>
    %c0_28 = arith.constant 0 : index
    %c0_29 = arith.constant 0 : index
    %46 = vector.load %arg17[%c0_28, %c0_29] : memref<128x4xf32, #tpu.memory_space<vmem>>, vector<128x4xf32>
    tpu.vector_store %arg17[%c0_28, %c0_29], %45 {strides = array<i32>} : memref<128x4xf32, #tpu.memory_space<vmem>>, vector<128x4xf32>,
    %c0_30 = arith.constant 0 : index
    %c0_31 = arith.constant 0 : index
    %47 = vector.load %arg11[%c0_30, %c0_31] : memref<256x1024xbf16, #tpu.memory_space<vmem>>, vector<256x1024xbf16>
    %cst_32 = arith.constant dense<0.000000e+00> : vector<128x1024xf32>
    %48 = tpu.matmul %0, %47, %cst_32 {dimension_numbers = #tpu.dot_dimension_numbers<[1], [0], [0], [1], [0, 0, 1, 1], [], []>} : vector<128x256xbf16>, vector<256x1024xbf16>, vector<128x1024xf32> -> vector<128x1024xf32>
    %c0_33 = arith.constant 0 : index
    %c0_34 = arith.constant 0 : index
    %49 = vector.load %arg12[%c0_33, %c0_34] : memref<1x1024xf32, #tpu.memory_space<vmem>>, vector<1x1024xf32>
    %50 = vector.broadcast %49 : vector<1x1024xf32> to vector<128x1024xf32>
    %51 = arith.addf %48, %50 : vector<128x1024xf32>
    %cst_35 = arith.constant 0.000000e+00 : f32
    %52 = vector.broadcast %cst_35 : f32 to vector<128x1024xf32>
    %53 = arith.cmpf ogt, %51, %52 : vector<128x1024xf32>
    %c0_36 = arith.constant 0 : index
    %c0_37 = arith.constant 0 : index
    %54 = vector.load %arg13[%c0_36, %c0_37] : memref<1x1024xf32, #tpu.memory_space<vmem>>, vector<1x1024xf32>
    %55 = vector.broadcast %54 : vector<1x1024xf32> to vector<128x1024xf32>
    %56 = arith.mulf %55, %51 : vector<128x1024xf32>
    %57 = arith.select %53, %51, %56 : vector<128x1024xi1>, vector<128x1024xf32>
    %c0_38 = arith.constant 0 : index
    %c0_39 = arith.constant 0 : index
    %58 = vector.load %arg14[%c0_38, %c0_39] : memref<4x1024xf32, #tpu.memory_space<vmem>>, vector<4x1024xf32>
    %cst_40 = arith.constant dense<0.000000e+00> : vector<128x1024xf32>
    %59 = tpu.matmul %45, %58, %cst_40 {dimension_numbers = #tpu.dot_dimension_numbers<[1], [0], [0], [1], [0, 0, 1, 1], [], []>} : vector<128x4xf32>, vector<4x1024xf32>, vector<128x1024xf32> -> vector<128x1024xf32>
    %60 = arith.mulf %57, %59 : vector<128x1024xf32>
    %61 = vector.extract_strided_slice %60 {offsets = [0, 0], sizes = [128, 256], strides = [1, 1]} : vector<128x1024xf32> to vector<128x256xf32>
    %62 = vector.extract_strided_slice %60 {offsets = [0, 256], sizes = [128, 256], strides = [1, 1]} : vector<128x1024xf32> to vector<128x256xf32>
    %63 = arith.addf %61, %62 : vector<128x256xf32>
    %64 = vector.extract_strided_slice %60 {offsets = [0, 512], sizes = [128, 256], strides = [1, 1]} : vector<128x1024xf32> to vector<128x256xf32>
    %65 = arith.addf %63, %64 : vector<128x256xf32>
    %66 = vector.extract_strided_slice %60 {offsets = [0, 768], sizes = [128, 256], strides = [1, 1]} : vector<128x1024xf32> to vector<128x256xf32>
    %67 = arith.addf %65, %66 : vector<128x256xf32>
    %68 = arith.addf %11, %67 : vector<128x256xf32>
    %c0_41 = arith.constant 0 : index
    %c0_42 = arith.constant 0 : index
    %69 = vector.load %arg16[%c0_41, %c0_42] : memref<128x256xf32, #tpu.memory_space<vmem>>, vector<128x256xf32>
    tpu.vector_store %arg16[%c0_41, %c0_42], %68 {strides = array<i32>} : memref<128x256xf32, #tpu.memory_space<vmem>>, vector<128x256xf32>,
    return
  }
  func.func @transform_0(%arg0: i32) -> (i32, i32) {
    %c0_i32 = arith.constant 0 : i32
    %c0_i32_0 = arith.constant 0 : i32
    return %arg0, %c0_i32 : i32, i32
  }
  func.func @transform_1(%arg0: i32) -> (i32, i32) {
    %c0_i32 = arith.constant 0 : i32
    %c0_i32_0 = arith.constant 0 : i32
    %c0_i32_1 = arith.constant 0 : i32
    return %c0_i32, %c0_i32_0 : i32, i32
  }
  func.func @transform_2(%arg0: i32) -> (i32, i32) {
    %c0_i32 = arith.constant 0 : i32
    %c0_i32_0 = arith.constant 0 : i32
    %c0_i32_1 = arith.constant 0 : i32
    return %c0_i32, %c0_i32_0 : i32, i32
  }
  func.func @transform_3(%arg0: i32) -> (i32, i32) {
    %c0_i32 = arith.constant 0 : i32
    %c0_i32_0 = arith.constant 0 : i32
    %c0_i32_1 = arith.constant 0 : i32
    return %c0_i32, %c0_i32_0 : i32, i32
  }
  func.func @transform_4(%arg0: i32) -> (i32, i32) {
    %c0_i32 = arith.constant 0 : i32
    %c0_i32_0 = arith.constant 0 : i32
    %c0_i32_1 = arith.constant 0 : i32
    return %c0_i32, %c0_i32_0 : i32, i32
  }
  func.func @transform_5(%arg0: i32) -> (i32, i32) {
    %c0_i32 = arith.constant 0 : i32
    %c0_i32_0 = arith.constant 0 : i32
    %c0_i32_1 = arith.constant 0 : i32
    return %c0_i32, %c0_i32_0 : i32, i32
  }
  func.func @transform_6(%arg0: i32) -> (i32, i32) {
    %c0_i32 = arith.constant 0 : i32
    %c0_i32_0 = arith.constant 0 : i32
    %c0_i32_1 = arith.constant 0 : i32
    return %c0_i32, %c0_i32_0 : i32, i32
  }
  func.func @transform_7(%arg0: i32) -> (i32, i32) {
    %c0_i32 = arith.constant 0 : i32
    %c0_i32_0 = arith.constant 0 : i32
    %c0_i32_1 = arith.constant 0 : i32
    return %c0_i32, %c0_i32_0 : i32, i32
  }
  func.func @transform_8(%arg0: i32) -> (i32, i32) {
    %c0_i32 = arith.constant 0 : i32
    %c0_i32_0 = arith.constant 0 : i32
    %c0_i32_1 = arith.constant 0 : i32
    return %c0_i32, %c0_i32_0 : i32, i32
  }
  func.func @transform_9(%arg0: i32) -> (i32, i32) {
    %c0_i32 = arith.constant 0 : i32
    %c0_i32_0 = arith.constant 0 : i32
    %c0_i32_1 = arith.constant 0 : i32
    return %c0_i32, %c0_i32_0 : i32, i32
  }
  func.func @transform_10(%arg0: i32) -> (i32, i32) {
    %c0_i32 = arith.constant 0 : i32
    %c0_i32_0 = arith.constant 0 : i32
    %c0_i32_1 = arith.constant 0 : i32
    return %c0_i32, %c0_i32_0 : i32, i32
  }
  func.func @transform_11(%arg0: i32) -> (i32, i32) {
    %c0_i32 = arith.constant 0 : i32
    %c0_i32_0 = arith.constant 0 : i32
    %c0_i32_1 = arith.constant 0 : i32
    return %c0_i32, %c0_i32_0 : i32, i32
  }
  func.func @transform_12(%arg0: i32) -> (i32, i32) {
    %c0_i32 = arith.constant 0 : i32
    %c0_i32_0 = arith.constant 0 : i32
    %c0_i32_1 = arith.constant 0 : i32
    return %c0_i32, %c0_i32_0 : i32, i32
  }
  func.func @transform_13(%arg0: i32) -> (i32, i32) {
    %c0_i32 = arith.constant 0 : i32
    %c0_i32_0 = arith.constant 0 : i32
    %c0_i32_1 = arith.constant 0 : i32
    return %c0_i32, %c0_i32_0 : i32, i32
  }
  func.func @transform_14(%arg0: i32) -> (i32, i32) {
    %c0_i32 = arith.constant 0 : i32
    %c0_i32_0 = arith.constant 0 : i32
    return %arg0, %c0_i32 : i32, i32
  }
  func.func @transform_15(%arg0: i32) -> (i32, i32) {
    %c0_i32 = arith.constant 0 : i32
    %c0_i32_0 = arith.constant 0 : i32
    return %arg0, %c0_i32 : i32, i32
  }
  func.func @transform_16(%arg0: i32) -> (i32, i32) {
    %c0_i32 = arith.constant 0 : i32
    %c0_i32_0 = arith.constant 0 : i32
    return %arg0, %c0_i32 : i32, i32
  }
}

</mosaic_0001>

<bundles_post_ra>
// kernel: tpu_custom_call.1
= control target key start
LH: loop header
LB: loop body
LE: loop exit
PB: predicated region body
PF: predicated region fallthrough
CT: control target
= control target key end

     0   :  { %s9146_s0 = inlined_call_operand.hbm [shape: bf16[256,256], index: 0, kind: input, shape index: {}]   ;;  %s9147_s1 = inlined_call_operand.hbm [shape: bf16[256,256], index: 1, kind: input, shape index: {}]   ;;  %s9148_s2 = inlined_call_operand.vmem [shape: f32[1,256], index: 2, kind: input, shape index: {}]   ;;  %s9149_s3 = inlined_call_operand.vmem [shape: f32[1,256], index: 3, kind: input, shape index: {}]   ;;  %s9150_s4 = inlined_call_operand.hbm [shape: bf16[256,256], index: 4, kind: input, shape index: {}]   ;;  %s9151_s5 = inlined_call_operand.vmem [shape: f32[1,256], index: 5, kind: input, shape index: {}]   ;;  %s9152_s6 = inlined_call_operand.vmem [shape: f32[1,256], index: 6, kind: input, shape index: {}]   ;;  %s9153_s7 = inlined_call_operand.vmem [shape: bf16[256,4], index: 7, kind: input, shape index: {}]   ;;  %s9154_s8 = inlined_call_operand.vmem [shape: f32[1,4], index: 8, kind: input, shape index: {}]   ;;  %s9155_s9 = inlined_call_operand.vmem [shape: f32[1,4], index: 9, kind: input, shape index: {}]   ;;  %s9156_s10 = inlined_call_operand.hbm [shape: bf16[256,1024], index: 10, kind: input, shape index: {}]   ;;  %s9157_s11 = inlined_call_operand.vmem [shape: f32[1,1024], index: 11, kind: input, shape index: {}]   ;;  %s9158_s12 = inlined_call_operand.vmem [shape: f32[1,1024], index: 12, kind: input, shape index: {}]   ;;  %s9159_s13 = inlined_call_operand.vmem [shape: f32[4,1024], index: 13, kind: input, shape index: {}]   ;;  %s9160_s14 = inlined_call_operand.hbm [shape: f32[256,256], index: 14, kind: output, shape index: {0}]   ;;  %s9161_s15 = inlined_call_operand.hbm [shape: f32[256,256], index: 15, kind: output, shape index: {1}]   ;;  %s9162_s16 = inlined_call_operand.vmem [shape: f32[256,4], index: 16, kind: output, shape index: {2}]  }
   0x1   :  { %9263 = sst [smem:[#allocation161_spill]] %s9146_s0 }
   0x2   :  { %9264 = sst [smem:[#allocation162_spill]] %s9155_s9 }
   0x3   :  { %9265 = sst [smem:[#allocation163_spill]] %s9157_s11 }
   0x4   :  { %9266 = sst [smem:[#allocation164_spill]] %s9158_s12 }
   0x5   :  { %9267 = sst [smem:[#allocation165_spill]] %s9159_s13 }
   0x6   :  { %9268 = sst [smem:[#allocation166_spill]] %s9160_s14 }
   0x7   :  { %9269 = sst [smem:[#allocation167_spill]] %s9161_s15 }
   0x8   :  { %9270 = sst [smem:[#allocation168_spill]] %s9162_s16 }
   0x9   :  { %22 = vsyncpa [#allocation3], 0 }
   0xa   :  { %24 = vsyncpa [#allocation3 + $0x1], 0 }
   0xb   :  { %25 = vsyncpa [#allocation6], 0 }
   0xc   :  { %26 = vsyncpa [#allocation9], 0 }
   0xd   :  { %27 = vsyncpa [#allocation4], 0 }
   0xe   :  { %29 = vsyncpa [#allocation4 + $0x1], 0 }
   0xf   :  { %30 = vsyncpa [#allocation12], 0 }
  0x10   :  { %32 = vsyncpa [#allocation12 + $0x1], 0  ;;  %s6064_s21 = smov 0   ;;  %s6066_s22 = smov 0  }
  0x11   :  { %s6068_s23 = smov 0   ;;  %s6070_s24 = smov 0  }
  0x12 LB: > { %9271 = sst [smem:[#allocation18_spill]] %s5952_s21  ;;  %s6085_s25 = sadd.s32 4294967295, %s5964_s24   ;;  %s5964_s24 = sphi %s6070_s24, %s9784_s24   ;;  %s5960_s23 = sphi %s6068_s23, %s9783_s23   ;;  %s5956_s22 = sphi %s6066_s22, %s9782_s22   ;;  %s5952_s21 = sphi %s6064_s21, %s9781_s21  }
  0x13   : > { %s5005_s26 = sadd.s32 4294967294, %s5964_s24   ;;  %p58_p0 = scmp.ne.s32.totalorder %s5956_s22, %s5952_s21 }
  0x14   : > { %p9168_p1 = scmp.eq.s32.totalorder %s6085_s25, 0  ;;  %p361_p3 = scmp.eq.s32.totalorder %s5005_s26, 1 }
  0x15   : > { %p5006_p5 = scmp.ge.s32.totalorder %s5964_s24, 1  ;;  %p420_p7 = scmp.lt.s32.totalorder %s5964_s24, 3 }
  0x16   : > { %p6094_p4 = por %p9168_p1, %p58_p0  ;;  %p6099_p6 = por %p361_p3, %p58_p0 }
  0x17   : > { %p6104_p8 = pnand %p5006_p5, %p420_p7  ;;  %s5966_s30 = smov [#allocation5]  }
  0x18   : > { %s9272_s27 = scalar_select %p6094_p4, 1, 0 }
  0x19   : > { %s9273_s28 = scalar_select %p6099_p6, 1, 0 }
  0x1a   : > { %s9275_s29 = scalar_select %p6104_p8, 1, 0 }
  0x1b   : > { %9274 = sst [smem:[#allocation19_spill]] %s9273_s28  ;;  %s432_s0 = sshll.u32 %s5966_s30, 4  ;;  %s6108_s0 = int_to_ptr.vmem [resolvable:$true] %s432_s0 }
  0x1c   : > { %p5452_p9 = pneg %p6104_p8  ;;  %s5967_s18 = smov [#allocation7]  }
  0x1d   : > { %s451_s19 = sshll.u32 %s5967_s18, 4  ;;  %s5968_s20 = smov [#allocation8]   ;;  %s6119_s19 = int_to_ptr.vmem [resolvable:$true] %s451_s19 }
  0x1e   : > { %p6115_p11 = pnand %p5452_p9, %p9168_p1  ;;  %s6121_s26 = sshll.u32 %s5968_s20, 4  ;;  %s480_s26 = int_to_ptr.vmem [resolvable:$true] %s6121_s26 }
  0x1f   : > { %s5744_s21 = scalar_lea.hbm %s9147_s1, 4096 }
  0x20   : > { %p5745_p12 = scmp.ne.s32.totalorder %s9147_s1, %s5744_s21  ;;  %p6131_p13 = pneg %p6115_p11 }
  0x21   : > { %p5751_p5 = scmp.lt.u32.totalorder %s5744_s21, %s9147_s1 }
  0x22   : > { %p5747_p0 = pnand %p6131_p13, %p5745_p12 }
  0x24   : > { %p5748_p3 = pneg %p5747_p0 }
  0x26   : > { %p5753_p7 = pnand %p5751_p5, %p5748_p3 }
  0x28   : > { %5756 = shalt.err (!%p5753_p7)
}
  0x29   : > { %s5757_s14 = scalar_lea.vmem %s6108_s0, 4096  ;;  %p5765_p2 = scmp.lt.s32.totalorder %s6108_s0, %s6108_s0 }
  0x2a   : > { %p5758_p9 = scmp.ne.s32.totalorder %s6108_s0, %s5757_s14  ;;  %p5766_p6 = scmp.lt.s32.totalorder %s5757_s14, %s5757_s14 }
  0x2c   : > { %p5760_p10 = pnand %p5758_p9, %p6131_p13  ;;  %p5767_p12 = por %p5766_p6, %p5765_p2 }
  0x2e   : > { %p5761_p1 = pneg %p5760_p10 }
  0x30   : > { %p5768_p0 = pnand %p5767_p12, %p5761_p1 }
  0x32   : > { %5771 = shalt.err (!%p5768_p0)
}
  0x33   : > { %s9172_s15 = smov 128   ;;  %s5970_s21 = smov 8  }
  0x34   : > { %5455 = dma.hbm_to_vmem [thread:$0]  (!%p6115_p11), %s9147_s1, 4096, %s6108_s0, [#allocation6], %s9172_s15, %s9172_s15, %s5970_s21  }
  0x35   : > { %s5772_s14 = scalar_lea.hbm %s9150_s4, 4096 }
  0x36   : > { %p5773_p1 = scmp.ne.s32.totalorder %s9150_s4, %s5772_s14  ;;  %p5779_p10 = scmp.lt.u32.totalorder %s5772_s14, %s9150_s4 }
  0x38   : > { %p5775_p2 = pnand %p5773_p1, %p6131_p13 }
  0x3a   : > { %p5776_p6 = pneg %p5775_p2 }
  0x3c   : > { %p5781_p3 = pnand %p5779_p10, %p5776_p6 }
  0x3e   : > { %5784 = shalt.err (!%p5781_p3)
}
  0x3f   : > { %s5785_s0 = scalar_lea.vmem %s6119_s19, 4096  ;;  %p5793_p12 = scmp.lt.s32.totalorder %s6119_s19, %s6119_s19 }
  0x40   : > { %p5786_p5 = scmp.ne.s32.totalorder %s6119_s19, %s5785_s0  ;;  %p5794_p0 = scmp.lt.s32.totalorder %s5785_s0, %s5785_s0 }
  0x42   : > { %p5788_p7 = pnand %p5786_p5, %p6131_p13  ;;  %p5795_p1 = por %p5794_p0, %p5793_p12 }
  0x44   : > { %p5789_p9 = pneg %p5788_p7 }
  0x46   : > { %p5796_p2 = pnand %p5795_p1, %p5789_p9 }
  0x48   : > { %5799 = shalt.err (!%p5796_p2)
}
  0x49   : > { %5458 = dma.hbm_to_vmem [thread:$0]  (!%p6115_p11), %s9150_s4, 4096, %s6119_s19, [#allocation6], %s9172_s15, %s9172_s15, %s5970_s21  }
  0x4a   : > { %s5800_s28 = scalar_lea.hbm %s9156_s10, 16384 }
  0x4b   : > { %p5801_p6 = scmp.ne.s32.totalorder %s9156_s10, %s5800_s28  ;;  %p5807_p5 = scmp.lt.u32.totalorder %s5800_s28, %s9156_s10 }
  0x4d   : > { %p5803_p10 = pnand %p5801_p6, %p6131_p13 }
  0x4f   : > { %p5804_p3 = pneg %p5803_p10 }
  0x51   : > { %p5809_p7 = pnand %p5807_p5, %p5804_p3 }
  0x53   : > { %5812 = shalt.err (!%p5809_p7)
}
  0x54   : > { %s5813_s0 = scalar_lea.vmem %s480_s26, 16384  ;;  %p5821_p1 = scmp.lt.s32.totalorder %s480_s26, %s480_s26 }
  0x55   : > { %p5814_p9 = scmp.ne.s32.totalorder %s480_s26, %s5813_s0  ;;  %p5822_p2 = scmp.lt.s32.totalorder %s5813_s0, %s5813_s0 }
  0x57   : > { %p5816_p12 = pnand %p5814_p9, %p6131_p13  ;;  %p5823_p4 = por %p5822_p2, %p5821_p1 }
  0x59   : > { %p5817_p0 = pneg %p5816_p12 }
  0x5b   : > { %p5824_p8 = pnand %p5823_p4, %p5817_p0 }
  0x5d   : > { %5827 = shalt.err (!%p5824_p8)
}
  0x5e   : > { %s5971_s19 = smov 512   ;;  %s5972_s12 = smov 32  }
  0x5f   : > { %5461 = dma.hbm_to_vmem [thread:$0]  (!%p6115_p11), %s9156_s10, 16384, %s480_s26, [#allocation9], %s5971_s19, %s5971_s19, %s5972_s12  }
  0x60   : > { %s6201_s13 = sadd.s32 1, %s5964_s24   ;;  %s45_s28 = sadd.s32 1, %s5960_s23 }
  0x61   : > { %s42_s16 = ssub.s32 %s5964_s24, %s6201_s13  ;;  %p52_p8 = scmp.ne.s32.totalorder %s5960_s23, %s5956_s22 }
  0x62   : > { %p43_p4 = scmp.eq.s32.totalorder %s42_s16, 0  ;;  %p53_p13 = scmp.eq.s32.totalorder %s5964_s24, 0 }
  0x63   : > { %p5476_p6 = scmp.lt.s32.totalorder %s5964_s24, 2  ;;  %p9278_p3 = scmp.eq.s32.totalorder %s6085_s25, 1 }
  0x64   : > { %s6211_s30 = scalar_select %p43_p4, %s5960_s23, %s45_s28  }
  0x65   : > { %p54_p10 = por %p53_p13, %p52_p8  ;;  %p6215_p5 = por %p9278_p3, %p52_p8 }
  0x66   : > { %s502_s17 = sand.u32 1, %s5960_s23   ;;  %s5333_s20 = sshll.u32 %s5964_s24, 11 }
  0x67   : > { %s5011_s26 = sshll.u32 %s502_s17, 7  ;;  %s9280_s19 = sld [smem:[#allocation161_spill]] }
  0x68   : > { %s506_s9 = scalar_lea.vmem [#allocation2], %s5011_s26  ;;  %p6226_p11 = pnand %p5476_p6, %p54_p10 }
  0x69   : > { %s514_s11 = sshll.u32 %s506_s9, 4  ;;  %s6232_s28 = scalar_lea.sflag [#allocation3], %s502_s17  ;;  %s6230_s11 = int_to_ptr.vmem [resolvable:$true] %s514_s11 }
  0x6a   : > { %p5830_p9 = pneg %p6226_p11 }
  0x6d   : > { %s6224_s12 = scalar_lea.hbm %s9280_s19, %s5333_s20  ;;  %s5833_s14 = scalar_lea.hbm %s9280_s19, 4096 }
  0x6e   : > { %s5828_s15 = scalar_lea.hbm %s6224_s12, 2048  ;;  %p5834_p1 = scmp.lt.u32.totalorder %s6224_s12, %s9280_s19 }
  0x6f   : > { %p5829_p7 = scmp.ne.s32.totalorder %s6224_s12, %s5828_s15  ;;  %p5835_p2 = scmp.lt.u32.totalorder %s5833_s14, %s5828_s15 }
  0x70   : > { %p5837_p8 = scmp.lt.u32.totalorder %s5828_s15, %s6224_s12 }
  0x71   : > { %p5831_p12 = pnand %p5830_p9, %p5829_p7  ;;  %p5836_p4 = por %p5835_p2, %p5834_p1 }
  0x73   : > { %p5832_p0 = pneg %p5831_p12  ;;  %p5838_p13 = por %p5837_p8, %p5836_p4 }
  0x75   : > { %p5839_p6 = pnand %p5838_p13, %p5832_p0 }
  0x77   : > { %5842 = shalt.err (!%p5839_p6)
}
  0x78   : > { %s5843_s17 = scalar_lea.vmem %s6230_s11, 2048  ;;  %s5973_s20 = smov [#allocation2]  }
  0x79   : > { %p5844_p10 = scmp.ne.s32.totalorder %s6230_s11, %s5843_s17  ;;  %s5848_s26 = sshll.u32 %s5973_s20, 4  ;;  %s5849_s26 = int_to_ptr.vmem [resolvable:$false] %s5848_s26 }
  0x7a   : > { %s5850_s0 = scalar_lea.vmem %s5849_s26, 4096  ;;  %p5851_p12 = scmp.lt.s32.totalorder %s6230_s11, %s5849_s26 }
  0x7b   : > { %p5846_p3 = pnand %p5844_p10, %p5830_p9  ;;  %p5852_p1 = scmp.lt.s32.totalorder %s5850_s0, %s5843_s17 }
  0x7d   : > { %p5847_p7 = pneg %p5846_p3  ;;  %p5853_p2 = por %p5852_p1, %p5851_p12 }
  0x7f   : > { %p5854_p4 = pnand %p5853_p2, %p5847_p7 }
  0x81   : > { %5857 = shalt.err (!%p5854_p4)
}
  0x82   : > { %s9282_s15 = smov 128   ;;  %p9283_p9 = scmp.ne.s32.totalorder %s9275_s29, 0 }
  0x83   : > { %5465 = dma.hbm_to_vmem [thread:$0]  (!%p6226_p11), %s6224_s12, 2048, %s6230_s11, %s6232_s28, %s9282_s15, %s9282_s15, %s5970_s21  }
  0x84   : > { %526 = sbr.rel (%p9283_p9) target bundleno = 1570 (0x622), region = 76 }
  0x8b   : > { %s6266_s14 = sand.u32 1, %s5956_s22   ;;  %p9284_p0 = scmp.ne.s32.totalorder %s9272_s27, 0 }
  0x8c   : > { %s5016_s9 = sshll.u32 %s6266_s14, 7  ;;  %s529_s17 = scalar_lea.sflag [#allocation3], %s6266_s14 }
  0x8d   : > { %s6270_s20 = scalar_lea.vmem [#allocation2], %s5016_s9 }
  0x8e   : > { %5931 = dma.done.wait (%p9284_p0), %s529_s17, 2048  }
  0x8f   : > { %5933 = vsyncadd (%p9284_p0), %s529_s17, 4294965248  ;;  %p9285_p11 = scmp.eq.s32.totalorder %s6085_s25, 0 }
  0x91   : > { %5935 = dma.done.wait (%p9285_p11), [#allocation6], 8192   ;;  %p9286_p8 = pmov %p9285_p11 }
  0x93   : > { %5937 = vsyncadd (%p9286_p8), [#allocation6], 4294959104  ;;  %p9287_p13 = pmov %p9286_p8 }
  0x94   : > { %p9288_p6 = pmov %p9286_p8 }
  0x95   : > { %5939 = dma.done.wait (%p9287_p13), [#allocation9], 16384  }
  0x96   : > { %5941 = vsyncadd (%p9288_p6), [#allocation9], 4294950912  ;;  %v5523_v0 = vld [vmem:[#allocation5 + $0x4] ss:$8 sps:$4 sm:$0xff]   ;;  %v5525_v1 = vld [vmem:[#allocation5] ss:$8 sps:$4 sm:$0xff]  }
  0x97   : > { %913 = vmatprep.subr.bf16.mxu0 %v5523_v0  ;;  %v5526_v2 = vld [vmem:[#allocation5 + $0x14] ss:$8 sps:$4 sm:$0xff]   ;;  %v5528_v3 = vld [vmem:[#allocation5 + $0x10] ss:$8 sps:$4 sm:$0xff]   ;;  %v5529_v4 = vld [vmem:[#allocation5 + $0x24] ss:$8 sps:$4 sm:$0xff]  }
  0x98   : > { %914 = vmatpush1.bf16.msra.mxu0 %v5525_v1  ;;  %v5531_v5 = vld [vmem:[#allocation5 + $0x20] ss:$8 sps:$4 sm:$0xff]   ;;  %v5532_v6 = vld [vmem:[#allocation5 + $0x34] ss:$8 sps:$4 sm:$0xff]   ;;  %v5534_v7 = vld [vmem:[#allocation5 + $0x30] ss:$8 sps:$4 sm:$0xff]  }
  0x99   : > { %915 = vmatprep.subr.bf16.mxu0 %v5526_v2  ;;  %v5535_v8 = vld [vmem:[#allocation5 + $0x44] ss:$8 sps:$4 sm:$0xff]   ;;  %v5537_v9 = vld [vmem:[#allocation5 + $0x40] ss:$8 sps:$4 sm:$0xff]   ;;  %v5538_v10 = vld [vmem:[#allocation5 + $0x54] ss:$8 sps:$4 sm:$0xff]  }
  0x9a   : > { %v5540_v11 = vld [vmem:[#allocation5 + $0x50] ss:$8 sps:$4 sm:$0xff]   ;;  %v5541_v12 = vld [vmem:[#allocation5 + $0x64] ss:$8 sps:$4 sm:$0xff]   ;;  %v5543_v14 = vld [vmem:[#allocation5 + $0x60] ss:$8 sps:$4 sm:$0xff]  }
  0x9b   : > { %v6285_v13 = vld [vmem:[%s6270_s20 + $0x4] ss:$8 sps:$4 sm:$0xff]   ;;  %v5544_v15 = vld [vmem:[#allocation5 + $0x74] ss:$8 sps:$4 sm:$0xff]   ;;  %v5546_v16 = vld [vmem:[#allocation5 + $0x70] ss:$8 sps:$4 sm:$0xff]  }
  0x9c   : > { %916 = vmatpush1.bf16.msra.mxu0 %v5528_v3  ;;  %945 = vmatprep.mubr.bf16.mxu0 %v6285_v13  ;;  %v5547_v17 = vld [vmem:[#allocation5 + $0x84] ss:$8 sps:$4 sm:$0xff]   ;;  %v5549_v18 = vld [vmem:[#allocation5 + $0x80] ss:$8 sps:$4 sm:$0xff]   ;;  %v5550_v19 = vld [vmem:[#allocation5 + $0x94] ss:$8 sps:$4 sm:$0xff]  }
  0x9d   : > { %917 = vmatprep.subr.bf16.mxu0 %v5529_v4  ;;  %v5595_v20 = vld [vmem:[#allocation7 + $0x4] ss:$8 sps:$4 sm:$0xff]   ;;  %v5597_v21 = vld [vmem:[#allocation7] ss:$8 sps:$4 sm:$0xff]   ;;  %v5552_v22 = vld [vmem:[#allocation5 + $0x90] ss:$8 sps:$4 sm:$0xff]  }
  0x9e   : > { %1354 = vmatprep.subr.bf16.mxu1 %v5595_v20  ;;  %v5598_v23 = vld [vmem:[#allocation7 + $0x14] ss:$8 sps:$4 sm:$0xff]   ;;  %v5553_v24 = vld [vmem:[#allocation5 + $0xa4] ss:$8 sps:$4 sm:$0xff]   ;;  %v5600_v25 = vld [vmem:[#allocation7 + $0x10] ss:$8 sps:$4 sm:$0xff]  }
  0x9f   : > { %1355 = vmatpush1.bf16.msra.mxu1 %v5597_v21  ;;  %v5601_v26 = vld [vmem:[#allocation7 + $0x24] ss:$8 sps:$4 sm:$0xff]   ;;  %v5555_v27 = vld [vmem:[#allocation5 + $0xa0] ss:$8 sps:$4 sm:$0xff]   ;;  %v5556_v28 = vld [vmem:[#allocation5 + $0xb4] ss:$8 sps:$4 sm:$0xff]  }
  0xa0   : > { %918 = vmatpush1.bf16.msra.mxu0 %v5531_v5  ;;  %1356 = vmatprep.subr.bf16.mxu1 %v5598_v23  ;;  %v5603_v29 = vld [vmem:[#allocation7 + $0x20] ss:$8 sps:$4 sm:$0xff]   ;;  %v5604_v30 = vld [vmem:[#allocation7 + $0x34] ss:$8 sps:$4 sm:$0xff]   ;;  %v5558_v31 = vld [vmem:[#allocation5 + $0xb0] ss:$8 sps:$4 sm:$0xff]  }
  0xa1   : > { %919 = vmatprep.subr.bf16.mxu0 %v5532_v6  ;;  %v5559_v32 = vld [vmem:[#allocation5 + $0xc4] ss:$8 sps:$4 sm:$0xff]   ;;  %v5606_v33 = vld [vmem:[#allocation7 + $0x30] ss:$8 sps:$4 sm:$0xff]   ;;  %v5561_v35 = vld [vmem:[#allocation5 + $0xc0] ss:$8 sps:$4 sm:$0xff]  }
  0xa2   : > { %v5607_v34 = vld [vmem:[#allocation7 + $0x44] ss:$8 sps:$4 sm:$0xff]   ;;  %v5562_v36 = vld [vmem:[#allocation5 + $0xd4] ss:$8 sps:$4 sm:$0xff]   ;;  %v5609_v37 = vld [vmem:[#allocation7 + $0x40] ss:$8 sps:$4 sm:$0xff]  }
  0xa3   : > { %1357 = vmatpush1.bf16.msra.mxu1 %v5600_v25  ;;  %v5610_v38 = vld [vmem:[#allocation7 + $0x54] ss:$8 sps:$4 sm:$0xff]   ;;  %v5564_v39 = vld [vmem:[#allocation5 + $0xd0] ss:$8 sps:$4 sm:$0xff]   ;;  %v5565_v41 = vld [vmem:[#allocation5 + $0xe4] ss:$8 sps:$4 sm:$0xff]  }
  0xa4   : > { %920 = vmatpush1.bf16.msra.mxu0 %v5534_v7  ;;  %1358 = vmatprep.subr.bf16.mxu1 %v5601_v26  ;;  %v5612_v40 = vld [vmem:[#allocation7 + $0x50] ss:$8 sps:$4 sm:$0xff]   ;;  %v5613_v42 = vld [vmem:[#allocation7 + $0x64] ss:$8 sps:$4 sm:$0xff]   ;;  %v5567_v43 = vld [vmem:[#allocation5 + $0xe0] ss:$8 sps:$4 sm:$0xff]  }
  0xa5   : > { %921 = vmatprep.subr.bf16.mxu0 %v5535_v8  ;;  %v5615_v44 = vld [vmem:[#allocation7 + $0x60] ss:$8 sps:$4 sm:$0xff]   ;;  %v5568_v45 = vld [vmem:[#allocation5 + $0xf4] ss:$8 sps:$4 sm:$0xff]   ;;  %v5570_v47 = vld [vmem:[#allocation5 + $0xf0] ss:$8 sps:$4 sm:$0xff]  }
  0xa6   : > { %v5616_v46 = vld [vmem:[#allocation7 + $0x74] ss:$8 sps:$4 sm:$0xff]   ;;  %v5618_v48 = vld [vmem:[#allocation7 + $0x70] ss:$8 sps:$4 sm:$0xff]   ;;  %v5619_v49 = vld [vmem:[#allocation7 + $0x84] ss:$8 sps:$4 sm:$0xff]  }
  0xa7   : > { %1359 = vmatpush1.bf16.msra.mxu1 %v5603_v29  ;;  %v5573_v50 = vld [vmem:[%s6270_s20] ss:$8 sps:$4 sm:$0xff]   ;;  %v5574_v51 = vld [vmem:[%s6270_s20 + $0x14] ss:$8 sps:$4 sm:$0xff]   ;;  %v5624_v54 = vld [vmem:[#allocation7 + $0x90] ss:$8 sps:$4 sm:$0xff]  }
  0xa8   : > { %922 = vmatpush1.bf16.msra.mxu0 %v5537_v9  ;;  %1360 = vmatprep.subr.bf16.mxu1 %v5604_v30  ;;  %v5621_v52 = vld [vmem:[#allocation7 + $0x80] ss:$8 sps:$4 sm:$0xff]   ;;  %v5622_v53 = vld [vmem:[#allocation7 + $0x94] ss:$8 sps:$4 sm:$0xff]   ;;  %v5625_v55 = vld [vmem:[#allocation7 + $0xa4] ss:$8 sps:$4 sm:$0xff]  }
  0xa9   : > { %923 = vmatprep.subr.bf16.mxu0 %v5538_v10  ;;  %v5576_v56 = vld [vmem:[%s6270_s20 + $0x10] ss:$8 sps:$4 sm:$0xff]   ;;  %v5577_v57 = vld [vmem:[%s6270_s20 + $0x24] ss:$8 sps:$4 sm:$0xff]   ;;  %v5627_v58 = vld [vmem:[#allocation7 + $0xa0] ss:$8 sps:$4 sm:$0xff]  }
  0xaa   : > { %v5628_v59 = vld [vmem:[#allocation7 + $0xb4] ss:$8 sps:$4 sm:$0xff]   ;;  %v5630_v60 = vld [vmem:[#allocation7 + $0xb0] ss:$8 sps:$4 sm:$0xff]   ;;  %v5631_v61 = vld [vmem:[#allocation7 + $0xc4] ss:$8 sps:$4 sm:$0xff]  }
  0xab   : > { %1361 = vmatpush1.bf16.msra.mxu1 %v5606_v33  ;;  %v5579_v62 = vld [vmem:[%s6270_s20 + $0x20] ss:$8 sps:$4 sm:$0xff]   ;;  %v5580_v63 = vld [vmem:[%s6270_s20 + $0x34] ss:$8 sps:$4 sm:$0xff]   ;;  %v5582_v1 = vld [vmem:[%s6270_s20 + $0x30] ss:$8 sps:$4 sm:$0xff]  }
  0xac   : > { %924 = vmatpush1.bf16.msra.mxu0 %v5540_v11  ;;  %1362 = vmatprep.subr.bf16.mxu1 %v5607_v34  ;;  %v5633_v0 = vld [vmem:[#allocation7 + $0xc0] ss:$8 sps:$4 sm:$0xff]   ;;  %v5583_v2 = vld [vmem:[%s6270_s20 + $0x44] ss:$8 sps:$4 sm:$0xff]   ;;  %v5586_v4 = vld [vmem:[%s6270_s20 + $0x54] ss:$8 sps:$4 sm:$0xff]  }
  0xad   : > { %925 = vmatprep.subr.bf16.mxu0 %v5541_v12  ;;  %v5585_v3 = vld [vmem:[%s6270_s20 + $0x40] ss:$8 sps:$4 sm:$0xff]   ;;  %v5588_v5 = vld [vmem:[%s6270_s20 + $0x50] ss:$8 sps:$4 sm:$0xff]   ;;  %v5589_v6 = vld [vmem:[%s6270_s20 + $0x64] ss:$8 sps:$4 sm:$0xff]  }
  0xae   : > { %v5591_v7 = vld [vmem:[%s6270_s20 + $0x60] ss:$8 sps:$4 sm:$0xff]   ;;  %v5592_v8 = vld [vmem:[%s6270_s20 + $0x74] ss:$8 sps:$4 sm:$0xff]   ;;  %v5594_v9 = vld [vmem:[%s6270_s20 + $0x70] ss:$8 sps:$4 sm:$0xff]  }
  0xaf   : > { %1363 = vmatpush1.bf16.msra.mxu1 %v5609_v37  ;;  %v5634_v10 = vld [vmem:[#allocation7 + $0xd4] ss:$8 sps:$4 sm:$0xff]   ;;  %v5636_v11 = vld [vmem:[#allocation7 + $0xd0] ss:$8 sps:$4 sm:$0xff]   ;;  %v5637_v12 = vld [vmem:[#allocation7 + $0xe4] ss:$8 sps:$4 sm:$0xff]  }
  0xb0   : > { %926 = vmatpush1.bf16.msra.mxu0 %v5543_v14  ;;  %1364 = vmatprep.subr.bf16.mxu1 %v5610_v38  ;;  %v5639_v14 = vld [vmem:[#allocation7 + $0xe0] ss:$8 sps:$4 sm:$0xff]   ;;  %v5647_v21 = vld [vmem:[%s9153_s7 + $0x50] sm:$0xff]   ;;  %v5649_v23 = vld [vmem:[%s9153_s7 + $0x58] sm:$0xff]   ;;  %s9232_s11 = sshll.u32 %s6266_s14, 8  ;;  %s9321_s9 = sld [smem:[#allocation162_spill]] }
  0xb1   : > { %927 = vmatprep.subr.bf16.mxu0 %v5544_v15  ;;  %v5640_v15 = vld [vmem:[#allocation7 + $0xf4] ss:$8 sps:$4 sm:$0xff]   ;;  %v5646_v20 = vld [vmem:[%s9153_s7 + $0x8] sm:$0xff]   ;;  %v5651_v25 = vld [vmem:[%s9153_s7 + $0x60] sm:$0xff]   ;;  %s6566_s16 = scalar_lea.vmem [#allocation10], %s9232_s11  ;;  %s9322_s29 = sld [smem:[#allocation165_spill]] }
  0xb2   : > { %v5652_v26 = vld [vmem:[%s9153_s7 + $0x20] sm:$0xff]   ;;  %v5655_v29 = vld [vmem:[%s9153_s7 + $0x70] sm:$0xff]   ;;  %s5022_s15 = sshll.u32 %s6085_s25, 4  ;;  %s9336_s21 = sld [smem:[#allocation168_spill]] }
  0xb3   : > { %1365 = vmatpush1.bf16.msra.mxu1 %v5612_v40  ;;  %v5656_v30 = vld [vmem:[%s9153_s7 + $0x30] sm:$0xff]   ;;  %v661_v34 = vld [vmem:[%s9148_s2] sm:$0x3]  ;;  %p607_p10 = scmp.lt.s32.totalorder %s5022_s15, 31  ;;  %s9416_s26 = sld [smem:[#allocation163_spill]] }
  0xb4   : > { %928 = vmatpush1.bf16.msra.mxu0 %v5546_v16  ;;  %1366 = vmatprep.subr.bf16.mxu1 %v5613_v42  ;;  %v5642_v16 = vld [vmem:[#allocation7 + $0xf0] ss:$8 sps:$4 sm:$0xff]   ;;  %v1058_v37 = vld [vmem:[%s9149_s3] sm:$0x3]  ;;  %s9231_s17 = sshll.u32 %s6085_s25, 12  ;;  %s4825_s27 = sshll.u32 %s6566_s16, 4  ;;  %s8120_s27 = int_to_ptr.vmem [resolvable:$true] %s4825_s27 }
  0xb5   : > { %929 = vmatprep.subr.bf16.mxu0 %v5547_v17  ;;  %v5643_v17 = vld [vmem:[%s9153_s7 + $0x40] sm:$0xff]   ;;  %s9786_s15 = smov (!%p607_p10, %s5022_s15), 31  ;;  %s5975_s0 = smov [#allocation10]  }
  0xb7   : > { %1367 = vmatpush1.bf16.msra.mxu1 %v5615_v44 }
  0xb8   : > { %930 = vmatpush1.bf16.msra.mxu0 %v5549_v18  ;;  %1368 = vmatprep.subr.bf16.mxu1 %v5616_v46  ;;  %v5644_v18 = vld [vmem:[%s9153_s7] sm:$0xff]  }
  0xb9   : > { %931 = vmatprep.subr.bf16.mxu0 %v5550_v19  ;;  %v5645_v19 = vld [vmem:[%s9153_s7 + $0x48] sm:$0xff]  }
  0xbb   : > { %1369 = vmatpush1.bf16.msra.mxu1 %v5618_v48 }
  0xbc   : > { %932 = vmatpush1.bf16.msra.mxu0 %v5552_v22  ;;  %1370 = vmatprep.subr.bf16.mxu1 %v5619_v49  ;;  %v5648_v22 = vld [vmem:[%s9153_s7 + $0x10] sm:$0xff]  }
  0xbd   : > { %933 = vmatprep.subr.bf16.mxu0 %v5553_v24  ;;  %v5650_v24 = vld [vmem:[%s9153_s7 + $0x18] sm:$0xff]  }
  0xbf   : > { %1371 = vmatpush1.bf16.msra.mxu1 %v5621_v52 }
  0xc0   : > { %934 = vmatpush1.bf16.msra.mxu0 %v5555_v27  ;;  %1372 = vmatprep.subr.bf16.mxu1 %v5622_v53  ;;  %v5653_v27 = vld [vmem:[%s9153_s7 + $0x68] sm:$0xff]  }
  0xc1   : > { %935 = vmatprep.subr.bf16.mxu0 %v5556_v28  ;;  %v5654_v28 = vld [vmem:[%s9153_s7 + $0x28] sm:$0xff]  }
  0xc3   : > { %1373 = vmatpush1.bf16.msra.mxu1 %v5624_v54 }
  0xc4   : > { %936 = vmatpush1.bf16.msra.mxu0 %v5558_v31  ;;  %1374 = vmatprep.subr.bf16.mxu1 %v5625_v55  ;;  %v663_v31 = vlaneseq }
  0xc5   : > { %937 = vmatprep.subr.bf16.mxu0 %v5559_v32 }
  0xc6   : > { %v6345_v32 = vshrl.u32 %v663_v31, 7 }
  0xc7   : > { %1375 = vmatpush1.bf16.msra.mxu1 %v5627_v58 }
  0xc8   : > { %938 = vmatpush1.bf16.msra.mxu0 %v5561_v35  ;;  %1376 = vmatprep.subr.bf16.mxu1 %v5628_v59  ;;  %v6348_v33 = vsub.s32 0, %v6345_v32  ;;  %v6354_v35 = vsub.s32 1, %v6345_v32 }
  0xc9   : > { %939 = vmatprep.subr.bf16.mxu0 %v5562_v36 }
  0xca   : > { %v6357_v36 = vrot.slane %v661_v34, %v6348_v33  ;;  %v6363_v38 = vrot.slane %v661_v34, %v6354_v35  ;;  %v6366_v40 = vrot.slane %v1058_v37, %v6354_v35  ;;  %v6370_v42 = vrot.slane %v1058_v37, %v6348_v33 }
  0xcb   : > { %1377 = vmatpush1.bf16.msra.mxu1 %v5630_v60 }
  0xcc   : > { %940 = vmatpush1.bf16.msra.mxu0 %v5564_v39  ;;  %1378 = vmatprep.subr.bf16.mxu1 %v5631_v61 }
  0xcd   : > { %941 = vmatprep.subr.bf16.mxu0 %v5565_v41 }
  0xcf   : > { %1379 = vmatpush1.bf16.msra.mxu1 %v5633_v0 }
  0xd0   : > { %942 = vmatpush1.bf16.msra.mxu0 %v5567_v43  ;;  %1380 = vmatprep.subr.bf16.mxu1 %v5634_v10 }
  0xd1   : > { %943 = vmatprep.subr.bf16.mxu0 %v5568_v45 }
  0xd3   : > { %1381 = vmatpush1.bf16.msra.mxu1 %v5636_v11 }
  0xd4   : > { %944 = vmatpush1.bf16.msra.mxu0 %v5570_v47  ;;  %1382 = vmatprep.subr.bf16.mxu1 %v5637_v12 }
  0xd5   : > { %5338 = vmatprep.subr.bf16.mxu0 %v5643_v17 }
  0xd7   : > { %946 = vmatmul.mubr.bf16.vlgmr.msra.gmra.mrb[0].mxu0 %v5573_v50  ;;  %1383 = vmatpush1.bf16.msra.mxu1 %v5639_v14 }
  0xd8   : > { %955 = vmatprep.mubr.bf16.mxu0 %v5574_v51  ;;  %1384 = vmatprep.subr.bf16.mxu1 %v5640_v15 }
  0xd9   : > { %5339 = vmatpush3.bf16.msra.mxu0 %v5644_v18 }
  0xda   : > { %5340 = vmatprep.subr.bf16.mxu0 %v5645_v19 }
  0xdb   : > { %1385 = vmatpush1.bf16.msra.mxu1 %v5642_v16 }
  0xdd   : > { %5341 = vmatpush3.bf16.msra.mxu0 %v5646_v20 }
  0xde   : > { %5342 = vmatprep.subr.bf16.mxu0 %v5647_v21 }
  0xdf   : > { %956 = vmatmul.mubr.bf16.gmra.mrb[4].mxu0 %v5576_v56 }
  0xe0   : > { %965 = vmatprep.mubr.bf16.mxu0 %v5577_v57 }
  0xe1   : > { %5343 = vmatpush3.bf16.msra.mxu0 %v5648_v22 }
  0xe2   : > { %5344 = vmatprep.subr.bf16.mxu0 %v5649_v23 }
  0xe5   : > { %5345 = vmatpush3.bf16.msra.mxu0 %v5650_v24 }
  0xe6   : > { %5346 = vmatprep.subr.bf16.mxu0 %v5651_v25 }
  0xe7   : > { %966 = vmatmul.mubr.bf16.gmra.mrb[8].mxu0 %v5579_v62 }
  0xe8   : > { %975 = vmatprep.mubr.bf16.mxu0 %v5580_v63 }
  0xe9   : > { %5347 = vmatpush3.bf16.msra.mxu0 %v5652_v26 }
  0xea   : > { %5348 = vmatprep.subr.bf16.mxu0 %v5653_v27 }
  0xed   : > { %5349 = vmatpush3.bf16.msra.mxu0 %v5654_v28 }
  0xee   : > { %5350 = vmatprep.subr.bf16.mxu0 %v5655_v29 }
  0xef   : > { %976 = vmatmul.mubr.bf16.gmra.mrb[12].mxu0 %v5582_v1 }
  0xf0   : > { %985 = vmatprep.mubr.bf16.mxu0 %v5583_v2 }
  0xf1   : > { %5351 = vmatpush3.bf16.msra.mxu0 %v5656_v30 }
  0xf7   : > { %986 = vmatmul.mubr.bf16.gmra.mrb[16].mxu0 %v5585_v3 }
  0xf8   : > { %995 = vmatprep.mubr.bf16.mxu0 %v5586_v4 }
  0xff   : > { %996 = vmatmul.mubr.bf16.gmra.mrb[20].mxu0 %v5588_v5 }
 0x100   : > { %1005 = vmatprep.mubr.bf16.mxu0 %v5589_v6 }
 0x107   : > { %1006 = vmatmul.mubr.bf16.gmra.mrb[24].mxu0 %v5591_v7 }
 0x108   : > { %1015 = vmatprep.mubr.bf16.mxu0 %v5592_v8 }
 0x10f   : > { %1016 = vmatmul.mubr.bf16.gmra.mrb[28].mxu0 %v5594_v9 }
 0x1aa   : > { %v947_v39 = vpop.f32.mrb[0].mxu0 }
 0x1ab   : > { %v948_v41 = vadd.f32 %v947_v39, %v6357_v36  ;;  %v949_v43 = vpop.f32.mrb[1].mxu0 }
 0x1ac   : > { %v950_v44 = vadd.f32 %v949_v43, %v6363_v38  ;;  %v951_v45 = vpop.f32.mrb[2].mxu0 }
 0x1ad   : > { %v952_v46 = vadd.f32 %v951_v45, %v6357_v36  ;;  %v953_v47 = vpop.f32.mrb[3].mxu0  ;;  %v1070_v50 = vmul.f32 %v6370_v42, %v948_v41  ;;  %vm1026_vm2 = vcmp.gt.f32.partialorder %v948_v41, 0.0 }
 0x1ae   : > { %v1071_v48 = vmul.f32 %v6366_v40, %v950_v44  ;;  %v954_v49 = vadd.f32 %v953_v47, %v6363_v38  ;;  %vm1027_vm1 = vcmp.gt.f32.partialorder %v950_v44, 0.0 }
 0x1af   : > { %vm1028_vm0 = vcmp.gt.f32.partialorder %v952_v46, 0.0  ;;  %v1072_v51 = vmul.f32 %v6370_v42, %v952_v46  ;;  %v6388_v60 = vsel %vm1026_vm2, %v948_v41, %v1070_v50 }
 0x1b0   : > { %v1073_v52 = vmul.f32 %v6366_v40, %v954_v49  ;;  %vm1029_vm3 = vcmp.gt.f32.partialorder %v954_v49, 0.0  ;;  %v6381_v55 = vsel %vm1027_vm1, %v950_v44, %v1071_v48  ;;  %9292 = vst [vmem:[#allocation23_spill] sm:$0xff] %v6388_v60 }
 0x1b1   : > { %v6379_v53 = vsel %vm1028_vm0, %v952_v46, %v1072_v51  ;;  %9290 = vst [vmem:[#allocation21_spill] sm:$0xff] %v6381_v55 }
 0x1b2   : > { %9289 = vst [vmem:[#allocation20_spill] sm:$0xff] %v6379_v53  ;;  %v957_v54 = vpop.f32.mrb[4].mxu0  ;;  %v6383_v56 = vsel %vm1029_vm3, %v954_v49, %v1073_v52  ;;  %v1134_v63 = vpack.c.bf16 %v6379_v53, %v6388_v60 }
 0x1b3   : > { %9291 = vst [vmem:[#allocation22_spill] sm:$0xff] %v6383_v56  ;;  %v958_v57 = vadd.f32 %v957_v54, %v6357_v36  ;;  %v959_v58 = vpop.f32.mrb[5].mxu0  ;;  %v1135_v59 = vpack.c.bf16 %v6383_v56, %v6381_v55 }
 0x1b4   : > { %v960_v61 = vadd.f32 %v959_v58, %v6363_v38  ;;  %v961_v62 = vpop.f32.mrb[6].mxu0 }
 0x1b5   : > { %v962_v0 = vadd.f32 %v961_v62, %v6357_v36  ;;  %v963_v1 = vpop.f32.mrb[7].mxu0  ;;  %1386 = vmatprep.mubr.bf16.mxu1 %v1135_v59  ;;  %v1074_v4 = vmul.f32 %v6370_v42, %v958_v57  ;;  %vm1030_vm6 = vcmp.gt.f32.partialorder %v958_v57, 0.0 }
 0x1b6   : > { %v1075_v2 = vmul.f32 %v6366_v40, %v960_v61  ;;  %v964_v3 = vadd.f32 %v963_v1, %v6363_v38  ;;  %1387 = vmatmul.mubr.bf16.vlgmr.msra.gmra.mrb[0].mxu1 %v1134_v63  ;;  %vm1031_vm4 = vcmp.gt.f32.partialorder %v960_v61, 0.0 }
 0x1b7   : > { %vm1032_vm5 = vcmp.gt.f32.partialorder %v962_v0, 0.0  ;;  %v1076_v5 = vmul.f32 %v6370_v42, %v962_v0  ;;  %v6408_v15 = vsel %vm1030_vm6, %v958_v57, %v1074_v4 }
 0x1b8   : > { %vm1033_vm7 = vcmp.gt.f32.partialorder %v964_v3, 0.0  ;;  %v1077_v6 = vmul.f32 %v6366_v40, %v964_v3  ;;  %v6401_v9 = vsel %vm1031_vm4, %v960_v61, %v1075_v2  ;;  %9296 = vst [vmem:[#allocation27_spill] sm:$0xff] %v6408_v15 }
 0x1b9   : > { %v6399_v7 = vsel %vm1032_vm5, %v962_v0, %v1076_v5  ;;  %9294 = vst [vmem:[#allocation25_spill] sm:$0xff] %v6401_v9 }
 0x1ba   : > { %9293 = vst [vmem:[#allocation24_spill] sm:$0xff] %v6399_v7  ;;  %v967_v8 = vpop.f32.mrb[8].mxu0  ;;  %v6403_v10 = vsel %vm1033_vm7, %v964_v3, %v1077_v6  ;;  %v1136_v18 = vpack.c.bf16 %v6399_v7, %v6408_v15 }
 0x1bb   : > { %9295 = vst [vmem:[#allocation26_spill] sm:$0xff] %v6403_v10  ;;  %v968_v11 = vadd.f32 %v967_v8, %v6357_v36  ;;  %v969_v12 = vpop.f32.mrb[9].mxu0  ;;  %v1137_v14 = vpack.c.bf16 %v6403_v10, %v6401_v9 }
 0x1bc   : > { %v970_v16 = vadd.f32 %v969_v12, %v6363_v38  ;;  %v971_v17 = vpop.f32.mrb[10].mxu0 }
 0x1bd   : > { %v972_v19 = vadd.f32 %v971_v17, %v6357_v36  ;;  %v973_v20 = vpop.f32.mrb[11].mxu0  ;;  %1396 = vmatprep.mubr.bf16.mxu1 %v1137_v14  ;;  %v1078_v23 = vmul.f32 %v6370_v42, %v968_v11  ;;  %vm1034_vm10 = vcmp.gt.f32.partialorder %v968_v11, 0.0 }
 0x1be   : > { %v1079_v21 = vmul.f32 %v6366_v40, %v970_v16  ;;  %v974_v22 = vadd.f32 %v973_v20, %v6363_v38  ;;  %1397 = vmatmul.mubr.bf16.gmra.mrb[4].mxu1 %v1136_v18  ;;  %vm1035_vm8 = vcmp.gt.f32.partialorder %v970_v16, 0.0 }
 0x1bf   : > { %vm1036_vm9 = vcmp.gt.f32.partialorder %v972_v19, 0.0  ;;  %v1080_v24 = vmul.f32 %v6370_v42, %v972_v19  ;;  %v6428_v37 = vsel %vm1034_vm10, %v968_v11, %v1078_v23 }
 0x1c0   : > { %vm1037_vm11 = vcmp.gt.f32.partialorder %v974_v22, 0.0  ;;  %v1081_v25 = vmul.f32 %v6366_v40, %v974_v22  ;;  %v6421_v28 = vsel %vm1035_vm8, %v970_v16, %v1079_v21  ;;  %9300 = vst [vmem:[#allocation31_spill] sm:$0xff] %v6428_v37 }
 0x1c1   : > { %v6419_v26 = vsel %vm1036_vm9, %v972_v19, %v1080_v24  ;;  %9298 = vst [vmem:[#allocation29_spill] sm:$0xff] %v6421_v28 }
 0x1c2   : > { %9297 = vst [vmem:[#allocation28_spill] sm:$0xff] %v6419_v26  ;;  %v977_v27 = vpop.f32.mrb[12].mxu0  ;;  %v6423_v29 = vsel %vm1037_vm11, %v974_v22, %v1081_v25  ;;  %v1138_v43 = vpack.c.bf16 %v6419_v26, %v6428_v37 }
 0x1c3   : > { %9299 = vst [vmem:[#allocation30_spill] sm:$0xff] %v6423_v29  ;;  %v978_v30 = vadd.f32 %v977_v27, %v6357_v36  ;;  %v979_v31 = vpop.f32.mrb[13].mxu0  ;;  %v1139_v34 = vpack.c.bf16 %v6423_v29, %v6421_v28 }
 0x1c4   : > { %v980_v39 = vadd.f32 %v979_v31, %v6363_v38  ;;  %v981_v41 = vpop.f32.mrb[14].mxu0 }
 0x1c5   : > { %v982_v44 = vadd.f32 %v981_v41, %v6357_v36  ;;  %v983_v45 = vpop.f32.mrb[15].mxu0  ;;  %1406 = vmatprep.mubr.bf16.mxu1 %v1139_v34  ;;  %v1082_v48 = vmul.f32 %v6370_v42, %v978_v30  ;;  %vm1038_vm14 = vcmp.gt.f32.partialorder %v978_v30, 0.0 }
 0x1c6   : > { %v1083_v46 = vmul.f32 %v6366_v40, %v980_v39  ;;  %v984_v47 = vadd.f32 %v983_v45, %v6363_v38  ;;  %1407 = vmatmul.mubr.bf16.gmra.mrb[8].mxu1 %v1138_v43  ;;  %vm1039_vm12 = vcmp.gt.f32.partialorder %v980_v39, 0.0 }
 0x1c7   : > { %vm1040_vm13 = vcmp.gt.f32.partialorder %v982_v44, 0.0  ;;  %v1084_v49 = vmul.f32 %v6370_v42, %v982_v44  ;;  %v6448_v62 = vsel %vm1038_vm14, %v978_v30, %v1082_v48 }
 0x1c8   : > { %vm1041_vm15 = vcmp.gt.f32.partialorder %v984_v47, 0.0  ;;  %v1085_v50 = vmul.f32 %v6366_v40, %v984_v47  ;;  %v6441_v54 = vsel %vm1039_vm12, %v980_v39, %v1083_v46  ;;  %9304 = vst [vmem:[#allocation35_spill] sm:$0xff] %v6448_v62 }
 0x1c9   : > { %v6439_v51 = vsel %vm1040_vm13, %v982_v44, %v1084_v49  ;;  %9302 = vst [vmem:[#allocation33_spill] sm:$0xff] %v6441_v54 }
 0x1ca   : > { %9301 = vst [vmem:[#allocation32_spill] sm:$0xff] %v6439_v51  ;;  %v987_v52 = vpop.f32.mrb[16].mxu0  ;;  %v6443_v57 = vsel %vm1041_vm15, %v984_v47, %v1085_v50  ;;  %v1140_v1 = vpack.c.bf16 %v6439_v51, %v6448_v62  ;;  %v2220_v51 = vld [vmem:[#allocation8 + $0x3a8] sm:$0xff] }
 0x1cb   : > { %9303 = vst [vmem:[#allocation34_spill] sm:$0xff] %v6443_v57  ;;  %v988_v58 = vadd.f32 %v987_v52, %v6357_v36  ;;  %v989_v59 = vpop.f32.mrb[17].mxu0  ;;  %v1141_v61 = vpack.c.bf16 %v6443_v57, %v6441_v54  ;;  %v2216_v57 = vld [vmem:[#allocation8 + $0x388] sm:$0xff]  ;;  %v6824_v54 = vld [vmem:[%s6270_s20 + $0x70] ss:$8 sps:$4 sm:$0xff]  }
 0x1cc   : > { %v990_v63 = vadd.f32 %v989_v59, %v6363_v38  ;;  %v991_v0 = vpop.f32.mrb[18].mxu0 }
 0x1cd   : > { %v992_v2 = vadd.f32 %v991_v0, %v6357_v36  ;;  %v993_v3 = vpop.f32.mrb[19].mxu0  ;;  %1416 = vmatprep.mubr.bf16.mxu1 %v1141_v61  ;;  %v1086_v6 = vmul.f32 %v6370_v42, %v988_v58  ;;  %vm1042_vm2 = vcmp.gt.f32.partialorder %v988_v58, 0.0 }
 0x1ce   : > { %v1087_v4 = vmul.f32 %v6366_v40, %v990_v63  ;;  %v994_v5 = vadd.f32 %v993_v3, %v6363_v38  ;;  %1417 = vmatmul.mubr.bf16.gmra.mrb[12].mxu1 %v1140_v1  ;;  %vm1043_vm0 = vcmp.gt.f32.partialorder %v990_v63, 0.0 }
 0x1cf   : > { %vm1044_vm1 = vcmp.gt.f32.partialorder %v992_v2, 0.0  ;;  %v1088_v8 = vmul.f32 %v6370_v42, %v992_v2  ;;  %v6468_v21 = vsel %vm1042_vm2, %v988_v58, %v1086_v6 }
 0x1d0   : > { %vm1045_vm3 = vcmp.gt.f32.partialorder %v994_v5, 0.0  ;;  %v1089_v11 = vmul.f32 %v6366_v40, %v994_v5  ;;  %v6461_v16 = vsel %vm1043_vm0, %v990_v63, %v1087_v4  ;;  %9308 = vst [vmem:[#allocation39_spill] sm:$0xff] %v6468_v21 }
 0x1d1   : > { %v6459_v12 = vsel %vm1044_vm1, %v992_v2, %v1088_v8  ;;  %9306 = vst [vmem:[#allocation37_spill] sm:$0xff] %v6461_v16 }
 0x1d2   : > { %9305 = vst [vmem:[#allocation36_spill] sm:$0xff] %v6459_v12  ;;  %v997_v14 = vpop.f32.mrb[20].mxu0  ;;  %v6463_v17 = vsel %vm1045_vm3, %v994_v5, %v1089_v11  ;;  %v1142_v24 = vpack.c.bf16 %v6459_v12, %v6468_v21  ;;  %v2173_v21 = vld [vmem:[#allocation8 + $0x230] sm:$0xff] }
 0x1d3   : > { %9307 = vst [vmem:[#allocation38_spill] sm:$0xff] %v6463_v17  ;;  %v998_v18 = vadd.f32 %v997_v14, %v6357_v36  ;;  %v999_v19 = vpop.f32.mrb[21].mxu0  ;;  %v1143_v20 = vpack.c.bf16 %v6463_v17, %v6461_v16  ;;  %v2169_v16 = vld [vmem:[#allocation8 + $0x210] sm:$0xff] }
 0x1d4   : > { %v1000_v22 = vadd.f32 %v999_v19, %v6363_v38  ;;  %v1001_v23 = vpop.f32.mrb[22].mxu0 }
 0x1d5   : > { %v1002_v25 = vadd.f32 %v1001_v23, %v6357_v36  ;;  %v1003_v27 = vpop.f32.mrb[23].mxu0  ;;  %1426 = vmatprep.mubr.bf16.mxu1 %v1143_v20  ;;  %v1090_v34 = vmul.f32 %v6370_v42, %v998_v18  ;;  %vm1046_vm6 = vcmp.gt.f32.partialorder %v998_v18, 0.0 }
 0x1d6   : > { %v1091_v30 = vmul.f32 %v6366_v40, %v1000_v22  ;;  %v1004_v31 = vadd.f32 %v1003_v27, %v6363_v38  ;;  %1427 = vmatmul.mubr.bf16.gmra.mrb[16].mxu1 %v1142_v24  ;;  %vm1047_vm4 = vcmp.gt.f32.partialorder %v1000_v22, 0.0 }
 0x1d7   : > { %vm1048_vm5 = vcmp.gt.f32.partialorder %v1002_v25, 0.0  ;;  %v1092_v39 = vmul.f32 %v6370_v42, %v1002_v25  ;;  %v6488_v50 = vsel %vm1046_vm6, %v998_v18, %v1090_v34 }
 0x1d8   : > { %vm1049_vm7 = vcmp.gt.f32.partialorder %v1004_v31, 0.0  ;;  %v1093_v41 = vmul.f32 %v6366_v40, %v1004_v31  ;;  %v6481_v45 = vsel %vm1047_vm4, %v1000_v22, %v1091_v30  ;;  %9312 = vst [vmem:[#allocation43_spill] sm:$0xff] %v6488_v50 }
 0x1d9   : > { %v6479_v43 = vsel %vm1048_vm5, %v1002_v25, %v1092_v39  ;;  %9310 = vst [vmem:[#allocation41_spill] sm:$0xff] %v6481_v45 }
 0x1da   : > { %9309 = vst [vmem:[#allocation40_spill] sm:$0xff] %v6479_v43  ;;  %v1007_v44 = vpop.f32.mrb[24].mxu0  ;;  %v6483_v46 = vsel %vm1049_vm7, %v1004_v31, %v1093_v41  ;;  %v1144_v59 = vpack.c.bf16 %v6479_v43, %v6488_v50  ;;  %v2157_v50 = vld [vmem:[#allocation8 + $0x1b0] sm:$0xff] }
 0x1db   : > { %9311 = vst [vmem:[#allocation42_spill] sm:$0xff] %v6483_v46  ;;  %v1008_v47 = vadd.f32 %v1007_v44, %v6357_v36  ;;  %v1009_v48 = vpop.f32.mrb[25].mxu0  ;;  %v1145_v49 = vpack.c.bf16 %v6483_v46, %v6481_v45  ;;  %v2153_v45 = vld [vmem:[#allocation8 + $0x190] sm:$0xff] }
 0x1dc   : > { %v1010_v52 = vadd.f32 %v1009_v48, %v6363_v38  ;;  %v1011_v58 = vpop.f32.mrb[26].mxu0 }
 0x1dd   : > { %v1012_v61 = vadd.f32 %v1011_v58, %v6357_v36  ;;  %v1013_v63 = vpop.f32.mrb[27].mxu0  ;;  %1436 = vmatprep.mubr.bf16.mxu1 %v1145_v49  ;;  %v1094_v2 = vmul.f32 %v6370_v42, %v1008_v47  ;;  %vm1050_vm10 = vcmp.gt.f32.partialorder %v1008_v47, 0.0  ;;  %v1499_v58 = vld [vmem:[%s9152_s6] sm:$0x3] }
 0x1de   : > { %v1095_v0 = vmul.f32 %v6366_v40, %v1010_v52  ;;  %v1014_v1 = vadd.f32 %v1013_v63, %v6363_v38  ;;  %1437 = vmatmul.mubr.bf16.gmra.mrb[20].mxu1 %v1144_v59  ;;  %vm1051_vm8 = vcmp.gt.f32.partialorder %v1010_v52, 0.0 }
 0x1df   : > { %vm1052_vm9 = vcmp.gt.f32.partialorder %v1012_v61, 0.0  ;;  %v1096_v3 = vmul.f32 %v6370_v42, %v1012_v61  ;;  %v6508_v20 = vsel %vm1050_vm10, %v1008_v47, %v1094_v2 }
 0x1e0   : > { %vm1053_vm11 = vcmp.gt.f32.partialorder %v1014_v1, 0.0  ;;  %v1097_v4 = vmul.f32 %v6366_v40, %v1014_v1  ;;  %v6501_v8 = vsel %vm1051_vm8, %v1010_v52, %v1095_v0  ;;  %9316 = vst [vmem:[#allocation47_spill] sm:$0xff] %v6508_v20  ;;  %v1182_v52 = vld [vmem:[%s9151_s5] sm:$0x3]  ;;  %v6555_v0 = vrot.slane %v1499_v58, %v6354_v35 }
 0x1e1   : > { %v6499_v5 = vsel %vm1052_vm9, %v1012_v61, %v1096_v3  ;;  %9314 = vst [vmem:[#allocation45_spill] sm:$0xff] %v6501_v8  ;;  %v6548_v59 = vrot.slane %v1182_v52, %v6354_v35  ;;  %v6551_v61 = vrot.slane %v1499_v58, %v6348_v33 }
 0x1e2   : > { %9313 = vst [vmem:[#allocation44_spill] sm:$0xff] %v6499_v5  ;;  %v1017_v6 = vpop.f32.mrb[28].mxu0  ;;  %v6503_v11 = vsel %vm1053_vm11, %v1014_v1, %v1097_v4  ;;  %v1146_v24 = vpack.c.bf16 %v6499_v5, %v6508_v20  ;;  %v2141_v20 = vld [vmem:[#allocation8 + $0x130] sm:$0xff] }
 0x1e3   : > { %9315 = vst [vmem:[#allocation46_spill] sm:$0xff] %v6503_v11  ;;  %v1018_v14 = vadd.f32 %v1017_v6, %v6357_v36  ;;  %v1019_v18 = vpop.f32.mrb[29].mxu0  ;;  %v1147_v19 = vpack.c.bf16 %v6503_v11, %v6501_v8  ;;  %v2137_v8 = vld [vmem:[#allocation8 + $0x110] sm:$0xff] }
 0x1e4   : > { %v1020_v22 = vadd.f32 %v1019_v18, %v6363_v38  ;;  %v1021_v23 = vpop.f32.mrb[30].mxu0 }
 0x1e5   : > { %v1022_v25 = vadd.f32 %v1021_v23, %v6357_v36  ;;  %v1023_v27 = vpop.f32.mrb[31].mxu0  ;;  %1446 = vmatprep.mubr.bf16.mxu1 %v1147_v19  ;;  %v1098_v34 = vmul.f32 %v6370_v42, %v1018_v14  ;;  %vm1054_vm14 = vcmp.gt.f32.partialorder %v1018_v14, 0.0 }
 0x1e6   : > { %v1099_v30 = vmul.f32 %v6366_v40, %v1020_v22  ;;  %v1024_v31 = vadd.f32 %v1023_v27, %v6363_v38  ;;  %1447 = vmatmul.mubr.bf16.gmra.mrb[24].mxu1 %v1146_v24  ;;  %vm1055_vm12 = vcmp.gt.f32.partialorder %v1020_v22, 0.0 }
 0x1e7   : > { %vm1056_vm13 = vcmp.gt.f32.partialorder %v1022_v25, 0.0  ;;  %v1100_v39 = vmul.f32 %v6370_v42, %v1022_v25  ;;  %v6527_v48 = vsel %vm1054_vm14, %v1018_v14, %v1098_v34  ;;  %v5658_v42 = vld [vmem:[%s9153_s7 + $0x38] sm:$0xff]  }
 0x1e8   : > { %vm1057_vm15 = vcmp.gt.f32.partialorder %v1024_v31, 0.0  ;;  %v1101_v41 = vmul.f32 %v6366_v40, %v1024_v31  ;;  %v6521_v36 = vsel %vm1055_vm12, %v1020_v22, %v1099_v30  ;;  %9320 = vst [vmem:[#allocation51_spill] sm:$0xff] %v6527_v48  ;;  %v5657_v40 = vld [vmem:[%s9153_s7 + $0x78] sm:$0xff]  }
 0x1e9   : > { %v6519_v44 = vsel %vm1056_vm13, %v1022_v25, %v1100_v39  ;;  %9318 = vst [vmem:[#allocation49_spill] sm:$0xff] %v6521_v36  ;;  %5352 = vmatprep.subr.bf16.mxu0 %v5657_v40 }
 0x1ea   : > { %9317 = vst [vmem:[#allocation48_spill] sm:$0xff] %v6519_v44  ;;  %v6523_v47 = vsel %vm1057_vm15, %v1024_v31, %v1101_v41  ;;  %v1148_v49 = vpack.c.bf16 %v6519_v44, %v6527_v48  ;;  %5353 = vmatpush3.bf16.msra.mxu0 %v5658_v42  ;;  %v2125_v48 = vld [vmem:[#allocation8 + $0xb0] sm:$0xff] }
 0x1eb   : > { %9319 = vst [vmem:[#allocation50_spill] sm:$0xff] %v6523_v47  ;;  %v1149_v38 = vpack.c.bf16 %v6523_v47, %v6521_v36  ;;  %v2121_v36 = vld [vmem:[#allocation8 + $0x90] sm:$0xff] }
 0x1ed   : > { %1456 = vmatprep.mubr.bf16.mxu1 %v1149_v38 }
 0x1ee   : > { %1457 = vmatmul.mubr.bf16.gmra.mrb[28].mxu1 %v1148_v49 }
 0x1ef   : > { %2945 = vmatprep.mubr.bf16.mxu1 %v6285_v13  ;;  %v6545_v13 = vrot.slane %v1182_v52, %v6348_v33 }
 0x289   : > { %v1388_v63 = vpop.f32.mrb[0].mxu1 }
 0x28a   : > { %v1389_v1 = vadd.f32 %v1388_v63, %v6545_v13  ;;  %v1390_v2 = vpop.f32.mrb[1].mxu1 }
 0x28b   : > { %v1391_v3 = vadd.f32 %v1390_v2, %v6548_v59  ;;  %v1392_v4 = vpop.f32.mrb[2].mxu1 }
 0x28c   : > { %vm1467_vm0 = vcmp.gt.f32.partialorder %v1389_v1, 0.0  ;;  %v1511_v6 = vmul.f32 %v6551_v61, %v1389_v1  ;;  %v1393_v14 = vadd.f32 %v1392_v4, %v6545_v13  ;;  %v1394_v18 = vpop.f32.mrb[3].mxu1 }
 0x28d   : > { %vm1468_vm1 = vcmp.gt.f32.partialorder %v1391_v3, 0.0  ;;  %v1512_v19 = vmul.f32 %v6555_v0, %v1391_v3  ;;  %v1395_v22 = vadd.f32 %v1394_v18, %v6548_v59 }
 0x28e   : > { %v1543_v23 = vsel %vm1467_vm0, %v1389_v1, %v1511_v6  ;;  %vm1469_vm2 = vcmp.gt.f32.partialorder %v1393_v14, 0.0  ;;  %v1513_v24 = vmul.f32 %v6551_v61, %v1393_v14 }
 0x28f   : > { %1575 = vst [vmem:[%s6566_s16] sm:$0xff] %v1543_v23  ;;  %vm1470_vm3 = vcmp.gt.f32.partialorder %v1395_v22, 0.0  ;;  %v1514_v25 = vmul.f32 %v6555_v0, %v1395_v22  ;;  %v1544_v27 = vsel %vm1468_vm1, %v1391_v3, %v1512_v19 }
 0x290   : > { %v1545_v30 = vsel %vm1469_vm2, %v1393_v14, %v1513_v24  ;;  %1576 = vst [vmem:[%s6566_s16 + $0x8] sm:$0xff] %v1544_v27 }
 0x291   : > { %1577 = vst [vmem:[%s6566_s16 + $0x10] sm:$0xff] %v1545_v30  ;;  %v1607_v31 = vpack.c.bf16 %v1545_v30, %v1543_v23  ;;  %v1398_v34 = vpop.f32.mrb[4].mxu1  ;;  %v1546_v39 = vsel %vm1470_vm3, %v1395_v22, %v1514_v25 }
 0x292   : > { %v1399_v41 = vadd.f32 %v1398_v34, %v6545_v13  ;;  %v1400_v38 = vpop.f32.mrb[5].mxu1  ;;  %1578 = vst [vmem:[%s6566_s16 + $0x18] sm:$0xff] %v1546_v39  ;;  %v1608_v49 = vpack.c.bf16 %v1546_v39, %v1544_v27 }
 0x293   : > { %v1401_v40 = vadd.f32 %v1400_v38, %v6548_v59  ;;  %v1402_v42 = vpop.f32.mrb[6].mxu1 }
 0x294   : > { %vm1471_vm4 = vcmp.gt.f32.partialorder %v1399_v41, 0.0  ;;  %v1515_v52 = vmul.f32 %v6551_v61, %v1399_v41  ;;  %v1403_v58 = vadd.f32 %v1402_v42, %v6545_v13  ;;  %v1404_v63 = vpop.f32.mrb[7].mxu1  ;;  %1790 = vmatprep.mubr.bf16.mxu0 %v1608_v49 }
 0x295   : > { %vm1472_vm5 = vcmp.gt.f32.partialorder %v1401_v40, 0.0  ;;  %v1516_v1 = vmul.f32 %v6555_v0, %v1401_v40  ;;  %v1405_v2 = vadd.f32 %v1404_v63, %v6548_v59  ;;  %1791 = vmatmul.mubr.bf16.vlgmr.msra.gmra.mrb[32].mxu0 %v1607_v31 }
 0x296   : > { %vm1473_vm6 = vcmp.gt.f32.partialorder %v1403_v58, 0.0  ;;  %v1517_v3 = vmul.f32 %v6551_v61, %v1403_v58  ;;  %v1547_v4 = vsel %vm1471_vm4, %v1399_v41, %v1515_v52 }
 0x297   : > { %vm1474_vm7 = vcmp.gt.f32.partialorder %v1405_v2, 0.0  ;;  %v1518_v6 = vmul.f32 %v6555_v0, %v1405_v2  ;;  %v1548_v14 = vsel %vm1472_vm5, %v1401_v40, %v1516_v1  ;;  %1579 = vst [vmem:[%s6566_s16 + $0x20] sm:$0xff] %v1547_v4 }
 0x298   : > { %1580 = vst [vmem:[%s6566_s16 + $0x28] sm:$0xff] %v1548_v14  ;;  %v1549_v18 = vsel %vm1473_vm6, %v1403_v58, %v1517_v3 }
 0x299   : > { %v1408_v19 = vpop.f32.mrb[8].mxu1  ;;  %v1550_v22 = vsel %vm1474_vm7, %v1405_v2, %v1518_v6  ;;  %1581 = vst [vmem:[%s6566_s16 + $0x30] sm:$0xff] %v1549_v18  ;;  %v1609_v23 = vpack.c.bf16 %v1549_v18, %v1547_v4 }
 0x29a   : > { %v1409_v24 = vadd.f32 %v1408_v19, %v6545_v13  ;;  %v1410_v25 = vpop.f32.mrb[9].mxu1  ;;  %1582 = vst [vmem:[%s6566_s16 + $0x38] sm:$0xff] %v1550_v22  ;;  %v1610_v27 = vpack.c.bf16 %v1550_v22, %v1548_v14 }
 0x29b   : > { %v1411_v30 = vadd.f32 %v1410_v25, %v6548_v59  ;;  %v1412_v31 = vpop.f32.mrb[10].mxu1 }
 0x29c   : > { %vm1475_vm8 = vcmp.gt.f32.partialorder %v1409_v24, 0.0  ;;  %v1519_v34 = vmul.f32 %v6551_v61, %v1409_v24  ;;  %v1413_v39 = vadd.f32 %v1412_v31, %v6545_v13  ;;  %v1414_v41 = vpop.f32.mrb[11].mxu1  ;;  %1798 = vmatprep.mubr.bf16.mxu0 %v1610_v27 }
 0x29d   : > { %vm1476_vm9 = vcmp.gt.f32.partialorder %v1411_v30, 0.0  ;;  %v1520_v38 = vmul.f32 %v6555_v0, %v1411_v30  ;;  %v1415_v49 = vadd.f32 %v1414_v41, %v6548_v59  ;;  %1799 = vmatmul.mubr.bf16.gmra.mrb[36].mxu0 %v1609_v23 }
 0x29e   : > { %vm1477_vm10 = vcmp.gt.f32.partialorder %v1413_v39, 0.0  ;;  %v1521_v40 = vmul.f32 %v6551_v61, %v1413_v39  ;;  %v1551_v42 = vsel %vm1475_vm8, %v1409_v24, %v1519_v34 }
 0x29f   : > { %vm1478_vm11 = vcmp.gt.f32.partialorder %v1415_v49, 0.0  ;;  %v1522_v52 = vmul.f32 %v6555_v0, %v1415_v49  ;;  %v1552_v58 = vsel %vm1476_vm9, %v1411_v30, %v1520_v38  ;;  %1583 = vst [vmem:[%s6566_s16 + $0x40] sm:$0xff] %v1551_v42 }
 0x2a0   : > { %1584 = vst [vmem:[%s6566_s16 + $0x48] sm:$0xff] %v1552_v58  ;;  %v1553_v63 = vsel %vm1477_vm10, %v1413_v39, %v1521_v40 }
 0x2a1   : > { %v1418_v1 = vpop.f32.mrb[12].mxu1  ;;  %v1554_v2 = vsel %vm1478_vm11, %v1415_v49, %v1522_v52  ;;  %1585 = vst [vmem:[%s6566_s16 + $0x50] sm:$0xff] %v1553_v63  ;;  %v1611_v3 = vpack.c.bf16 %v1553_v63, %v1551_v42 }
 0x2a2   : > { %v1419_v4 = vadd.f32 %v1418_v1, %v6545_v13  ;;  %v1420_v6 = vpop.f32.mrb[13].mxu1  ;;  %1586 = vst [vmem:[%s6566_s16 + $0x58] sm:$0xff] %v1554_v2  ;;  %v1612_v14 = vpack.c.bf16 %v1554_v2, %v1552_v58 }
 0x2a3   : > { %v1421_v18 = vadd.f32 %v1420_v6, %v6548_v59  ;;  %v1422_v19 = vpop.f32.mrb[14].mxu1 }
 0x2a4   : > { %vm1479_vm12 = vcmp.gt.f32.partialorder %v1419_v4, 0.0  ;;  %v1523_v22 = vmul.f32 %v6551_v61, %v1419_v4  ;;  %v1423_v23 = vadd.f32 %v1422_v19, %v6545_v13  ;;  %v1424_v24 = vpop.f32.mrb[15].mxu1  ;;  %1806 = vmatprep.mubr.bf16.mxu0 %v1612_v14 }
 0x2a5   : > { %vm1480_vm13 = vcmp.gt.f32.partialorder %v1421_v18, 0.0  ;;  %v1524_v25 = vmul.f32 %v6555_v0, %v1421_v18  ;;  %v1425_v27 = vadd.f32 %v1424_v24, %v6548_v59  ;;  %1807 = vmatmul.mubr.bf16.gmra.mrb[40].mxu0 %v1611_v3 }
 0x2a6   : > { %vm1481_vm14 = vcmp.gt.f32.partialorder %v1423_v23, 0.0  ;;  %v1525_v30 = vmul.f32 %v6551_v61, %v1423_v23  ;;  %v1555_v31 = vsel %vm1479_vm12, %v1419_v4, %v1523_v22 }
 0x2a7   : > { %vm1482_vm15 = vcmp.gt.f32.partialorder %v1425_v27, 0.0  ;;  %v1526_v34 = vmul.f32 %v6555_v0, %v1425_v27  ;;  %v1556_v39 = vsel %vm1480_vm13, %v1421_v18, %v1524_v25  ;;  %1587 = vst [vmem:[%s6566_s16 + $0x60] sm:$0xff] %v1555_v31 }
 0x2a8   : > { %1588 = vst [vmem:[%s6566_s16 + $0x68] sm:$0xff] %v1556_v39  ;;  %v1557_v41 = vsel %vm1481_vm14, %v1423_v23, %v1525_v30 }
 0x2a9   : > { %v1428_v38 = vpop.f32.mrb[16].mxu1  ;;  %v1558_v49 = vsel %vm1482_vm15, %v1425_v27, %v1526_v34  ;;  %1589 = vst [vmem:[%s6566_s16 + $0x70] sm:$0xff] %v1557_v41  ;;  %v1613_v40 = vpack.c.bf16 %v1557_v41, %v1555_v31 }
 0x2aa   : > { %v1429_v42 = vadd.f32 %v1428_v38, %v6545_v13  ;;  %v1430_v52 = vpop.f32.mrb[17].mxu1  ;;  %1590 = vst [vmem:[%s6566_s16 + $0x78] sm:$0xff] %v1558_v49  ;;  %v1614_v58 = vpack.c.bf16 %v1558_v49, %v1556_v39 }
 0x2ab   : > { %v1431_v63 = vadd.f32 %v1430_v52, %v6548_v59  ;;  %v1432_v1 = vpop.f32.mrb[18].mxu1 }
 0x2ac   : > { %vm1483_vm0 = vcmp.gt.f32.partialorder %v1429_v42, 0.0  ;;  %v1527_v2 = vmul.f32 %v6551_v61, %v1429_v42  ;;  %v1433_v3 = vadd.f32 %v1432_v1, %v6545_v13  ;;  %v1434_v4 = vpop.f32.mrb[19].mxu1  ;;  %1814 = vmatprep.mubr.bf16.mxu0 %v1614_v58 }
 0x2ad   : > { %vm1484_vm1 = vcmp.gt.f32.partialorder %v1431_v63, 0.0  ;;  %v1528_v6 = vmul.f32 %v6555_v0, %v1431_v63  ;;  %v1435_v14 = vadd.f32 %v1434_v4, %v6548_v59  ;;  %1815 = vmatmul.mubr.bf16.gmra.mrb[44].mxu0 %v1613_v40 }
 0x2ae   : > { %vm1485_vm2 = vcmp.gt.f32.partialorder %v1433_v3, 0.0  ;;  %v1529_v18 = vmul.f32 %v6551_v61, %v1433_v3  ;;  %v1559_v19 = vsel %vm1483_vm0, %v1429_v42, %v1527_v2 }
 0x2af   : > { %vm1486_vm3 = vcmp.gt.f32.partialorder %v1435_v14, 0.0  ;;  %v1530_v22 = vmul.f32 %v6555_v0, %v1435_v14  ;;  %v1560_v23 = vsel %vm1484_vm1, %v1431_v63, %v1528_v6  ;;  %1591 = vst [vmem:[%s6566_s16 + $0x80] sm:$0xff] %v1559_v19  ;;  %vm1910_vm1 = vcmask 31744  }
 0x2b0   : > { %1592 = vst [vmem:[%s6566_s16 + $0x88] sm:$0xff] %v1560_v23  ;;  %v1561_v24 = vsel %vm1485_vm2, %v1433_v3, %v1529_v18 }
 0x2b1   : > { %v1438_v25 = vpop.f32.mrb[20].mxu1  ;;  %v1562_v27 = vsel %vm1486_vm3, %v1435_v14, %v1530_v22  ;;  %1593 = vst [vmem:[%s6566_s16 + $0x90] sm:$0xff] %v1561_v24  ;;  %v1615_v30 = vpack.c.bf16 %v1561_v24, %v1559_v19 }
 0x2b2   : > { %v1439_v31 = vadd.f32 %v1438_v25, %v6545_v13  ;;  %v1440_v34 = vpop.f32.mrb[21].mxu1  ;;  %1594 = vst [vmem:[%s6566_s16 + $0x98] sm:$0xff] %v1562_v27  ;;  %v1616_v39 = vpack.c.bf16 %v1562_v27, %v1560_v23 }
 0x2b3   : > { %v1441_v41 = vadd.f32 %v1440_v34, %v6548_v59  ;;  %v1442_v38 = vpop.f32.mrb[22].mxu1 }
 0x2b4   : > { %vm1487_vm4 = vcmp.gt.f32.partialorder %v1439_v31, 0.0  ;;  %v1531_v49 = vmul.f32 %v6551_v61, %v1439_v31  ;;  %v1443_v40 = vadd.f32 %v1442_v38, %v6545_v13  ;;  %v1444_v42 = vpop.f32.mrb[23].mxu1  ;;  %1822 = vmatprep.mubr.bf16.mxu0 %v1616_v39 }
 0x2b5   : > { %vm1488_vm5 = vcmp.gt.f32.partialorder %v1441_v41, 0.0  ;;  %v1532_v52 = vmul.f32 %v6555_v0, %v1441_v41  ;;  %v1445_v58 = vadd.f32 %v1444_v42, %v6548_v59  ;;  %1823 = vmatmul.mubr.bf16.gmra.mrb[48].mxu0 %v1615_v30 }
 0x2b6   : > { %vm1489_vm6 = vcmp.gt.f32.partialorder %v1443_v40, 0.0  ;;  %v1533_v63 = vmul.f32 %v6551_v61, %v1443_v40  ;;  %v1563_v1 = vsel %vm1487_vm4, %v1439_v31, %v1531_v49 }
 0x2b7   : > { %vm1490_vm7 = vcmp.gt.f32.partialorder %v1445_v58, 0.0  ;;  %v1534_v2 = vmul.f32 %v6555_v0, %v1445_v58  ;;  %v1564_v3 = vsel %vm1488_vm5, %v1441_v41, %v1532_v52  ;;  %1595 = vst [vmem:[%s6566_s16 + $0xa0] sm:$0xff] %v1563_v1 }
 0x2b8   : > { %1596 = vst [vmem:[%s6566_s16 + $0xa8] sm:$0xff] %v1564_v3  ;;  %v1565_v4 = vsel %vm1489_vm6, %v1443_v40, %v1533_v63 }
 0x2b9   : > { %v1448_v6 = vpop.f32.mrb[24].mxu1  ;;  %v1566_v14 = vsel %vm1490_vm7, %v1445_v58, %v1534_v2  ;;  %1597 = vst [vmem:[%s6566_s16 + $0xb0] sm:$0xff] %v1565_v4  ;;  %v1617_v18 = vpack.c.bf16 %v1565_v4, %v1563_v1 }
 0x2ba   : > { %v1449_v19 = vadd.f32 %v1448_v6, %v6545_v13  ;;  %v1450_v22 = vpop.f32.mrb[25].mxu1  ;;  %1598 = vst [vmem:[%s6566_s16 + $0xb8] sm:$0xff] %v1566_v14  ;;  %v1618_v23 = vpack.c.bf16 %v1566_v14, %v1564_v3 }
 0x2bb   : > { %v1451_v24 = vadd.f32 %v1450_v22, %v6548_v59  ;;  %v1452_v25 = vpop.f32.mrb[26].mxu1 }
 0x2bc   : > { %vm1491_vm8 = vcmp.gt.f32.partialorder %v1449_v19, 0.0  ;;  %v1535_v27 = vmul.f32 %v6551_v61, %v1449_v19  ;;  %v1453_v30 = vadd.f32 %v1452_v25, %v6545_v13  ;;  %v1454_v31 = vpop.f32.mrb[27].mxu1  ;;  %1830 = vmatprep.mubr.bf16.mxu0 %v1618_v23 }
 0x2bd   : > { %vm1492_vm9 = vcmp.gt.f32.partialorder %v1451_v24, 0.0  ;;  %v1536_v34 = vmul.f32 %v6555_v0, %v1451_v24  ;;  %v1455_v39 = vadd.f32 %v1454_v31, %v6548_v59  ;;  %1831 = vmatmul.mubr.bf16.gmra.mrb[52].mxu0 %v1617_v18 }
 0x2be   : > { %vm1493_vm10 = vcmp.gt.f32.partialorder %v1453_v30, 0.0  ;;  %v1537_v41 = vmul.f32 %v6551_v61, %v1453_v30  ;;  %v1567_v38 = vsel %vm1491_vm8, %v1449_v19, %v1535_v27 }
 0x2bf   : > { %vm1494_vm11 = vcmp.gt.f32.partialorder %v1455_v39, 0.0  ;;  %v1538_v49 = vmul.f32 %v6555_v0, %v1455_v39  ;;  %v1568_v40 = vsel %vm1492_vm9, %v1451_v24, %v1536_v34  ;;  %1599 = vst [vmem:[%s6566_s16 + $0xc0] sm:$0xff] %v1567_v38 }
 0x2c0   : > { %1600 = vst [vmem:[%s6566_s16 + $0xc8] sm:$0xff] %v1568_v40  ;;  %v1569_v42 = vsel %vm1493_vm10, %v1453_v30, %v1537_v41  ;;  %v2107_v41 = vld [vmem:[#allocation8 + $0x20] sm:$0xff] }
 0x2c1   : > { %v1458_v52 = vpop.f32.mrb[28].mxu1  ;;  %v1570_v58 = vsel %vm1494_vm11, %v1455_v39, %v1538_v49  ;;  %1601 = vst [vmem:[%s6566_s16 + $0xd0] sm:$0xff] %v1569_v42  ;;  %v1619_v63 = vpack.c.bf16 %v1569_v42, %v1567_v38  ;;  %v2111_v38 = vld [vmem:[#allocation8 + $0x40] sm:$0xff] }
 0x2c2   : > { %v1459_v1 = vadd.f32 %v1458_v52, %v6545_v13  ;;  %v1460_v2 = vpop.f32.mrb[29].mxu1  ;;  %1602 = vst [vmem:[%s6566_s16 + $0xd8] sm:$0xff] %v1570_v58  ;;  %v1620_v3 = vpack.c.bf16 %v1570_v58, %v1568_v40  ;;  %v2115_v40 = vld [vmem:[#allocation8 + $0x60] sm:$0xff] }
 0x2c3   : > { %v1461_v4 = vadd.f32 %v1460_v2, %v6548_v59  ;;  %v1462_v6 = vpop.f32.mrb[30].mxu1  ;;  %v5131_v42 = vcombine.high %v2111_v38, %v2115_v40  ;;  %v2119_v52 = vld [vmem:[#allocation8 + $0x80] sm:$0xff] }
 0x2c4   : > { %vm1495_vm12 = vcmp.gt.f32.partialorder %v1459_v1, 0.0  ;;  %v1539_v14 = vmul.f32 %v6551_v61, %v1459_v1  ;;  %v1463_v18 = vadd.f32 %v1462_v6, %v6545_v13  ;;  %v1464_v19 = vpop.f32.mrb[31].mxu1  ;;  %1838 = vmatprep.mubr.bf16.mxu0 %v1620_v3  ;;  %v2123_v58 = vld [vmem:[#allocation8 + $0xa0] sm:$0xff] }
 0x2c5   : > { %vm1496_vm13 = vcmp.gt.f32.partialorder %v1461_v4, 0.0  ;;  %v1540_v22 = vmul.f32 %v6555_v0, %v1461_v4  ;;  %v1465_v23 = vadd.f32 %v1464_v19, %v6548_v59  ;;  %1839 = vmatmul.mubr.bf16.gmra.mrb[56].mxu0 %v1619_v63  ;;  %v6658_v59 = vld [vmem:[%s6270_s20 + $0x4] ss:$8 sps:$4 sm:$0xff]   ;;  %v5130_v63 = vcombine.low %v2111_v38, %v2115_v40 }
 0x2c6   : > { %vm1497_vm14 = vcmp.gt.f32.partialorder %v1463_v18, 0.0  ;;  %v1541_v24 = vmul.f32 %v6551_v61, %v1463_v18  ;;  %v1571_v25 = vsel %vm1495_vm12, %v1459_v1, %v1539_v14  ;;  %v2103_v61 = vld [vmem:[#allocation8] sm:$0xff]  ;;  %v5139_v1 = vcombine.high %v2119_v52, %v2123_v58 }
 0x2c7   : > { %vm1498_vm15 = vcmp.gt.f32.partialorder %v1465_v23, 0.0  ;;  %v1542_v27 = vmul.f32 %v6555_v0, %v1465_v23  ;;  %v1572_v30 = vsel %vm1496_vm13, %v1461_v4, %v1540_v22  ;;  %1603 = vst [vmem:[%s6566_s16 + $0xe0] sm:$0xff] %v1571_v25  ;;  %v5122_v49 = vcombine.low %v2103_v61, %v2107_v41  ;;  %v2127_v2 = vld [vmem:[#allocation8 + $0xc0] sm:$0xff] }
 0x2c8   : > { %1604 = vst [vmem:[%s6566_s16 + $0xe8] sm:$0xff] %v1572_v30  ;;  %v1573_v13 = vsel %vm1497_vm14, %v1463_v18, %v1541_v24  ;;  %v5123_v0 = vcombine.high %v2103_v61, %v2107_v41  ;;  %v2131_v3 = vld [vmem:[#allocation8 + $0xe0] sm:$0xff]  ;;  %v5138_v4 = vcombine.low %v2119_v52, %v2123_v58 }
 0x2c9   : > { %v1574_v31 = vsel %vm1498_vm15, %v1465_v23, %v1542_v27  ;;  %1605 = vst [vmem:[%s6566_s16 + $0xf0] sm:$0xff] %v1573_v13  ;;  %v1621_v34 = vpack.c.bf16 %v1573_v13, %v1571_v25  ;;  %v5147_v6 = vcombine.high %v2127_v2, %v2131_v3  ;;  %v2135_v14 = vld [vmem:[#allocation8 + $0x100] sm:$0xff]  ;;  %v5146_v19 = vcombine.low %v2127_v2, %v2131_v3 }
 0x2ca   : > { %1606 = vst [vmem:[%s6566_s16 + $0xf8] sm:$0xff] %v1574_v31  ;;  %v1622_v39 = vpack.c.bf16 %v1574_v31, %v1572_v30  ;;  %2913 = vmatprep.subr.bf16.mxu1 %v5123_v0  ;;  %v2139_v18 = vld [vmem:[#allocation8 + $0x120] sm:$0xff]  ;;  %s4801_s16 = scalar_lea.sflag [#allocation4], %s6266_s14 }
 0x2cb   : > { %2914 = vmatpush1.bf16.msra.mxu1 %v5122_v49  ;;  %v5155_v22 = vcombine.high %v2135_v14, %v2139_v18  ;;  %v2143_v23 = vld [vmem:[#allocation8 + $0x140] sm:$0xff]  ;;  %v5154_v25 = vcombine.low %v2135_v14, %v2139_v18 }
 0x2cc   : > { %1846 = vmatprep.mubr.bf16.mxu0 %v1622_v39  ;;  %2915 = vmatprep.subr.bf16.mxu1 %v5131_v42  ;;  %v2147_v24 = vld [vmem:[#allocation8 + $0x160] sm:$0xff] }
 0x2cd   : > { %1847 = vmatmul.mubr.bf16.gmra.mrb[60].mxu0 %v1621_v34  ;;  %v5163_v27 = vcombine.high %v2143_v23, %v2147_v24  ;;  %v2151_v30 = vld [vmem:[#allocation8 + $0x180] sm:$0xff]  ;;  %v5162_v31 = vcombine.low %v2143_v23, %v2147_v24 }
 0x2ce   : > { %3058 = vmatprep.mubr.bf16.mxu0 %v6658_v59  ;;  %v2155_v13 = vld [vmem:[#allocation8 + $0x1a0] sm:$0xff] }
 0x2cf   : > { %2916 = vmatpush1.bf16.msra.mxu1 %v5130_v63  ;;  %v5171_v34 = vcombine.high %v2151_v30, %v2155_v13  ;;  %v2159_v39 = vld [vmem:[#allocation8 + $0x1c0] sm:$0xff]  ;;  %v5170_v41 = vcombine.low %v2151_v30, %v2155_v13 }
 0x2d0   : > { %2917 = vmatprep.subr.bf16.mxu1 %v5139_v1  ;;  %v2163_v61 = vld [vmem:[#allocation8 + $0x1e0] sm:$0xff] }
 0x2d1   : > { %v5179_v38 = vcombine.high %v2159_v39, %v2163_v61  ;;  %v2167_v49 = vld [vmem:[#allocation8 + $0x200] sm:$0xff]  ;;  %v5178_v40 = vcombine.low %v2159_v39, %v2163_v61 }
 0x2d2   : > { %v2171_v0 = vld [vmem:[#allocation8 + $0x220] sm:$0xff] }
 0x2d3   : > { %2918 = vmatpush1.bf16.msra.mxu1 %v5138_v4  ;;  %v5187_v42 = vcombine.high %v2167_v49, %v2171_v0  ;;  %v2175_v52 = vld [vmem:[#allocation8 + $0x240] sm:$0xff]  ;;  %v5186_v63 = vcombine.low %v2167_v49, %v2171_v0 }
 0x2d4   : > { %2919 = vmatprep.subr.bf16.mxu1 %v5147_v6  ;;  %v2179_v58 = vld [vmem:[#allocation8 + $0x260] sm:$0xff] }
 0x2d5   : > { %v5195_v1 = vcombine.high %v2175_v52, %v2179_v58  ;;  %v2183_v2 = vld [vmem:[#allocation8 + $0x280] sm:$0xff]  ;;  %v5194_v4 = vcombine.low %v2175_v52, %v2179_v58 }
 0x2d6   : > { %v2187_v3 = vld [vmem:[#allocation8 + $0x2a0] sm:$0xff] }
 0x2d7   : > { %2920 = vmatpush1.bf16.msra.mxu1 %v5146_v19  ;;  %v5203_v6 = vcombine.high %v2183_v2, %v2187_v3  ;;  %v2191_v14 = vld [vmem:[#allocation8 + $0x2c0] sm:$0xff]  ;;  %v5202_v19 = vcombine.low %v2183_v2, %v2187_v3 }
 0x2d8   : > { %2921 = vmatprep.subr.bf16.mxu1 %v5155_v22  ;;  %v2195_v18 = vld [vmem:[#allocation8 + $0x2e0] sm:$0xff] }
 0x2d9   : > { %v5211_v22 = vcombine.high %v2191_v14, %v2195_v18  ;;  %v2199_v23 = vld [vmem:[#allocation8 + $0x300] sm:$0xff] }
 0x2da   : > { %v2203_v24 = vld [vmem:[#allocation8 + $0x320] sm:$0xff] }
 0x2db   : > { %2922 = vmatpush1.bf16.msra.mxu1 %v5154_v25  ;;  %v5210_v25 = vcombine.low %v2191_v14, %v2195_v18  ;;  %v2207_v30 = vld [vmem:[#allocation8 + $0x340] sm:$0xff] }
 0x2dc   : > { %2923 = vmatprep.subr.bf16.mxu1 %v5163_v27  ;;  %v5219_v27 = vcombine.high %v2199_v23, %v2203_v24  ;;  %v2211_v13 = vld [vmem:[#allocation8 + $0x360] sm:$0xff] }
 0x2dd   : > { %v2215_v39 = vld [vmem:[#allocation8 + $0x380] sm:$0xff] }
 0x2de   : > { %v2219_v61 = vld [vmem:[#allocation8 + $0x3a0] sm:$0xff] }
 0x2df   : > { %2924 = vmatpush1.bf16.msra.mxu1 %v5162_v31  ;;  %v5218_v31 = vcombine.low %v2199_v23, %v2203_v24  ;;  %v5234_v49 = vcombine.low %v2215_v39, %v2219_v61 }
 0x2e0   : > { %2925 = vmatprep.subr.bf16.mxu1 %v5171_v34  ;;  %v5227_v34 = vcombine.high %v2207_v30, %v2211_v13 }
 0x2e3   : > { %2926 = vmatpush1.bf16.msra.mxu1 %v5170_v41  ;;  %v5226_v41 = vcombine.low %v2207_v30, %v2211_v13 }
 0x2e4   : > { %2927 = vmatprep.subr.bf16.mxu1 %v5179_v38  ;;  %v5235_v38 = vcombine.high %v2215_v39, %v2219_v61 }
 0x2e7   : > { %2928 = vmatpush1.bf16.msra.mxu1 %v5178_v40  ;;  %v6664_v40 = vld [vmem:[%s9154_s8] ss:$0 sm:$0xff] }
 0x2e8   : > { %2929 = vmatprep.subr.bf16.mxu1 %v5187_v42 }
 0x2eb   : > { %2930 = vmatpush1.bf16.msra.mxu1 %v5186_v63 }
 0x2ec   : > { %2931 = vmatprep.subr.bf16.mxu1 %v5195_v1  ;;  %v6669_v1 = vld [vmem:[%s9321_s9] ss:$0 sm:$0xff]  ;;  %s5023_s9 = sshll.u32 %s9786_s15, 3  ;;  %s5862_s15 = sshll.u32 %s5975_s0, 4  ;;  %s5863_s15 = int_to_ptr.vmem [resolvable:$false] %s5862_s15 }
 0x2ed   : > { %s7082_s12 = scalar_lea.vmem %s9336_s21, %s5023_s9  ;;  %s9417_s9 = sld [smem:[#allocation164_spill]] }
 0x2ee   : > { %p5865_p1 = scmp.lt.s32.totalorder %s8120_s27, %s5863_s15 }
 0x2ef   : > { %2932 = vmatpush1.bf16.msra.mxu1 %v5194_v4 }
 0x2f0   : > { %2933 = vmatprep.subr.bf16.mxu1 %v5203_v6 }
 0x2f3   : > { %2934 = vmatpush1.bf16.msra.mxu1 %v5202_v19 }
 0x2f4   : > { %2935 = vmatprep.subr.bf16.mxu1 %v5211_v22 }
 0x2f7   : > { %2936 = vmatpush1.bf16.msra.mxu1 %v5210_v25 }
 0x2f8   : > { %2937 = vmatprep.subr.bf16.mxu1 %v5219_v27 }
 0x2fb   : > { %2938 = vmatpush1.bf16.msra.mxu1 %v5218_v31 }
 0x2fc   : > { %2939 = vmatprep.subr.bf16.mxu1 %v5227_v34 }
 0x2ff   : > { %2940 = vmatpush1.bf16.msra.mxu1 %v5226_v41 }
 0x300   : > { %2941 = vmatprep.subr.bf16.mxu1 %v5235_v38 }
 0x303   : > { %2942 = vmatpush1.bf16.msra.mxu1 %v5234_v49 }
 0x368   : > { %v5354_v0 = vpop.f32.mrb[32].mxu0 }
 0x369   : > { %v5355_v42 = vpop.f32.mrb[33].mxu0 }
 0x36a   : > { %v5356_v52 = vadd.f32 %v5355_v42, %v5354_v0  ;;  %v5357_v58 = vpop.f32.mrb[34].mxu0 }
 0x36b   : > { %v5358_v63 = vpop.f32.mrb[35].mxu0 }
 0x36c   : > { %v1793_v2 = vadd.f32 %v5356_v52, %v6664_v40  ;;  %v5359_v3 = vadd.f32 %v5358_v63, %v5357_v58 }
 0x36e   : > { %v1796_v4 = vadd.f32 %v5359_v3, %v6664_v40  ;;  %vm1855_vm0 = vcmp.gt.f32.partialorder %v1793_v2, 0.0  ;;  %v1878_v6 = vmul.f32 %v6669_v1, %v1793_v2 }
 0x370   : > { %v5360_v14 = vpop.f32.mrb[36].mxu0  ;;  %v6674_v18 = vsel %vm1855_vm0, %v1793_v2, %v1878_v6  ;;  %vm1856_vm2 = vcmp.gt.f32.partialorder %v1796_v4, 0.0  ;;  %v1879_v19 = vmul.f32 %v6669_v1, %v1796_v4 }
 0x371   : > { %v5361_v22 = vpop.f32.mrb[37].mxu0  ;;  %v1911_v23 = vsel %vm1910_vm1, %v6674_v18, -inf }
 0x372   : > { %v5362_v24 = vadd.f32 %v5361_v22, %v5360_v14  ;;  %v5363_v25 = vpop.f32.mrb[38].mxu0  ;;  %1912 = vmax.xlane.f32.xlu0 %v1911_v23  ;;  %v6679_v27 = vsel %vm1856_vm2, %v1796_v4, %v1879_v19  ;;  %v2223_v22 = vld [vmem:[#allocation8 + $0x3c0] sm:$0xff]  ;;  %vm3851_vm2 = vcmask 1043456  }
 0x373   : > { %v5364_v30 = vpop.f32.mrb[39].mxu0  ;;  %v1914_v34 = vsel %vm1910_vm1, %v6679_v27, -inf  ;;  %v2227_v23 = vld [vmem:[#allocation8 + $0x3e0] sm:$0xff] }
 0x374   : > { %v1801_v13 = vadd.f32 %v5362_v24, %v6664_v40  ;;  %v5365_v31 = vadd.f32 %v5364_v30, %v5363_v25 }
 0x376   : > { %v1804_v39 = vadd.f32 %v5365_v31, %v6664_v40  ;;  %1915 = vmax.xlane.f32.xlu0 %v1914_v34  ;;  %vm1857_vm3 = vcmp.gt.f32.partialorder %v1801_v13, 0.0  ;;  %v1880_v61 = vmul.f32 %v6669_v1, %v1801_v13 }
 0x378   : > { %v5366_v41 = vpop.f32.mrb[40].mxu0  ;;  %v6686_v38 = vsel %vm1857_vm3, %v1801_v13, %v1880_v61  ;;  %vm1858_vm4 = vcmp.gt.f32.partialorder %v1804_v39, 0.0  ;;  %v1881_v49 = vmul.f32 %v6669_v1, %v1804_v39  ;;  %v5243_v13 = vcombine.high %v2223_v22, %v2227_v23 }
 0x379   : > { %v5367_v0 = vpop.f32.mrb[41].mxu0  ;;  %v1917_v42 = vsel %vm1910_vm1, %v6686_v38, -inf }
 0x37a   : > { %v5368_v52 = vadd.f32 %v5367_v0, %v5366_v41  ;;  %v5369_v58 = vpop.f32.mrb[42].mxu0  ;;  %1918 = vmax.xlane.f32.xlu1 %v1917_v42  ;;  %v6691_v63 = vsel %vm1858_vm4, %v1804_v39, %v1881_v49  ;;  %v5242_v39 = vcombine.low %v2223_v22, %v2227_v23  ;;  %2943 = vmatprep.subr.bf16.mxu1 %v5243_v13  ;;  %v2108_v22 = vld [vmem:[#allocation8 + $0x28] sm:$0xff] }
 0x37b   : > { %v5370_v2 = vpop.f32.mrb[43].mxu0  ;;  %v1920_v6 = vsel %vm1910_vm1, %v6691_v63, -inf }
 0x37c   : > { %v1809_v3 = vadd.f32 %v5368_v52, %v6664_v40  ;;  %v5371_v4 = vadd.f32 %v5370_v2, %v5369_v58  ;;  %2944 = vmatpush1.bf16.msra.mxu1 %v5242_v39  ;;  %v2105_v52 = vld [vmem:[#allocation8 + $0x10] sm:$0xff] }
 0x37d   : > { %v2109_v58 = vld [vmem:[#allocation8 + $0x30] sm:$0xff] }
 0x37e   : > { %v1812_v14 = vadd.f32 %v5371_v4, %v6664_v40  ;;  %1921 = vmax.xlane.f32.xlu1 %v1920_v6  ;;  %vm1859_vm5 = vcmp.gt.f32.partialorder %v1809_v3, 0.0  ;;  %v1882_v19 = vmul.f32 %v6669_v1, %v1809_v3  ;;  %v5127_v4 = vcombine.high %v2105_v52, %v2109_v58  ;;  %v6715_v39 = vld [vmem:[%s6270_s20 + $0x14] ss:$8 sps:$4 sm:$0xff]  }
 0x37f   : > { %v5126_v6 = vcombine.low %v2105_v52, %v2109_v58 }
 0x380   : > { %v5372_v24 = vpop.f32.mrb[44].mxu0  ;;  %v6698_v25 = vsel %vm1859_vm5, %v1809_v3, %v1882_v19  ;;  %vm1860_vm6 = vcmp.gt.f32.partialorder %v1812_v14, 0.0  ;;  %v1883_v30 = vmul.f32 %v6669_v1, %v1812_v14  ;;  %v2104_v19 = vld [vmem:[#allocation8 + $0x8] sm:$0xff]  ;;  %3139 = vmatprep.subr.bf16.mxu1 %v5127_v4 }
 0x381   : > { %v5373_v31 = vpop.f32.mrb[45].mxu0  ;;  %v1923_v34 = vsel %vm1910_vm1, %v6698_v25, -inf  ;;  %v5124_v13 = vcombine.low %v2104_v19, %v2108_v22  ;;  %v2112_v4 = vld [vmem:[#allocation8 + $0x48] sm:$0xff] }
 0x382   : > { %v5374_v61 = vadd.f32 %v5373_v31, %v5372_v24  ;;  %v5375_v41 = vpop.f32.mrb[46].mxu0  ;;  %1924 = vmax.xlane.f32.xlu0 %v1923_v34  ;;  %v6703_v49 = vsel %vm1860_vm6, %v1812_v14, %v1883_v30  ;;  %v6711_v24 = vld [vmem:[%s6270_s20] ss:$8 sps:$4 sm:$0xff]   ;;  %v5125_v30 = vcombine.high %v2104_v19, %v2108_v22  ;;  %v2113_v31 = vld [vmem:[#allocation8 + $0x50] sm:$0xff] }
 0x383   : > { %v5376_v0 = vpop.f32.mrb[47].mxu0  ;;  %v1926_v42 = vsel %vm1910_vm1, %v6703_v49, -inf  ;;  %2946 = vmatmul.mubr.bf16.vlgmr.msra.gmra.mrb[32].mxu1 %v6711_v24  ;;  %v2117_v34 = vld [vmem:[#allocation8 + $0x70] sm:$0xff] }
 0x384   : > { %v1817_v2 = vadd.f32 %v5374_v61, %v6664_v40  ;;  %v5377_v3 = vadd.f32 %v5376_v0, %v5375_v41  ;;  %1927 = vmax.xlane.f32.xlu1 %v1926_v42  ;;  %3140 = vmatpush1.bf16.msra.mxu1 %v5126_v6  ;;  %v5135_v42 = vcombine.high %v2113_v31, %v2117_v34  ;;  %v2116_v6 = vld [vmem:[#allocation8 + $0x68] sm:$0xff] }
 0x385   : > { %2955 = vmatprep.mubr.bf16.mxu1 %v6715_v39  ;;  %3026 = vmatprep.subr.bf16.mxu0 %v5125_v30  ;;  %v5132_v44 = vcombine.low %v2112_v4, %v2116_v6 }
 0x386   : > { %v1820_v14 = vadd.f32 %v5377_v3, %v6664_v40  ;;  %vm1861_vm7 = vcmp.gt.f32.partialorder %v1817_v2, 0.0  ;;  %v1884_v23 = vmul.f32 %v6669_v1, %v1817_v2  ;;  %3027 = vmatpush1.bf16.msra.mxu0 %v5124_v13  ;;  %v5134_v3 = vcombine.low %v2113_v31, %v2117_v34  ;;  %3141 = vmatprep.subr.bf16.mxu1 %v5135_v42 }
 0x387   : > { %v5143_v34 = vcombine.high %v2121_v36, %v2125_v48 }
 0x388   : > { %v5378_v61 = vpop.f32.mrb[48].mxu0  ;;  %v6718_v41 = vsel %vm1861_vm7, %v1817_v2, %v1884_v23  ;;  %vm1862_vm8 = vcmp.gt.f32.partialorder %v1820_v14, 0.0  ;;  %v1885_v0 = vmul.f32 %v6669_v1, %v1820_v14  ;;  %v5133_v2 = vcombine.high %v2112_v4, %v2116_v6  ;;  %3142 = vmatpush1.bf16.msra.mxu1 %v5134_v3  ;;  %v2129_v6 = vld [vmem:[#allocation8 + $0xd0] sm:$0xff] }
 0x389   : > { %v5379_v52 = vpop.f32.mrb[49].mxu0  ;;  %v1929_v58 = vsel %vm1910_vm1, %v6718_v41, -inf  ;;  %3143 = vmatprep.subr.bf16.mxu1 %v5143_v34  ;;  %v2128_v34 = vld [vmem:[#allocation8 + $0xc8] sm:$0xff] }
 0x38a   : > { %v5380_v19 = vadd.f32 %v5379_v52, %v5378_v61  ;;  %v5381_v22 = vpop.f32.mrb[50].mxu0  ;;  %1930 = vmax.xlane.f32.xlu0 %v1929_v58  ;;  %v6723_v47 = vsel %vm1862_vm8, %v1820_v14, %v1885_v0  ;;  %3028 = vmatprep.subr.bf16.mxu0 %v5133_v2  ;;  %v5142_v14 = vcombine.low %v2121_v36, %v2125_v48  ;;  %v2120_v61 = vld [vmem:[#allocation8 + $0x88] sm:$0xff]  ;;  %v6731_v58 = vld [vmem:[%s6270_s20 + $0x10] ss:$8 sps:$4 sm:$0xff]  }
 0x38b   : > { %v5382_v23 = vpop.f32.mrb[51].mxu0  ;;  %v1932_v30 = vsel %vm1910_vm1, %v6723_v47, -inf  ;;  %3029 = vmatpush1.bf16.msra.mxu0 %v5132_v44  ;;  %v2124_v0 = vld [vmem:[#allocation8 + $0xa8] sm:$0xff]  ;;  %2956 = vmatmul.mubr.bf16.gmra.mrb[36].mxu1 %v6731_v58 }
 0x38c   : > { %v1825_v13 = vadd.f32 %v5380_v19, %v6664_v40  ;;  %v5383_v31 = vadd.f32 %v5382_v23, %v5381_v22  ;;  %1933 = vmax.xlane.f32.xlu1 %v1932_v30  ;;  %v5141_v3 = vcombine.high %v2120_v61, %v2124_v0  ;;  %3144 = vmatpush1.bf16.msra.mxu1 %v5142_v14  ;;  %v2133_v19 = vld [vmem:[#allocation8 + $0xf0] sm:$0xff]  ;;  %v6735_v22 = vld [vmem:[%s6270_s20 + $0x24] ss:$8 sps:$4 sm:$0xff]  }
 0x38d   : > { %v5140_v4 = vcombine.low %v2120_v61, %v2124_v0  ;;  %2965 = vmatprep.mubr.bf16.mxu1 %v6735_v22  ;;  %v5151_v2 = vcombine.high %v2129_v6, %v2133_v19  ;;  %v2132_v14 = vld [vmem:[#allocation8 + $0xe8] sm:$0xff] }
 0x38e   : > { %v1828_v42 = vadd.f32 %v5383_v31, %v6664_v40  ;;  %vm1863_vm9 = vcmp.gt.f32.partialorder %v1825_v13, 0.0  ;;  %v1886_v52 = vmul.f32 %v6669_v1, %v1825_v13  ;;  %3030 = vmatprep.subr.bf16.mxu0 %v5141_v3  ;;  %v5150_v31 = vcombine.low %v2129_v6, %v2133_v19 }
 0x38f   : > { %3031 = vmatpush1.bf16.msra.mxu0 %v5140_v4  ;;  %3145 = vmatprep.subr.bf16.mxu1 %v5151_v2  ;;  %v5148_v5 = vcombine.low %v2128_v34, %v2132_v14  ;;  %v5159_v19 = vcombine.high %v2137_v8, %v2141_v20 }
 0x390   : > { %v5384_v44 = vpop.f32.mrb[52].mxu0  ;;  %v6738_v36 = vsel %vm1863_vm9, %v1825_v13, %v1886_v52  ;;  %vm1864_vm10 = vcmp.gt.f32.partialorder %v1828_v42, 0.0  ;;  %v1887_v48 = vmul.f32 %v6669_v1, %v1828_v42  ;;  %v5149_v13 = vcombine.high %v2128_v34, %v2132_v14  ;;  %3146 = vmatpush1.bf16.msra.mxu1 %v5150_v31  ;;  %v2145_v14 = vld [vmem:[#allocation8 + $0x150] sm:$0xff] }
 0x391   : > { %v5385_v23 = vpop.f32.mrb[53].mxu0  ;;  %v1935_v30 = vsel %vm1910_vm1, %v6738_v36, -inf  ;;  %3147 = vmatprep.subr.bf16.mxu1 %v5159_v19  ;;  %v2144_v19 = vld [vmem:[#allocation8 + $0x148] sm:$0xff] }
 0x392   : > { %v5386_v61 = vadd.f32 %v5385_v23, %v5384_v44  ;;  %v5387_v0 = vpop.f32.mrb[54].mxu0  ;;  %1936 = vmax.xlane.f32.xlu0 %v1935_v30  ;;  %v6743_v11 = vsel %vm1864_vm10, %v1828_v42, %v1887_v48  ;;  %3032 = vmatprep.subr.bf16.mxu0 %v5149_v13  ;;  %v5158_v42 = vcombine.low %v2137_v8, %v2141_v20  ;;  %v2136_v44 = vld [vmem:[#allocation8 + $0x108] sm:$0xff] }
 0x393   : > { %v5388_v52 = vpop.f32.mrb[55].mxu0  ;;  %v1938_v3 = vsel %vm1910_vm1, %v6743_v11, -inf  ;;  %3033 = vmatpush1.bf16.msra.mxu0 %v5148_v5  ;;  %v2140_v48 = vld [vmem:[#allocation8 + $0x128] sm:$0xff] }
 0x394   : > { %v1833_v4 = vadd.f32 %v5386_v61, %v6664_v40  ;;  %v5389_v6 = vadd.f32 %v5388_v52, %v5387_v0  ;;  %1939 = vmax.xlane.f32.xlu1 %v1938_v3  ;;  %v6751_v30 = vld [vmem:[%s6270_s20 + $0x20] ss:$8 sps:$4 sm:$0xff]   ;;  %v5157_v31 = vcombine.high %v2136_v44, %v2140_v48  ;;  %3148 = vmatpush1.bf16.msra.mxu1 %v5158_v42  ;;  %v2149_v61 = vld [vmem:[#allocation8 + $0x170] sm:$0xff] }
 0x395   : > { %2966 = vmatmul.mubr.bf16.gmra.mrb[40].mxu1 %v6751_v30  ;;  %v5156_v34 = vcombine.low %v2136_v44, %v2140_v48  ;;  %v6755_v0 = vld [vmem:[%s6270_s20 + $0x34] ss:$8 sps:$4 sm:$0xff]   ;;  %v5167_v13 = vcombine.high %v2145_v14, %v2149_v61  ;;  %v2148_v42 = vld [vmem:[#allocation8 + $0x168] sm:$0xff] }
 0x396   : > { %v1836_v2 = vadd.f32 %v5389_v6, %v6664_v40  ;;  %vm1865_vm11 = vcmp.gt.f32.partialorder %v1833_v4, 0.0  ;;  %v1888_v23 = vmul.f32 %v6669_v1, %v1833_v4  ;;  %2975 = vmatprep.mubr.bf16.mxu1 %v6755_v0  ;;  %3034 = vmatprep.subr.bf16.mxu0 %v5157_v31  ;;  %v5166_v6 = vcombine.low %v2145_v14, %v2149_v61 }
 0x397   : > { %3035 = vmatpush1.bf16.msra.mxu0 %v5156_v34  ;;  %3149 = vmatprep.subr.bf16.mxu1 %v5167_v13  ;;  %v5164_v43 = vcombine.low %v2144_v19, %v2148_v42  ;;  %v5175_v61 = vcombine.high %v2153_v45, %v2157_v50 }
 0x398   : > { %v5390_v5 = vpop.f32.mrb[56].mxu0  ;;  %v6758_v8 = vsel %vm1865_vm11, %v1833_v4, %v1888_v23  ;;  %vm1866_vm12 = vcmp.gt.f32.partialorder %v1836_v2, 0.0  ;;  %v1889_v20 = vmul.f32 %v6669_v1, %v1836_v2  ;;  %v5165_v4 = vcombine.high %v2144_v19, %v2148_v42  ;;  %3150 = vmatpush1.bf16.msra.mxu1 %v5166_v6  ;;  %v2161_v42 = vld [vmem:[#allocation8 + $0x1d0] sm:$0xff] }
 0x399   : > { %v5391_v52 = vpop.f32.mrb[57].mxu0  ;;  %v1941_v3 = vsel %vm1910_vm1, %v6758_v8, -inf  ;;  %3151 = vmatprep.subr.bf16.mxu1 %v5175_v61  ;;  %v2160_v61 = vld [vmem:[#allocation8 + $0x1c8] sm:$0xff] }
 0x39a   : > { %v5392_v44 = vadd.f32 %v5391_v52, %v5390_v5  ;;  %v5393_v48 = vpop.f32.mrb[58].mxu0  ;;  %1942 = vmax.xlane.f32.xlu0 %v1941_v3  ;;  %v6763_v46 = vsel %vm1866_vm12, %v1836_v2, %v1889_v20  ;;  %3036 = vmatprep.subr.bf16.mxu0 %v5165_v4  ;;  %v5174_v2 = vcombine.low %v2153_v45, %v2157_v50  ;;  %v2152_v5 = vld [vmem:[#allocation8 + $0x188] sm:$0xff]  ;;  %v6771_v3 = vld [vmem:[%s6270_s20 + $0x30] ss:$8 sps:$4 sm:$0xff]  }
 0x39b   : > { %v5394_v23 = vpop.f32.mrb[59].mxu0  ;;  %v1944_v31 = vsel %vm1910_vm1, %v6763_v46, -inf  ;;  %3037 = vmatpush1.bf16.msra.mxu0 %v5164_v43  ;;  %v2156_v20 = vld [vmem:[#allocation8 + $0x1a8] sm:$0xff] }
 0x39c   : > { %v1841_v34 = vadd.f32 %v5392_v44, %v6664_v40  ;;  %v5395_v14 = vadd.f32 %v5394_v23, %v5393_v48  ;;  %1945 = vmax.xlane.f32.xlu1 %v1944_v31  ;;  %v5173_v6 = vcombine.high %v2152_v5, %v2156_v20  ;;  %3152 = vmatpush1.bf16.msra.mxu1 %v5174_v2  ;;  %v2165_v44 = vld [vmem:[#allocation8 + $0x1f0] sm:$0xff]  ;;  %v6775_v48 = vld [vmem:[%s6270_s20 + $0x44] ss:$8 sps:$4 sm:$0xff]  }
 0x39d   : > { %2976 = vmatmul.mubr.bf16.gmra.mrb[44].mxu1 %v6771_v3  ;;  %v5172_v19 = vcombine.low %v2152_v5, %v2156_v20  ;;  %v5183_v4 = vcombine.high %v2161_v42, %v2165_v44  ;;  %v2164_v2 = vld [vmem:[#allocation8 + $0x1e8] sm:$0xff] }
 0x39e   : > { %v1844_v13 = vadd.f32 %v5395_v14, %v6664_v40  ;;  %vm1867_vm13 = vcmp.gt.f32.partialorder %v1841_v34, 0.0  ;;  %v1890_v52 = vmul.f32 %v6669_v1, %v1841_v34  ;;  %2985 = vmatprep.mubr.bf16.mxu1 %v6775_v48  ;;  %3038 = vmatprep.subr.bf16.mxu0 %v5173_v6  ;;  %v5182_v14 = vcombine.low %v2161_v42, %v2165_v44 }
 0x39f   : > { %3039 = vmatpush1.bf16.msra.mxu0 %v5172_v19  ;;  %3153 = vmatprep.subr.bf16.mxu1 %v5183_v4  ;;  %v5180_v12 = vcombine.low %v2160_v61, %v2164_v2  ;;  %v5191_v44 = vcombine.high %v2169_v16, %v2173_v21 }
 0x3a0   : > { %v5396_v43 = vpop.f32.mrb[60].mxu0  ;;  %v6778_v45 = vsel %vm1867_vm13, %v1841_v34, %v1890_v52  ;;  %vm1868_vm14 = vcmp.gt.f32.partialorder %v1844_v13, 0.0  ;;  %v1891_v50 = vmul.f32 %v6669_v1, %v1844_v13  ;;  %v5181_v34 = vcombine.high %v2160_v61, %v2164_v2  ;;  %3154 = vmatpush1.bf16.msra.mxu1 %v5182_v14  ;;  %v2177_v2 = vld [vmem:[#allocation8 + $0x250] sm:$0xff] }
 0x3a1   : > { %v5397_v23 = vpop.f32.mrb[61].mxu0  ;;  %v1947_v31 = vsel %vm1910_vm1, %v6778_v45, -inf  ;;  %3155 = vmatprep.subr.bf16.mxu1 %v5191_v44 }
 0x3a2   : > { %v5398_v5 = vadd.f32 %v5397_v23, %v5396_v43  ;;  %v5399_v20 = vpop.f32.mrb[62].mxu0  ;;  %1948 = vmax.xlane.f32.xlu0 %v1947_v31  ;;  %v6783_v17 = vsel %vm1868_vm14, %v1844_v13, %v1891_v50  ;;  %3040 = vmatprep.subr.bf16.mxu0 %v5181_v34  ;;  %v5190_v13 = vcombine.low %v2169_v16, %v2173_v21  ;;  %v2168_v43 = vld [vmem:[#allocation8 + $0x208] sm:$0xff] }
 0x3a3   : > { %v5400_v52 = vpop.f32.mrb[63].mxu0  ;;  %v1950_v6 = vsel %vm1910_vm1, %v6783_v17, -inf  ;;  %3041 = vmatpush1.bf16.msra.mxu0 %v5180_v12  ;;  %v2172_v50 = vld [vmem:[#allocation8 + $0x228] sm:$0xff] }
 0x3a4   : > { %v1849_v19 = vadd.f32 %v5398_v5, %v6664_v40  ;;  %v5401_v42 = vadd.f32 %v5400_v52, %v5399_v20  ;;  %1951 = vmax.xlane.f32.xlu1 %v1950_v6  ;;  %v6791_v31 = vld [vmem:[%s6270_s20 + $0x40] ss:$8 sps:$4 sm:$0xff]   ;;  %v5189_v14 = vcombine.high %v2168_v43, %v2172_v50  ;;  %3156 = vmatpush1.bf16.msra.mxu1 %v5190_v13  ;;  %v2181_v5 = vld [vmem:[#allocation8 + $0x270] sm:$0xff] }
 0x3a5   : > { %2986 = vmatmul.mubr.bf16.gmra.mrb[48].mxu1 %v6791_v31  ;;  %v5188_v61 = vcombine.low %v2168_v43, %v2172_v50  ;;  %v6795_v20 = vld [vmem:[%s6270_s20 + $0x54] ss:$8 sps:$4 sm:$0xff]   ;;  %v5199_v21 = vcombine.high %v2177_v2, %v2181_v5  ;;  %v5198_v34 = vcombine.low %v2177_v2, %v2181_v5  ;;  %v2176_v52 = vld [vmem:[#allocation8 + $0x248] sm:$0xff]  ;;  %v6808_v2 = vld [vmem:[%s6270_s20 + $0x50] ss:$8 sps:$4 sm:$0xff]  }
 0x3a6   : > { %v1852_v4 = vadd.f32 %v5401_v42, %v6664_v40  ;;  %vm1869_vm15 = vcmp.gt.f32.partialorder %v1849_v19, 0.0  ;;  %v1892_v23 = vmul.f32 %v6669_v1, %v1849_v19  ;;  %2995 = vmatprep.mubr.bf16.mxu1 %v6795_v20  ;;  %3042 = vmatprep.subr.bf16.mxu0 %v5189_v14  ;;  %v2180_v6 = vld [vmem:[#allocation8 + $0x268] sm:$0xff]  ;;  %v2185_v13 = vld [vmem:[#allocation8 + $0x290] sm:$0xff] }
 0x3a7   : > { %3043 = vmatpush1.bf16.msra.mxu0 %v5188_v61  ;;  %3157 = vmatprep.subr.bf16.mxu1 %v5199_v21  ;;  %v5197_v44 = vcombine.high %v2176_v52, %v2180_v6  ;;  %v2189_v43 = vld [vmem:[#allocation8 + $0x2b0] sm:$0xff]  ;;  %v2184_v14 = vld [vmem:[#allocation8 + $0x288] sm:$0xff] }
 0x3a8   : > { %v6798_v12 = vsel %vm1869_vm15, %v1849_v19, %v1892_v23  ;;  %vm1870_vm0 = vcmp.gt.f32.partialorder %v1852_v4, 0.0  ;;  %v1893_v16 = vmul.f32 %v6669_v1, %v1852_v4  ;;  %3158 = vmatpush1.bf16.msra.mxu1 %v5198_v34  ;;  %v5196_v1 = vcombine.low %v2176_v52, %v2180_v6  ;;  %v2188_v61 = vld [vmem:[#allocation8 + $0x2a8] sm:$0xff]  ;;  %v2197_v21 = vld [vmem:[#allocation8 + $0x2f0] sm:$0xff] }
 0x3a9   : > { %v1953_v40 = vsel %vm1910_vm1, %v6798_v12, -inf  ;;  %3044 = vmatprep.subr.bf16.mxu0 %v5197_v44  ;;  %v5207_v50 = vcombine.high %v2185_v13, %v2189_v43  ;;  %v5206_v23 = vcombine.low %v2185_v13, %v2189_v43  ;;  %v5204_v5 = vcombine.low %v2184_v14, %v2188_v61  ;;  %v2192_v6 = vld [vmem:[#allocation8 + $0x2c8] sm:$0xff]  ;;  %v2201_v13 = vld [vmem:[#allocation8 + $0x310] sm:$0xff] }
 0x3aa   : > { %1954 = vmax.xlane.f32.xlu0 %v1953_v40  ;;  %v6803_v42 = vsel %vm1870_vm0, %v1852_v4, %v1893_v16  ;;  %v5205_v4 = vcombine.high %v2184_v14, %v2188_v61  ;;  %v2193_v16 = vld [vmem:[#allocation8 + $0x2d0] sm:$0xff]  ;;  %v6812_v40 = vld [vmem:[%s6270_s20 + $0x64] ss:$8 sps:$4 sm:$0xff]  }
 0x3ab   : > { %v1956_v19 = vsel %vm1910_vm1, %v6803_v42, -inf  ;;  %3045 = vmatpush1.bf16.msra.mxu0 %v5196_v1  ;;  %3159 = vmatprep.subr.bf16.mxu1 %v5207_v50  ;;  %v5215_v34 = vcombine.high %v2193_v16, %v2197_v21  ;;  %v5214_v52 = vcombine.low %v2193_v16, %v2197_v21  ;;  %v2196_v44 = vld [vmem:[#allocation8 + $0x2e8] sm:$0xff]  ;;  %v2205_v43 = vld [vmem:[#allocation8 + $0x330] sm:$0xff] }
 0x3ac   : > { %1957 = vmax.xlane.f32.xlu1 %v1956_v19  ;;  %3160 = vmatpush1.bf16.msra.mxu1 %v5206_v23  ;;  %v5213_v19 = vcombine.high %v2192_v6, %v2196_v44  ;;  %v5212_v1 = vcombine.low %v2192_v6, %v2196_v44  ;;  %v5223_v50 = vcombine.high %v2201_v13, %v2205_v43  ;;  %v2200_v14 = vld [vmem:[#allocation8 + $0x308] sm:$0xff]  ;;  %v2209_v21 = vld [vmem:[#allocation8 + $0x350] sm:$0xff] }
 0x3ad   : > { %2996 = vmatmul.mubr.bf16.gmra.mrb[52].mxu1 %v6808_v2  ;;  %3046 = vmatprep.subr.bf16.mxu0 %v5205_v4  ;;  %v5222_v23 = vcombine.low %v2201_v13, %v2205_v43  ;;  %v2204_v61 = vld [vmem:[#allocation8 + $0x328] sm:$0xff] }
 0x3ae   : > { %3005 = vmatprep.mubr.bf16.mxu1 %v6812_v40  ;;  %3161 = vmatprep.subr.bf16.mxu1 %v5215_v34  ;;  %v6816_v4 = vld [vmem:[%s6270_s20 + $0x60] ss:$8 sps:$4 sm:$0xff]   ;;  %v5220_v16 = vcombine.low %v2200_v14, %v2204_v61  ;;  %v2213_v34 = vld [vmem:[#allocation8 + $0x370] sm:$0xff] }
 0x3af   : > { %3047 = vmatpush1.bf16.msra.mxu0 %v5204_v5  ;;  %v5221_v5 = vcombine.high %v2200_v14, %v2204_v61  ;;  %v5231_v6 = vcombine.high %v2209_v21, %v2213_v34  ;;  %v5230_v44 = vcombine.low %v2209_v21, %v2213_v34  ;;  %v2225_v21 = vld [vmem:[#allocation8 + $0x3d0] sm:$0xff] }
 0x3b0   : > { %3162 = vmatpush1.bf16.msra.mxu1 %v5214_v52  ;;  %3048 = vmatprep.subr.bf16.mxu0 %v5213_v19  ;;  %v6820_v52 = vld [vmem:[%s6270_s20 + $0x74] ss:$8 sps:$4 sm:$0xff]   ;;  %v2208_v19 = vld [vmem:[#allocation8 + $0x348] sm:$0xff] }
 0x3b1   : > { %3163 = vmatprep.subr.bf16.mxu1 %v5223_v50  ;;  %v2217_v50 = vld [vmem:[#allocation8 + $0x390] sm:$0xff] }
 0x3b2   : > { %v2229_v34 = vld [vmem:[#allocation8 + $0x3f0] sm:$0xff] }
 0x3b3   : > { %3049 = vmatpush1.bf16.msra.mxu0 %v5212_v1  ;;  %v2212_v1 = vld [vmem:[#allocation8 + $0x368] sm:$0xff] }
 0x3b4   : > { %3164 = vmatpush1.bf16.msra.mxu1 %v5222_v23  ;;  %3050 = vmatprep.subr.bf16.mxu0 %v5221_v5  ;;  %v5229_v13 = vcombine.high %v2208_v19, %v2212_v1  ;;  %v5228_v43 = vcombine.low %v2208_v19, %v2212_v1  ;;  %v2221_v23 = vld [vmem:[#allocation8 + $0x3b0] sm:$0xff]  ;;  %v5236_v5 = vcombine.low %v2216_v57, %v2220_v51  ;;  %v2224_v19 = vld [vmem:[#allocation8 + $0x3c8] sm:$0xff] }
 0x3b5   : > { %3006 = vmatmul.mubr.bf16.gmra.mrb[56].mxu1 %v6816_v4  ;;  %3165 = vmatprep.subr.bf16.mxu1 %v5231_v6  ;;  %v5239_v14 = vcombine.high %v2217_v50, %v2221_v23  ;;  %v5238_v61 = vcombine.low %v2217_v50, %v2221_v23  ;;  %v5246_v6 = vcombine.low %v2225_v21, %v2229_v34  ;;  %v2228_v1 = vld [vmem:[#allocation8 + $0x3e8] sm:$0xff]  ;;  %v2106_v50 = vld [vmem:[#allocation8 + $0x18] sm:$0xff] }
 0x3b6   : > { %3015 = vmatprep.mubr.bf16.mxu1 %v6820_v52  ;;  %v2110_v23 = vld [vmem:[#allocation8 + $0x38] sm:$0xff] }
 0x3b7   : > { %3051 = vmatpush1.bf16.msra.mxu0 %v5220_v16  ;;  %v5237_v16 = vcombine.high %v2216_v57, %v2220_v51  ;;  %v5129_v62 = vcombine.high %v2106_v50, %v2110_v23  ;;  %v2114_v51 = vld [vmem:[#allocation8 + $0x58] sm:$0xff] }
 0x3b8   : > { %3166 = vmatpush1.bf16.msra.mxu1 %v5230_v44  ;;  %3052 = vmatprep.subr.bf16.mxu0 %v5229_v13  ;;  %v5247_v44 = vcombine.high %v2225_v21, %v2229_v34  ;;  %v5244_v13 = vcombine.low %v2224_v19, %v2228_v1  ;;  %v2118_v57 = vld [vmem:[#allocation8 + $0x78] sm:$0xff] }
 0x3b9   : > { %3167 = vmatprep.subr.bf16.mxu1 %v5239_v14  ;;  %v5128_v14 = vcombine.low %v2106_v50, %v2110_v23  ;;  %v2130_v21 = vld [vmem:[#allocation8 + $0xd8] sm:$0xff] }
 0x3ba   : > { %v2146_v50 = vld [vmem:[#allocation8 + $0x158] sm:$0xff] }
 0x3bb   : > { %3053 = vmatpush1.bf16.msra.mxu0 %v5228_v43  ;;  %v5245_v43 = vcombine.high %v2224_v19, %v2228_v1  ;;  %v2138_v19 = vld [vmem:[#allocation8 + $0x118] sm:$0xff] }
 0x3bc   : > { %3168 = vmatpush1.bf16.msra.mxu1 %v5238_v61  ;;  %3054 = vmatprep.subr.bf16.mxu0 %v5237_v16  ;;  %v5137_v61 = vcombine.high %v2114_v51, %v2118_v57  ;;  %v2126_v16 = vld [vmem:[#allocation8 + $0xb8] sm:$0xff] }
 0x3bd   : > { %3016 = vmatmul.mubr.bf16.gmra.mrb[60].mxu1 %v6824_v54  ;;  %3169 = vmatprep.subr.bf16.mxu1 %v5247_v44  ;;  %v2142_v1 = vld [vmem:[#allocation8 + $0x138] sm:$0xff] }
 0x3be   : > { %3171 = vmatprep.mubr.bf16.mxu1 %v6658_v59  ;;  %v5136_v59 = vcombine.low %v2114_v51, %v2118_v57  ;;  %v2150_v23 = vld [vmem:[#allocation8 + $0x178] sm:$0xff] }
 0x3bf   : > { %3055 = vmatpush1.bf16.msra.mxu0 %v5236_v5  ;;  %v2122_v5 = vld [vmem:[#allocation8 + $0x98] sm:$0xff]  ;;  %v5169_v51 = vcombine.high %v2146_v50, %v2150_v23 }
 0x3c0   : > { %3170 = vmatpush1.bf16.msra.mxu1 %v5246_v6  ;;  %3056 = vmatprep.subr.bf16.mxu0 %v5245_v43  ;;  %v5144_v34 = vcombine.low %v2122_v5, %v2126_v16  ;;  %v2134_v6 = vld [vmem:[#allocation8 + $0xf8] sm:$0xff]  ;;  %v5161_v43 = vcombine.high %v2138_v19, %v2142_v1 }
 0x3c1   : > { %5402 = vmatprep.subr.bf16.mxu1 %v5129_v62  ;;  %v5153_v44 = vcombine.high %v2130_v21, %v2134_v6  ;;  %v2154_v57 = vld [vmem:[#allocation8 + $0x198] sm:$0xff] }
 0x3c3   : > { %3057 = vmatpush1.bf16.msra.mxu0 %v5244_v13  ;;  %v5152_v13 = vcombine.low %v2130_v21, %v2134_v6  ;;  %v2166_v21 = vld [vmem:[#allocation8 + $0x1f8] sm:$0xff] }
 0x3c4   : > { %3252 = vmatprep.subr.bf16.mxu0 %v5129_v62  ;;  %v5145_v62 = vcombine.high %v2122_v5, %v2126_v16  ;;  %v2162_v16 = vld [vmem:[#allocation8 + $0x1d8] sm:$0xff] }
 0x3c5   : > { %3172 = vmatmul.mubr.bf16.vlgmr.msra.gmra.mrb[64].mxu1 %v6711_v24  ;;  %v2170_v6 = vld [vmem:[#allocation8 + $0x218] sm:$0xff] }
 0x3c6   : > { %5418 = vmatpush1.bf16.msra.mxu1 %v5128_v14  ;;  %3181 = vmatprep.mubr.bf16.mxu1 %v6715_v39 }
 0x3c7   : > { %3059 = vmatmul.mubr.bf16.vlgmr.msra.gmra.mrb[64].mxu0 %v6711_v24  ;;  %5403 = vmatprep.subr.bf16.mxu1 %v5137_v61 }
 0x3c8   : > { %3253 = vmatpush1.bf16.msra.mxu0 %v5128_v14  ;;  %3068 = vmatprep.mubr.bf16.mxu0 %v6715_v39  ;;  %v5160_v14 = vcombine.low %v2138_v19, %v2142_v1  ;;  %v5184_v19 = vcombine.low %v2162_v16, %v2166_v21 }
 0x3c9   : > { %3254 = vmatprep.subr.bf16.mxu0 %v5137_v61  ;;  %v5168_v61 = vcombine.low %v2146_v50, %v2150_v23 }
 0x3ca   : > { %5419 = vmatpush1.bf16.msra.mxu1 %v5136_v59 }
 0x3cb   : > { %5404 = vmatprep.subr.bf16.mxu1 %v5145_v62 }
 0x3cc   : > { %3255 = vmatpush1.bf16.msra.mxu0 %v5136_v59  ;;  %v2158_v59 = vld [vmem:[#allocation8 + $0x1b8] sm:$0xff] }
 0x3cd   : > { %3182 = vmatmul.mubr.bf16.gmra.mrb[68].mxu1 %v6731_v58  ;;  %3256 = vmatprep.subr.bf16.mxu0 %v5145_v62  ;;  %v5177_v5 = vcombine.high %v2154_v57, %v2158_v59  ;;  %v5185_v62 = vcombine.high %v2162_v16, %v2166_v21 }
 0x3ce   : > { %5420 = vmatpush1.bf16.msra.mxu1 %v5144_v34  ;;  %3191 = vmatprep.mubr.bf16.mxu1 %v6735_v22 }
 0x3cf   : > { %3069 = vmatmul.mubr.bf16.gmra.mrb[68].mxu0 %v6731_v58  ;;  %5405 = vmatprep.subr.bf16.mxu1 %v5153_v44 }
 0x3d0   : > { %3257 = vmatpush1.bf16.msra.mxu0 %v5144_v34  ;;  %3078 = vmatprep.mubr.bf16.mxu0 %v6735_v22  ;;  %v5176_v34 = vcombine.low %v2154_v57, %v2158_v59 }
 0x3d1   : > { %3258 = vmatprep.subr.bf16.mxu0 %v5153_v44  ;;  %v2174_v44 = vld [vmem:[#allocation8 + $0x238] sm:$0xff] }
 0x3d2   : > { %5421 = vmatpush1.bf16.msra.mxu1 %v5152_v13  ;;  %v5193_v1 = vcombine.high %v2170_v6, %v2174_v44  ;;  %v5192_v50 = vcombine.low %v2170_v6, %v2174_v44 }
 0x3d3   : > { %5406 = vmatprep.subr.bf16.mxu1 %v5161_v43 }
 0x3d4   : > { %3259 = vmatpush1.bf16.msra.mxu0 %v5152_v13  ;;  %v2178_v13 = vld [vmem:[#allocation8 + $0x258] sm:$0xff] }
 0x3d5   : > { %3192 = vmatmul.mubr.bf16.gmra.mrb[72].mxu1 %v6751_v30  ;;  %3260 = vmatprep.subr.bf16.mxu0 %v5161_v43  ;;  %v2182_v43 = vld [vmem:[#allocation8 + $0x278] sm:$0xff] }
 0x3d6   : > { %5422 = vmatpush1.bf16.msra.mxu1 %v5160_v14  ;;  %3201 = vmatprep.mubr.bf16.mxu1 %v6755_v0  ;;  %v5201_v23 = vcombine.high %v2178_v13, %v2182_v43  ;;  %v5200_v57 = vcombine.low %v2178_v13, %v2182_v43 }
 0x3d7   : > { %3079 = vmatmul.mubr.bf16.gmra.mrb[72].mxu0 %v6751_v30  ;;  %5407 = vmatprep.subr.bf16.mxu1 %v5169_v51 }
 0x3d8   : > { %3261 = vmatpush1.bf16.msra.mxu0 %v5160_v14  ;;  %3088 = vmatprep.mubr.bf16.mxu0 %v6755_v0  ;;  %v2186_v14 = vld [vmem:[#allocation8 + $0x298] sm:$0xff] }
 0x3d9   : > { %3262 = vmatprep.subr.bf16.mxu0 %v5169_v51  ;;  %v2190_v51 = vld [vmem:[#allocation8 + $0x2b8] sm:$0xff] }
 0x3da   : > { %5423 = vmatpush1.bf16.msra.mxu1 %v5168_v61  ;;  %v5209_v59 = vcombine.high %v2186_v14, %v2190_v51  ;;  %v5208_v16 = vcombine.low %v2186_v14, %v2190_v51 }
 0x3db   : > { %5408 = vmatprep.subr.bf16.mxu1 %v5177_v5 }
 0x3dc   : > { %3263 = vmatpush1.bf16.msra.mxu0 %v5168_v61  ;;  %v2194_v61 = vld [vmem:[#allocation8 + $0x2d8] sm:$0xff] }
 0x3dd   : > { %3202 = vmatmul.mubr.bf16.gmra.mrb[76].mxu1 %v6771_v3  ;;  %3264 = vmatprep.subr.bf16.mxu0 %v5177_v5  ;;  %v2198_v5 = vld [vmem:[#allocation8 + $0x2f8] sm:$0xff] }
 0x3de   : > { %5424 = vmatpush1.bf16.msra.mxu1 %v5176_v34  ;;  %3211 = vmatprep.mubr.bf16.mxu1 %v6775_v48  ;;  %v5217_v21 = vcombine.high %v2194_v61, %v2198_v5  ;;  %v5216_v6 = vcombine.low %v2194_v61, %v2198_v5 }
 0x3df   : > { %3089 = vmatmul.mubr.bf16.gmra.mrb[76].mxu0 %v6771_v3  ;;  %5409 = vmatprep.subr.bf16.mxu1 %v5185_v62 }
 0x3e0   : > { %3265 = vmatpush1.bf16.msra.mxu0 %v5176_v34  ;;  %3098 = vmatprep.mubr.bf16.mxu0 %v6775_v48  ;;  %v2202_v34 = vld [vmem:[#allocation8 + $0x318] sm:$0xff] }
 0x3e1   : > { %3266 = vmatprep.subr.bf16.mxu0 %v5185_v62  ;;  %v2206_v62 = vld [vmem:[#allocation8 + $0x338] sm:$0xff] }
 0x3e2   : > { %5425 = vmatpush1.bf16.msra.mxu1 %v5184_v19  ;;  %v5225_v44 = vcombine.high %v2202_v34, %v2206_v62  ;;  %v5224_v13 = vcombine.low %v2202_v34, %v2206_v62  ;;  %v3792_v62 = vld [vmem:[%s9322_s29 + $0x8] sm:$0xff] }
 0x3e3   : > { %5410 = vmatprep.subr.bf16.mxu1 %v5193_v1 }
 0x3e4   : > { %3267 = vmatpush1.bf16.msra.mxu0 %v5184_v19  ;;  %v2210_v19 = vld [vmem:[#allocation8 + $0x358] sm:$0xff] }
 0x3e5   : > { %3212 = vmatmul.mubr.bf16.gmra.mrb[80].mxu1 %v6791_v31  ;;  %3268 = vmatprep.subr.bf16.mxu0 %v5193_v1  ;;  %v2214_v1 = vld [vmem:[#allocation8 + $0x378] sm:$0xff] }
 0x3e6   : > { %5426 = vmatpush1.bf16.msra.mxu1 %v5192_v50  ;;  %3221 = vmatprep.mubr.bf16.mxu1 %v6795_v20  ;;  %v5233_v43 = vcombine.high %v2210_v19, %v2214_v1  ;;  %v5232_v14 = vcombine.low %v2210_v19, %v2214_v1  ;;  %v5743_v19 = vld [vmem:[%s6270_s20 + $0x4] ss:$8 sps:$4 sm:$0xff]   ;;  %s9510_s20 = sld [smem:[#allocation166_spill]] }
 0x3e7   : > { %3099 = vmatmul.mubr.bf16.gmra.mrb[80].mxu0 %v6791_v31  ;;  %5411 = vmatprep.subr.bf16.mxu1 %v5201_v23 }
 0x3e8   : > { %3269 = vmatpush1.bf16.msra.mxu0 %v5192_v50  ;;  %3108 = vmatprep.mubr.bf16.mxu0 %v6795_v20  ;;  %v2218_v50 = vld [vmem:[#allocation8 + $0x398] sm:$0xff] }
 0x3e9   : > { %3270 = vmatprep.subr.bf16.mxu0 %v5201_v23  ;;  %v2222_v23 = vld [vmem:[#allocation8 + $0x3b8] sm:$0xff] }
 0x3ea   : > { %5427 = vmatpush1.bf16.msra.mxu1 %v5200_v57  ;;  %v5241_v51 = vcombine.high %v2218_v50, %v2222_v23  ;;  %v5240_v61 = vcombine.low %v2218_v50, %v2222_v23 }
 0x3eb   : > { %5412 = vmatprep.subr.bf16.mxu1 %v5209_v59 }
 0x3ec   : > { %3271 = vmatpush1.bf16.msra.mxu0 %v5200_v57  ;;  %v2226_v57 = vld [vmem:[#allocation8 + $0x3d8] sm:$0xff]  ;;  %s8104_s28 = scalar_lea.hbm %s9510_s20, %s9231_s17 }
 0x3ed   : > { %3222 = vmatmul.mubr.bf16.gmra.mrb[84].mxu1 %v6808_v2  ;;  %3272 = vmatprep.subr.bf16.mxu0 %v5209_v59  ;;  %v2230_v59 = vld [vmem:[#allocation8 + $0x3f8] sm:$0xff] }
 0x3ee   : > { %5428 = vmatpush1.bf16.msra.mxu1 %v5208_v16  ;;  %3231 = vmatprep.mubr.bf16.mxu1 %v6812_v40  ;;  %v5249_v5 = vcombine.high %v2226_v57, %v2230_v59  ;;  %v5248_v34 = vcombine.low %v2226_v57, %v2230_v59 }
 0x3ef   : > { %3109 = vmatmul.mubr.bf16.gmra.mrb[84].mxu0 %v6808_v2  ;;  %5413 = vmatprep.subr.bf16.mxu1 %v5217_v21 }
 0x3f0   : > { %3273 = vmatpush1.bf16.msra.mxu0 %v5208_v16  ;;  %3118 = vmatprep.mubr.bf16.mxu0 %v6812_v40  ;;  %v3791_v16 = vld [vmem:[%s9322_s29] sm:$0xff] }
 0x3f1   : > { %3274 = vmatprep.subr.bf16.mxu0 %v5217_v21 }
 0x3f2   : > { %5429 = vmatpush1.bf16.msra.mxu1 %v5216_v6 }
 0x3f3   : > { %5414 = vmatprep.subr.bf16.mxu1 %v5225_v44 }
 0x3f4   : > { %3275 = vmatpush1.bf16.msra.mxu0 %v5216_v6 }
 0x3f5   : > { %3232 = vmatmul.mubr.bf16.gmra.mrb[88].mxu1 %v6816_v4  ;;  %3276 = vmatprep.subr.bf16.mxu0 %v5225_v44  ;;  %v3799_v44 = vcombine.high %v3791_v16, %v3791_v16 }
 0x3f6   : > { %5430 = vmatpush1.bf16.msra.mxu1 %v5224_v13  ;;  %3241 = vmatprep.mubr.bf16.mxu1 %v6820_v52 }
 0x3f7   : > { %3119 = vmatmul.mubr.bf16.gmra.mrb[88].mxu0 %v6816_v4  ;;  %5415 = vmatprep.subr.bf16.mxu1 %v5233_v43 }
 0x3f8   : > { %3277 = vmatpush1.bf16.msra.mxu0 %v5224_v13  ;;  %3128 = vmatprep.mubr.bf16.mxu0 %v6820_v52  ;;  %v3800_v13 = vcombine.high %v3792_v62, %v3792_v62 }
 0x3f9   : > { %3278 = vmatprep.subr.bf16.mxu0 %v5233_v43 }
 0x3fa   : > { %5431 = vmatpush1.bf16.msra.mxu1 %v5232_v14 }
 0x3fb   : > { %5416 = vmatprep.subr.bf16.mxu1 %v5241_v51 }
 0x3fc   : > { %3279 = vmatpush1.bf16.msra.mxu0 %v5232_v14 }
 0x3fd   : > { %3242 = vmatmul.mubr.bf16.gmra.mrb[92].mxu1 %v6824_v54  ;;  %3280 = vmatprep.subr.bf16.mxu0 %v5241_v51 }
 0x3fe   : > { %5432 = vmatpush1.bf16.msra.mxu1 %v5240_v61  ;;  %3324 = vmatprep.mubr.bf16.mxu1 %v6775_v48 }
 0x3ff   : > { %v1913_v21 = vpop.xlane.xlu0 %1912  ;;  %3129 = vmatmul.mubr.bf16.gmra.mrb[92].mxu0 %v6824_v54  ;;  %5417 = vmatprep.subr.bf16.mxu1 %v5249_v5 }
 0x400   : > { %v1959_v6 = vsub.f32 %v6674_v18, %v1913_v21  ;;  %3281 = vmatpush1.bf16.msra.mxu0 %v5240_v61  ;;  %3284 = vmatprep.mubr.bf16.mxu0 %v5743_v19 }
 0x401   : > { %3282 = vmatprep.subr.bf16.mxu0 %v5249_v5 }
 0x402   : > { %v1975_v1 = vmul.f32 1.442695, %v1959_v6  ;;  %5433 = vmatpush1.bf16.msra.mxu1 %v5248_v34 }
 0x403   : > { %v1916_v43 = vpop.xlane.xlu0 %1915  ;;  %5250 = vmatprep.subr.msk.mxu1 %vm3851_vm2, %v3799_v44 }
 0x404   : > { %5663 = vpow2.f32 %v1975_v1  ;;  %v1960_v48 = vsub.f32 %v6679_v27, %v1916_v43  ;;  %3283 = vmatpush1.bf16.msra.mxu0 %v5248_v34 }
 0x405   : > { %3325 = vmatmul.mubr.bf16.vlgmr.msra.gmra.mrb[96].mxu1 %v6791_v31  ;;  %5268 = vmatprep.subr.msk.mxu0 %vm3851_vm2, %v3800_v13 }
 0x406   : > { %v1977_v18 = vmul.f32 1.442695, %v1960_v48  ;;  %5251 = vmatpush1.msk.msra.mxu1 %vm3851_vm2, %v3791_v16  ;;  %3334 = vmatprep.mubr.bf16.mxu1 %v6795_v20 }
 0x407   : > { %v1919_v50 = vpop.xlane.xlu1 %1918  ;;  %3285 = vmatmul.mubr.bf16.vlgmr.msra.gmra.mrb[96].mxu0 %v6711_v24 }
 0x408   : > { %5665 = vpow2.f32 %v1977_v18  ;;  %v1961_v23 = vsub.f32 %v6686_v38, %v1919_v50  ;;  %5269 = vmatpush1.msk.msra.mxu0 %vm3851_vm2, %v3792_v62  ;;  %3294 = vmatprep.mubr.bf16.mxu0 %v6715_v39 }
 0x40a   : > { %v1979_v27 = vmul.f32 1.442695, %v1961_v23 }
 0x40b   : > { %v1922_v14 = vpop.xlane.xlu1 %1921 }
 0x40c   : > { %5667 = vpow2.f32 %v1979_v27  ;;  %v1962_v31 = vsub.f32 %v6691_v63, %v1922_v14  ;;  %v9193_v27 = vmov 0.0  }
 0x40d   : > { %3335 = vmatmul.mubr.bf16.gmra.mrb[100].mxu1 %v6808_v2 }
 0x40e   : > { %v6878_v51 = vpop.eup %5663  ;;  %v1981_v57 = vmul.f32 1.442695, %v1962_v31  ;;  %3344 = vmatprep.mubr.bf16.mxu1 %v6812_v40 }
 0x40f   : > { %v1925_v20 = vpop.xlane.xlu0 %1924  ;;  %v2007_v38 = vsel %vm1910_vm1, %v6878_v51, 0.0  ;;  %3295 = vmatmul.mubr.bf16.gmra.mrb[100].mxu0 %v6731_v58 }
 0x410   : > { %5669 = vpow2.f32 %v1981_v57  ;;  %v1963_v24 = vsub.f32 %v6698_v25, %v1925_v20  ;;  %2008 = vadd.xlane.f32.xlu0 %v2007_v38  ;;  %3304 = vmatprep.mubr.bf16.mxu0 %v6735_v22 }
 0x411   : > { %v1928_v39 = vpop.xlane.xlu1 %1927 }
 0x412   : > { %v6887_v63 = vpop.eup %5665  ;;  %v1983_v59 = vmul.f32 1.442695, %v1963_v24  ;;  %v1964_v2 = vsub.f32 %v6703_v49, %v1928_v39 }
 0x413   : > { %v2010_v61 = vsel %vm1910_vm1, %v6887_v63, 0.0 }
 0x414   : > { %5671 = vpow2.f32 %v1983_v59  ;;  %v1985_v5 = vmul.f32 1.442695, %v1964_v2  ;;  %2011 = vadd.xlane.f32.xlu1 %v2010_v61 }
 0x415   : > { %3345 = vmatmul.mubr.bf16.gmra.mrb[104].mxu1 %v6816_v4 }
 0x416   : > { %v6892_v40 = vpop.eup %5667  ;;  %5673 = vpow2.f32 %v1985_v5  ;;  %3354 = vmatprep.mubr.bf16.mxu1 %v6820_v52 }
 0x417   : > { %v1931_v25 = vpop.xlane.xlu0 %1930  ;;  %v2013_v58 = vsel %vm1910_vm1, %v6892_v40, 0.0  ;;  %3305 = vmatmul.mubr.bf16.gmra.mrb[104].mxu0 %v6751_v30 }
 0x418   : > { %v1965_v22 = vsub.f32 %v6718_v41, %v1931_v25  ;;  %2014 = vadd.xlane.f32.xlu0 %v2013_v58  ;;  %3314 = vmatprep.mubr.bf16.mxu0 %v6755_v0  ;;  %v6952_v58 = vld [vmem:[%s9322_s29 + $0x18] sm:$0xff] }
 0x419   : > { %v1934_v49 = vpop.xlane.xlu1 %1933 }
 0x41a   : > { %v6901_v16 = vpop.eup %5669  ;;  %v1987_v21 = vmul.f32 1.442695, %v1965_v22  ;;  %v1966_v34 = vsub.f32 %v6723_v47, %v1934_v49 }
 0x41b   : > { %v2016_v4 = vsel %vm1910_vm1, %v6901_v16, 0.0 }
 0x41c   : > { %5675 = vpow2.f32 %v1987_v21  ;;  %v1989_v62 = vmul.f32 1.442695, %v1966_v34  ;;  %2017 = vadd.xlane.f32.xlu1 %v2016_v4  ;;  %v3802_v21 = vcombine.high %v6952_v58, %v6952_v58 }
 0x41d   : > { %3355 = vmatmul.mubr.bf16.gmra.mrb[108].mxu1 %v6824_v54 }
 0x41e   : > { %v6906_v52 = vpop.eup %5671  ;;  %5677 = vpow2.f32 %v1989_v62  ;;  %3932 = vmatprep.mubr.f32.mxu1 %v9193_v27  ;;  %5304 = vmatprep.subr.msk.mxu0 %vm3851_vm2, %v3802_v21 }
 0x41f   : > { %v1937_v41 = vpop.xlane.xlu0 %1936  ;;  %v2019_v30 = vsel %vm1910_vm1, %v6906_v52, 0.0  ;;  %3315 = vmatmul.mubr.bf16.gmra.mrb[108].mxu0 %v6771_v3 }
 0x420   : > { %v6911_v0 = vpop.eup %5673  ;;  %v1967_v6 = vsub.f32 %v6738_v36, %v1937_v41  ;;  %2020 = vadd.xlane.f32.xlu0 %v2019_v30  ;;  %4093 = vmatprep.mubr.f32.mxu0 %v9193_v27 }
 0x421   : > { %v1940_v47 = vpop.xlane.xlu1 %1939  ;;  %v2022_v44 = vsel %vm1910_vm1, %v6911_v0, 0.0 }
 0x422   : > { %v1991_v19 = vmul.f32 1.442695, %v1967_v6  ;;  %v1968_v1 = vsub.f32 %v6743_v11, %v1940_v47  ;;  %2023 = vadd.xlane.f32.xlu1 %v2022_v44 }
 0x424   : > { %5679 = vpow2.f32 %v1991_v19  ;;  %v1993_v54 = vmul.f32 1.442695, %v1968_v1 }
 0x426   : > { %v6918_v13 = vpop.eup %5675  ;;  %5681 = vpow2.f32 %v1993_v54 }
 0x427   : > { %v1943_v43 = vpop.xlane.xlu0 %1942  ;;  %v2025_v36 = vsel %vm1910_vm1, %v6918_v13, 0.0 }
 0x428   : > { %v6922_v48 = vpop.eup %5677  ;;  %v1969_v3 = vsub.f32 %v6758_v8, %v1943_v43  ;;  %2026 = vadd.xlane.f32.xlu0 %v2025_v36 }
 0x429   : > { %v1946_v18 = vpop.xlane.xlu1 %1945  ;;  %v2028_v50 = vsel %vm1910_vm1, %v6922_v48, 0.0 }
 0x42a   : > { %v1995_v11 = vmul.f32 1.442695, %v1969_v3  ;;  %v1970_v23 = vsub.f32 %v6763_v46, %v1946_v18  ;;  %2029 = vadd.xlane.f32.xlu1 %v2028_v50 }
 0x42c   : > { %5683 = vpow2.f32 %v1995_v11  ;;  %v1997_v14 = vmul.f32 1.442695, %v1970_v23 }
 0x42e   : > { %v6930_v31 = vpop.eup %5679  ;;  %5685 = vpow2.f32 %v1997_v14 }
 0x42f   : > { %v1949_v8 = vpop.xlane.xlu0 %1948  ;;  %v2031_v57 = vsel %vm1910_vm1, %v6930_v31, 0.0 }
 0x430   : > { %v6934_v20 = vpop.eup %5681  ;;  %v1971_v38 = vsub.f32 %v6778_v45, %v1949_v8  ;;  %2032 = vadd.xlane.f32.xlu0 %v2031_v57  ;;  %v6947_v45 = vld [vmem:[%s9322_s29 + $0x10] sm:$0xff] }
 0x431   : > { %v1952_v46 = vpop.xlane.xlu1 %1951  ;;  %v2034_v24 = vsel %vm1910_vm1, %v6934_v20, 0.0  ;;  %v3801_v49 = vcombine.high %v6947_v45, %v6947_v45 }
 0x432   : > { %v1999_v39 = vmul.f32 1.442695, %v1971_v38  ;;  %v1972_v59 = vsub.f32 %v6783_v17, %v1952_v46  ;;  %2035 = vadd.xlane.f32.xlu1 %v2034_v24 }
 0x433   : > { %5286 = vmatprep.subr.msk.mxu1 %vm3851_vm2, %v3801_v49 }
 0x434   : > { %5687 = vpow2.f32 %v1999_v39  ;;  %v2001_v2 = vmul.f32 1.442695, %v1972_v59 }
 0x436   : > { %v6940_v61 = vpop.eup %5683  ;;  %5689 = vpow2.f32 %v2001_v2 }
 0x437   : > { %v1955_v5 = vpop.xlane.xlu0 %1954  ;;  %v2037_v25 = vsel %vm1910_vm1, %v6940_v61, 0.0 }
 0x438   : > { %v6954_v17 = vpop.eup %5685  ;;  %v1973_v22 = vsub.f32 %v6798_v12, %v1955_v5  ;;  %2038 = vadd.xlane.f32.xlu0 %v2037_v25 }
 0x439   : > { %v1958_v34 = vpop.xlane.xlu1 %1957  ;;  %v2040_v4 = vsel %vm1910_vm1, %v6954_v17, 0.0 }
 0x43a   : > { %v2003_v62 = vmul.f32 1.442695, %v1973_v22  ;;  %v1974_v41 = vsub.f32 %v6803_v42, %v1958_v34  ;;  %2041 = vadd.xlane.f32.xlu1 %v2040_v4 }
 0x43c   : > { %5691 = vpow2.f32 %v2003_v62  ;;  %v2005_v12 = vmul.f32 1.442695, %v1974_v41 }
 0x43e   : > { %v6966_v30 = vpop.eup %5687  ;;  %5693 = vpow2.f32 %v2005_v12 }
 0x43f   : > { %v2043_v6 = vsel %vm1910_vm1, %v6966_v30, 0.0 }
 0x440   : > { %v6970_v47 = vpop.eup %5689  ;;  %2044 = vadd.xlane.f32.xlu0 %v2043_v6 }
 0x441   : > { %v2046_v44 = vsel %vm1910_vm1, %v6970_v47, 0.0 }
 0x442   : > { %2047 = vadd.xlane.f32.xlu1 %v2046_v44 }
 0x446   : > { %v6974_v42 = vpop.eup %5691 }
 0x447   : > { %v2049_v19 = vsel %vm1910_vm1, %v6974_v42, 0.0 }
 0x448   : > { %v6978_v1 = vpop.eup %5693  ;;  %2050 = vadd.xlane.f32.xlu0 %v2049_v19 }
 0x449   : > { %v2052_v54 = vsel %vm1910_vm1, %v6978_v1, 0.0 }
 0x44a   : > { %2053 = vadd.xlane.f32.xlu1 %v2052_v54 }
 0x456   : > { %v6982_v43 = vpop.f32.mrb[32].mxu1 }
 0x457   : > { %v6984_v36 = vpop.f32.mrb[33].mxu1 }
 0x458   : > { %v6986_v3 = vpop.f32.mrb[34].mxu1 }
 0x459   : > { %v6988_v18 = vpop.f32.mrb[35].mxu1 }
 0x45e   : > { %v6990_v50 = vpop.f32.mrb[36].mxu1 }
 0x45f   : > { %v6992_v11 = vpop.f32.mrb[37].mxu1 }
 0x460   : > { %v6994_v23 = vpop.f32.mrb[38].mxu1 }
 0x461   : > { %v6996_v14 = vpop.f32.mrb[39].mxu1 }
 0x468   : > { %v6998_v8 = vpop.f32.mrb[40].mxu1 }
 0x469   : > { %v7000_v57 = vpop.f32.mrb[41].mxu1 }
 0x46a   : > { %v7002_v38 = vpop.f32.mrb[42].mxu1 }
 0x46b   : > { %v7004_v46 = vpop.f32.mrb[43].mxu1 }
 0x470   : > { %v7006_v24 = vpop.f32.mrb[44].mxu1 }
 0x471   : > { %v7008_v39 = vpop.f32.mrb[45].mxu1 }
 0x472   : > { %v7010_v59 = vpop.f32.mrb[46].mxu1 }
 0x473   : > { %v7012_v2 = vpop.f32.mrb[47].mxu1 }
 0x478   : > { %v7014_v5 = vpop.f32.mrb[48].mxu1 }
 0x479   : > { %v7016_v25 = vpop.f32.mrb[49].mxu1 }
 0x47a   : > { %v7018_v22 = vpop.f32.mrb[50].mxu1 }
 0x47b   : > { %v7020_v49 = vpop.f32.mrb[51].mxu1 }
 0x480   : > { %v7022_v21 = vpop.f32.mrb[52].mxu1 }
 0x481   : > { %v7024_v34 = vpop.f32.mrb[53].mxu1 }
 0x482   : > { %v7026_v4 = vpop.f32.mrb[54].mxu1 }
 0x483   : > { %v7028_v62 = vpop.f32.mrb[55].mxu1 }
 0x488   : > { %v7030_v41 = vpop.f32.mrb[56].mxu1 }
 0x489   : > { %v7032_v12 = vpop.f32.mrb[57].mxu1 }
 0x48a   : > { %v7034_v6 = vpop.f32.mrb[58].mxu1 }
 0x48b   : > { %v7036_v44 = vpop.f32.mrb[59].mxu1 }
 0x490   : > { %v7038_v19 = vpop.f32.mrb[60].mxu1 }
 0x491   : > { %v7040_v54 = vpop.f32.mrb[61].mxu1 }
 0x492   : > { %v7042_v27 = vpop.f32.mrb[62].mxu1 }
 0x493   : > { %v7044_v29 = vpop.f32.mrb[63].mxu1 }
 0x498   : > { %v7046_v26 = vpop.f32.mrb[64].mxu1 }
 0x499   : > { %9323 = vst [vmem:[#allocation52_spill] sm:$0xff] %v7046_v26  ;;  %v7049_v28 = vpop.f32.mrb[65].mxu1 }
 0x49a   : > { %9324 = vst [vmem:[#allocation53_spill] sm:$0xff] %v7049_v28  ;;  %v7051_v37 = vpop.f32.mrb[64].mxu0  ;;  %v7053_v10 = vpop.f32.mrb[66].mxu1 }
 0x49b   : > { %9325 = vst [vmem:[#allocation54_spill] sm:$0xff] %v7051_v37  ;;  %9326 = vst [vmem:[#allocation55_spill] sm:$0xff] %v7053_v10  ;;  %v7055_v7 = vpop.f32.mrb[65].mxu0  ;;  %v7057_v9 = vpop.f32.mrb[67].mxu1 }
 0x49c   : > { %9327 = vst [vmem:[#allocation56_spill] sm:$0xff] %v7055_v7  ;;  %9328 = vst [vmem:[#allocation57_spill] sm:$0xff] %v7057_v9  ;;  %v7059_v56 = vpop.f32.mrb[66].mxu0 }
 0x49d   : > { %v2009_v15 = vpop.xlane.xlu0 %2008  ;;  %9329 = vst [vmem:[#allocation58_spill] sm:$0xff] %v7059_v56  ;;  %v7061_v53 = vpop.f32.mrb[67].mxu0 }
 0x49e   : > { %5695 = vrcp.f32 %v2009_v15  ;;  %9330 = vst [vmem:[#allocation59_spill] sm:$0xff] %v7061_v53 }
 0x4a0   : > { %v7063_v60 = vpop.f32.mrb[68].mxu1 }
 0x4a1   : > { %v2012_v55 = vpop.xlane.xlu1 %2011  ;;  %v7065_v28 = vpop.f32.mrb[69].mxu1 }
 0x4a2   : > { %5697 = vrcp.f32 %v2012_v55  ;;  %v7067_v37 = vpop.f32.mrb[68].mxu0  ;;  %v7069_v10 = vpop.f32.mrb[70].mxu1 }
 0x4a3   : > { %9331 = vst [vmem:[#allocation60_spill] sm:$0xff] %v7069_v10  ;;  %v7071_v7 = vpop.f32.mrb[69].mxu0  ;;  %v7073_v9 = vpop.f32.mrb[71].mxu1 }
 0x4a4   : > { %9332 = vst [vmem:[#allocation61_spill] sm:$0xff] %v7071_v7  ;;  %9333 = vst [vmem:[#allocation62_spill] sm:$0xff] %v7073_v9  ;;  %v7075_v15 = vpop.f32.mrb[70].mxu0 }
 0x4a5   : > { %v2015_v56 = vpop.xlane.xlu0 %2014  ;;  %9334 = vst [vmem:[#allocation63_spill] sm:$0xff] %v7075_v15  ;;  %v7077_v53 = vpop.f32.mrb[71].mxu0  ;;  %v9342_v15 = vmov 0.0  }
 0x4a6   : > { %5699 = vrcp.f32 %v2015_v56  ;;  %9335 = vst [vmem:[#allocation64_spill] sm:$0xff] %v7077_v53 }
 0x4a8   : > { %v5696_v26 = vpop.eup %5695  ;;  %v7087_v10 = vpop.f32.mrb[72].mxu1 }
 0x4a9   : > { %v7085_v55 = vmul.f32 %v5696_v26, %v6878_v51  ;;  %v2018_v7 = vpop.xlane.xlu1 %2017  ;;  %9337 = vst [vmem:[#allocation65_spill] sm:$0xff] %v7087_v10  ;;  %v7089_v9 = vpop.f32.mrb[73].mxu1 }
 0x4aa   : > { %5701 = vrcp.f32 %v2018_v7  ;;  %9338 = vst [vmem:[#allocation66_spill] sm:$0xff] %v7089_v9  ;;  %v7098_v56 = vpop.f32.mrb[72].mxu0  ;;  %v7100_v26 = vpop.f32.mrb[74].mxu1 }
 0x4ab   : > { %2087 = vst.msk [vmem:[%s7082_s12] sm:$0xff] %vm1910_vm1, %v7085_v55  ;;  %5252 = vmatmul.mubr.msk.f32.vlgmr.msra.gmra.mrb[112].mxu1 %vm1910_vm1, %v7085_v55  ;;  %5270 = vmatmul.mubr.msk.f32.vlgmr.msra.gmra.mrb[112].mxu0 %vm1910_vm1, %v7085_v55  ;;  %9339 = vst [vmem:[#allocation67_spill] sm:$0xff] %v7100_v26  ;;  %v7106_v7 = vpop.f32.mrb[73].mxu0  ;;  %v7108_v9 = vpop.f32.mrb[75].mxu1 }
 0x4ac   : > { %v5698_v51 = vpop.eup %5697  ;;  %5287 = vmatpush1.msk.msra.mxu1 %vm3851_vm2, %v6947_v45  ;;  %5305 = vmatpush1.msk.msra.mxu0 %vm3851_vm2, %v6952_v58  ;;  %9340 = vst [vmem:[#allocation68_spill] sm:$0xff] %v7106_v7  ;;  %9341 = vst [vmem:[#allocation69_spill] sm:$0xff] %v7108_v9  ;;  %v7115_v26 = vpop.f32.mrb[74].mxu0 }
 0x4ad   : > { %v7111_v10 = vmul.f32 %v5698_v51, %v6887_v63  ;;  %v2021_v53 = vpop.xlane.xlu0 %2020  ;;  %3938 = vmatprep.mubr.f32.mxu1 %v9342_v15  ;;  %4099 = vmatprep.mubr.f32.mxu0 %v9342_v15  ;;  %9343 = vst [vmem:[#allocation70_spill] sm:$0xff] %v7115_v26  ;;  %v7117_v45 = vpop.f32.mrb[75].mxu0 }
 0x4ae   : > { %5703 = vrcp.f32 %v2021_v53  ;;  %9344 = vst [vmem:[#allocation71_spill] sm:$0xff] %v7117_v45 }
 0x4af   : > { %2088 = vst.msk [vmem:[%s7082_s12 + $0x8] sm:$0xff] %vm1910_vm1, %v7111_v10  ;;  %v2024_v58 = vpop.xlane.xlu1 %2023  ;;  %5253 = vmatmul.mubr.msk.f32.gmra.mrb[114].mxu1 %vm1910_vm1, %v7111_v10  ;;  %5271 = vmatmul.mubr.msk.f32.gmra.mrb[114].mxu0 %vm1910_vm1, %v7111_v10 }
 0x4b0   : > { %v5700_v63 = vpop.eup %5699  ;;  %5705 = vrcp.f32 %v2024_v58  ;;  %3944 = vmatprep.mubr.f32.mxu1 %v9342_v15  ;;  %4105 = vmatprep.mubr.f32.mxu0 %v9342_v15  ;;  %v7131_v51 = vpop.f32.mrb[76].mxu1 }
 0x4b1   : > { %v7129_v53 = vmul.f32 %v5700_v63, %v6892_v40  ;;  %9345 = vst [vmem:[#allocation72_spill] sm:$0xff] %v7131_v51  ;;  %v7133_v45 = vpop.f32.mrb[77].mxu1 }
 0x4b2   : > { %9346 = vst [vmem:[#allocation73_spill] sm:$0xff] %v7133_v45  ;;  %v7142_v58 = vpop.f32.mrb[76].mxu0  ;;  %v7144_v26 = vpop.f32.mrb[78].mxu1 }
 0x4b3   : > { %2089 = vst.msk [vmem:[%s7082_s12 + $0x10] sm:$0xff] %vm1910_vm1, %v7129_v53  ;;  %5254 = vmatmul.mubr.msk.f32.gmra.mrb[116].mxu1 %vm1910_vm1, %v7129_v53  ;;  %5272 = vmatmul.mubr.msk.f32.gmra.mrb[116].mxu0 %vm1910_vm1, %v7129_v53  ;;  %9347 = vst [vmem:[#allocation74_spill] sm:$0xff] %v7142_v58  ;;  %v7148_v63 = vpop.f32.mrb[77].mxu0  ;;  %v7150_v45 = vpop.f32.mrb[79].mxu1 }
 0x4b4   : > { %9348 = vst [vmem:[#allocation75_spill] sm:$0xff] %v7144_v26  ;;  %v5702_v40 = vpop.eup %5701  ;;  %3950 = vmatprep.mubr.f32.mxu1 %v9342_v15  ;;  %4111 = vmatprep.mubr.f32.mxu0 %v9342_v15  ;;  %9349 = vst [vmem:[#allocation76_spill] sm:$0xff] %v7150_v45  ;;  %v7155_v7 = vpop.f32.mrb[78].mxu0 }
 0x4b5   : > { %v7153_v51 = vmul.f32 %v5702_v40, %v6901_v16  ;;  %v2027_v9 = vpop.xlane.xlu0 %2026  ;;  %9350 = vst [vmem:[#allocation77_spill] sm:$0xff] %v7155_v7  ;;  %v7157_v58 = vpop.f32.mrb[79].mxu0 }
 0x4b6   : > { %5707 = vrcp.f32 %v2027_v9  ;;  %9351 = vst [vmem:[#allocation78_spill] sm:$0xff] %v7157_v58 }
 0x4b7   : > { %2090 = vst.msk [vmem:[%s7082_s12 + $0x18] sm:$0xff] %vm1910_vm1, %v7153_v51  ;;  %v2030_v26 = vpop.xlane.xlu1 %2029  ;;  %5255 = vmatmul.mubr.msk.f32.gmra.mrb[118].mxu1 %vm1910_vm1, %v7153_v51  ;;  %5273 = vmatmul.mubr.msk.f32.gmra.mrb[118].mxu0 %vm1910_vm1, %v7153_v51 }
 0x4b8   : > { %v5704_v45 = vpop.eup %5703  ;;  %5709 = vrcp.f32 %v2030_v26  ;;  %3956 = vmatprep.mubr.f32.mxu1 %v9342_v15  ;;  %4117 = vmatprep.mubr.f32.mxu0 %v9342_v15  ;;  %v7171_v16 = vpop.f32.mrb[80].mxu1 }
 0x4b9   : > { %v7169_v9 = vmul.f32 %v5704_v45, %v6906_v52  ;;  %9352 = vst [vmem:[#allocation79_spill] sm:$0xff] %v7171_v16  ;;  %v7173_v58 = vpop.f32.mrb[81].mxu1 }
 0x4ba   : > { %v5706_v40 = vpop.eup %5705  ;;  %9353 = vst [vmem:[#allocation80_spill] sm:$0xff] %v7173_v58  ;;  %v7185_v26 = vpop.f32.mrb[80].mxu0 }
 0x4bb   : > { %2091 = vst.msk [vmem:[%s7082_s12 + $0x20] sm:$0xff] %vm1910_vm1, %v7169_v9  ;;  %v7179_v7 = vmul.f32 %v5706_v40, %v6911_v0  ;;  %5256 = vmatmul.mubr.msk.f32.gmra.mrb[120].mxu1 %vm1910_vm1, %v7169_v9  ;;  %5274 = vmatmul.mubr.msk.f32.gmra.mrb[120].mxu0 %vm1910_vm1, %v7169_v9  ;;  %9354 = vst [vmem:[#allocation81_spill] sm:$0xff] %v7185_v26  ;;  %v7187_v52 = vpop.f32.mrb[82].mxu1  ;;  %v7191_v45 = vpop.f32.mrb[81].mxu0 }
 0x4bc   : > { %9355 = vst [vmem:[#allocation82_spill] sm:$0xff] %v7187_v52  ;;  %3962 = vmatprep.mubr.f32.mxu1 %v9342_v15  ;;  %4123 = vmatprep.mubr.f32.mxu0 %v9342_v15  ;;  %9356 = vst [vmem:[#allocation83_spill] sm:$0xff] %v7191_v45  ;;  %v7193_v58 = vpop.f32.mrb[83].mxu1  ;;  %v7198_v40 = vpop.f32.mrb[82].mxu0 }
 0x4bd   : > { %9357 = vst [vmem:[#allocation84_spill] sm:$0xff] %v7193_v58  ;;  %2092 = vst.msk [vmem:[%s7082_s12 + $0x28] sm:$0xff] %vm1910_vm1, %v7179_v7  ;;  %v2033_v0 = vpop.xlane.xlu0 %2032  ;;  %v7200_v16 = vpop.f32.mrb[83].mxu0 }
 0x4be   : > { %9358 = vst [vmem:[#allocation85_spill] sm:$0xff] %v7198_v40  ;;  %5711 = vrcp.f32 %v2033_v0  ;;  %9359 = vst [vmem:[#allocation86_spill] sm:$0xff] %v7200_v16 }
 0x4bf   : > { %v2036_v26 = vpop.xlane.xlu1 %2035  ;;  %5257 = vmatmul.mubr.msk.f32.gmra.mrb[122].mxu1 %vm1910_vm1, %v7179_v7  ;;  %5275 = vmatmul.mubr.msk.f32.gmra.mrb[122].mxu0 %vm1910_vm1, %v7179_v7 }
 0x4c0   : > { %v5708_v45 = vpop.eup %5707  ;;  %5713 = vrcp.f32 %v2036_v26  ;;  %3968 = vmatprep.mubr.f32.mxu1 %v9342_v15  ;;  %4129 = vmatprep.mubr.f32.mxu0 %v9342_v15  ;;  %v7211_v0 = vpop.f32.mrb[84].mxu1 }
 0x4c1   : > { %v7209_v58 = vmul.f32 %v5708_v45, %v6918_v13  ;;  %9360 = vst [vmem:[#allocation87_spill] sm:$0xff] %v7211_v0  ;;  %v7213_v40 = vpop.f32.mrb[85].mxu1 }
 0x4c2   : > { %v5710_v16 = vpop.eup %5709  ;;  %9361 = vst [vmem:[#allocation88_spill] sm:$0xff] %v7213_v40  ;;  %v7225_v26 = vpop.f32.mrb[84].mxu0 }
 0x4c3   : > { %2093 = vst.msk [vmem:[%s7082_s12 + $0x30] sm:$0xff] %vm1910_vm1, %v7209_v58  ;;  %v7219_v52 = vmul.f32 %v5710_v16, %v6922_v48  ;;  %5258 = vmatmul.mubr.msk.f32.gmra.mrb[124].mxu1 %vm1910_vm1, %v7209_v58  ;;  %5276 = vmatmul.mubr.msk.f32.gmra.mrb[124].mxu0 %vm1910_vm1, %v7209_v58  ;;  %9362 = vst [vmem:[#allocation89_spill] sm:$0xff] %v7225_v26  ;;  %v7227_v13 = vpop.f32.mrb[86].mxu1  ;;  %v7231_v45 = vpop.f32.mrb[85].mxu0 }
 0x4c4   : > { %9363 = vst [vmem:[#allocation90_spill] sm:$0xff] %v7227_v13  ;;  %3974 = vmatprep.mubr.f32.mxu1 %v9342_v15  ;;  %4135 = vmatprep.mubr.f32.mxu0 %v9342_v15  ;;  %9364 = vst [vmem:[#allocation91_spill] sm:$0xff] %v7231_v45  ;;  %v7233_v40 = vpop.f32.mrb[87].mxu1  ;;  %v7238_v16 = vpop.f32.mrb[86].mxu0 }
 0x4c5   : > { %9365 = vst [vmem:[#allocation92_spill] sm:$0xff] %v7233_v40  ;;  %2094 = vst.msk [vmem:[%s7082_s12 + $0x38] sm:$0xff] %vm1910_vm1, %v7219_v52  ;;  %v2039_v48 = vpop.xlane.xlu0 %2038  ;;  %v7240_v0 = vpop.f32.mrb[87].mxu0 }
 0x4c6   : > { %9366 = vst [vmem:[#allocation93_spill] sm:$0xff] %v7238_v16  ;;  %5715 = vrcp.f32 %v2039_v48  ;;  %9367 = vst [vmem:[#allocation94_spill] sm:$0xff] %v7240_v0 }
 0x4c7   : > { %v2042_v26 = vpop.xlane.xlu1 %2041  ;;  %5259 = vmatmul.mubr.msk.f32.gmra.mrb[126].mxu1 %vm1910_vm1, %v7219_v52  ;;  %5277 = vmatmul.mubr.msk.f32.gmra.mrb[126].mxu0 %vm1910_vm1, %v7219_v52 }
 0x4c8   : > { %v5712_v45 = vpop.eup %5711  ;;  %5717 = vrcp.f32 %v2042_v26  ;;  %3980 = vmatprep.mubr.f32.mxu1 %v9342_v15  ;;  %4141 = vmatprep.mubr.f32.mxu0 %v9342_v15  ;;  %v7251_v48 = vpop.f32.mrb[88].mxu1 }
 0x4c9   : > { %v7249_v40 = vmul.f32 %v5712_v45, %v6930_v31  ;;  %9368 = vst [vmem:[#allocation95_spill] sm:$0xff] %v7251_v48  ;;  %v7253_v16 = vpop.f32.mrb[89].mxu1 }
 0x4ca   : > { %v5714_v0 = vpop.eup %5713  ;;  %9369 = vst [vmem:[#allocation96_spill] sm:$0xff] %v7253_v16  ;;  %v7265_v26 = vpop.f32.mrb[88].mxu0 }
 0x4cb   : > { %2095 = vst.msk [vmem:[%s7082_s12 + $0x40] sm:$0xff] %vm1910_vm1, %v7249_v40  ;;  %v7259_v13 = vmul.f32 %v5714_v0, %v6934_v20  ;;  %5260 = vmatmul.mubr.msk.f32.gmra.mrb[128].mxu1 %vm1910_vm1, %v7249_v40  ;;  %5278 = vmatmul.mubr.msk.f32.gmra.mrb[128].mxu0 %vm1910_vm1, %v7249_v40  ;;  %9370 = vst [vmem:[#allocation97_spill] sm:$0xff] %v7265_v26  ;;  %v7267_v31 = vpop.f32.mrb[90].mxu1  ;;  %v7271_v45 = vpop.f32.mrb[89].mxu0 }
 0x4cc   : > { %9371 = vst [vmem:[#allocation98_spill] sm:$0xff] %v7267_v31  ;;  %3986 = vmatprep.mubr.f32.mxu1 %v9342_v15  ;;  %4147 = vmatprep.mubr.f32.mxu0 %v9342_v15  ;;  %9372 = vst [vmem:[#allocation99_spill] sm:$0xff] %v7271_v45  ;;  %v7273_v16 = vpop.f32.mrb[91].mxu1  ;;  %v7278_v0 = vpop.f32.mrb[90].mxu0 }
 0x4cd   : > { %9373 = vst [vmem:[#allocation100_spill] sm:$0xff] %v7273_v16  ;;  %2096 = vst.msk [vmem:[%s7082_s12 + $0x48] sm:$0xff] %vm1910_vm1, %v7259_v13  ;;  %v2045_v20 = vpop.xlane.xlu0 %2044  ;;  %v7280_v48 = vpop.f32.mrb[91].mxu0 }
 0x4ce   : > { %9374 = vst [vmem:[#allocation101_spill] sm:$0xff] %v7278_v0  ;;  %5719 = vrcp.f32 %v2045_v20  ;;  %9375 = vst [vmem:[#allocation102_spill] sm:$0xff] %v7280_v48 }
 0x4cf   : > { %v2048_v26 = vpop.xlane.xlu1 %2047  ;;  %5261 = vmatmul.mubr.msk.f32.gmra.mrb[130].mxu1 %vm1910_vm1, %v7259_v13  ;;  %5279 = vmatmul.mubr.msk.f32.gmra.mrb[130].mxu0 %vm1910_vm1, %v7259_v13 }
 0x4d0   : > { %v5716_v45 = vpop.eup %5715  ;;  %5721 = vrcp.f32 %v2048_v26  ;;  %3992 = vmatprep.mubr.f32.mxu1 %v9342_v15  ;;  %4153 = vmatprep.mubr.f32.mxu0 %v9342_v15  ;;  %v7291_v20 = vpop.f32.mrb[92].mxu1 }
 0x4d1   : > { %v7289_v16 = vmul.f32 %v5716_v45, %v6940_v61  ;;  %9376 = vst [vmem:[#allocation103_spill] sm:$0xff] %v7291_v20  ;;  %v7293_v0 = vpop.f32.mrb[93].mxu1 }
 0x4d2   : > { %v5718_v48 = vpop.eup %5717  ;;  %9377 = vst [vmem:[#allocation104_spill] sm:$0xff] %v7293_v0  ;;  %v7305_v26 = vpop.f32.mrb[92].mxu0 }
 0x4d3   : > { %2097 = vst.msk [vmem:[%s7082_s12 + $0x50] sm:$0xff] %vm1910_vm1, %v7289_v16  ;;  %v7299_v31 = vmul.f32 %v5718_v48, %v6954_v17  ;;  %5262 = vmatmul.mubr.msk.f32.gmra.mrb[132].mxu1 %vm1910_vm1, %v7289_v16  ;;  %5280 = vmatmul.mubr.msk.f32.gmra.mrb[132].mxu0 %vm1910_vm1, %v7289_v16  ;;  %9378 = vst [vmem:[#allocation105_spill] sm:$0xff] %v7305_v26  ;;  %v7307_v61 = vpop.f32.mrb[94].mxu1  ;;  %v7311_v45 = vpop.f32.mrb[93].mxu0 }
 0x4d4   : > { %9379 = vst [vmem:[#allocation106_spill] sm:$0xff] %v7307_v61  ;;  %3998 = vmatprep.mubr.f32.mxu1 %v9342_v15  ;;  %4159 = vmatprep.mubr.f32.mxu0 %v9342_v15  ;;  %9380 = vst [vmem:[#allocation107_spill] sm:$0xff] %v7311_v45  ;;  %v7313_v0 = vpop.f32.mrb[95].mxu1  ;;  %v7318_v48 = vpop.f32.mrb[94].mxu0 }
 0x4d5   : > { %9381 = vst [vmem:[#allocation108_spill] sm:$0xff] %v7313_v0  ;;  %2098 = vst.msk [vmem:[%s7082_s12 + $0x58] sm:$0xff] %vm1910_vm1, %v7299_v31  ;;  %v2051_v17 = vpop.xlane.xlu0 %2050  ;;  %v7320_v20 = vpop.f32.mrb[95].mxu0 }
 0x4d6   : > { %9382 = vst [vmem:[#allocation109_spill] sm:$0xff] %v7318_v48  ;;  %5723 = vrcp.f32 %v2051_v17  ;;  %9383 = vst [vmem:[#allocation110_spill] sm:$0xff] %v7320_v20 }
 0x4d7   : > { %v2054_v26 = vpop.xlane.xlu1 %2053  ;;  %5263 = vmatmul.mubr.msk.f32.gmra.mrb[134].mxu1 %vm1910_vm1, %v7299_v31  ;;  %5281 = vmatmul.mubr.msk.f32.gmra.mrb[134].mxu0 %vm1910_vm1, %v7299_v31 }
 0x4d8   : > { %v5720_v45 = vpop.eup %5719  ;;  %5725 = vrcp.f32 %v2054_v26  ;;  %4004 = vmatprep.mubr.f32.mxu1 %v9342_v15  ;;  %4165 = vmatprep.mubr.f32.mxu0 %v9342_v15  ;;  %v7331_v17 = vpop.f32.mrb[96].mxu1 }
 0x4d9   : > { %v7329_v0 = vmul.f32 %v5720_v45, %v6966_v30  ;;  %9384 = vst [vmem:[#allocation111_spill] sm:$0xff] %v7331_v17  ;;  %v7333_v48 = vpop.f32.mrb[97].mxu1 }
 0x4da   : > { %v5722_v20 = vpop.eup %5721  ;;  %9385 = vst [vmem:[#allocation112_spill] sm:$0xff] %v7333_v48  ;;  %v7345_v26 = vpop.f32.mrb[96].mxu0 }
 0x4db   : > { %2099 = vst.msk [vmem:[%s7082_s12 + $0x60] sm:$0xff] %vm1910_vm1, %v7329_v0  ;;  %v7339_v61 = vmul.f32 %v5722_v20, %v6970_v47  ;;  %5264 = vmatmul.mubr.msk.f32.gmra.mrb[136].mxu1 %vm1910_vm1, %v7329_v0  ;;  %5282 = vmatmul.mubr.msk.f32.gmra.mrb[136].mxu0 %vm1910_vm1, %v7329_v0  ;;  %9386 = vst [vmem:[#allocation113_spill] sm:$0xff] %v7345_v26  ;;  %v7347_v30 = vpop.f32.mrb[98].mxu1  ;;  %v7351_v45 = vpop.f32.mrb[97].mxu0 }
 0x4dc   : > { %9387 = vst [vmem:[#allocation114_spill] sm:$0xff] %v7347_v30  ;;  %4010 = vmatprep.mubr.f32.mxu1 %v9342_v15  ;;  %4171 = vmatprep.mubr.f32.mxu0 %v9342_v15  ;;  %9388 = vst [vmem:[#allocation115_spill] sm:$0xff] %v7351_v45  ;;  %v7353_v48 = vpop.f32.mrb[99].mxu1  ;;  %v7358_v47 = vpop.f32.mrb[98].mxu0 }
 0x4dd   : > { %9389 = vst [vmem:[#allocation116_spill] sm:$0xff] %v7353_v48  ;;  %2100 = vst.msk [vmem:[%s7082_s12 + $0x68] sm:$0xff] %vm1910_vm1, %v7339_v61  ;;  %v7360_v20 = vpop.f32.mrb[99].mxu0 }
 0x4de   : > { %9390 = vst [vmem:[#allocation117_spill] sm:$0xff] %v7358_v47  ;;  %9391 = vst [vmem:[#allocation118_spill] sm:$0xff] %v7360_v20 }
 0x4df   : > { %5265 = vmatmul.mubr.msk.f32.gmra.mrb[138].mxu1 %vm1910_vm1, %v7339_v61  ;;  %5283 = vmatmul.mubr.msk.f32.gmra.mrb[138].mxu0 %vm1910_vm1, %v7339_v61 }
 0x4e0   : > { %v5724_v30 = vpop.eup %5723  ;;  %4016 = vmatprep.mubr.f32.mxu1 %v9342_v15  ;;  %4177 = vmatprep.mubr.f32.mxu0 %v9342_v15  ;;  %v7371_v45 = vpop.f32.mrb[100].mxu1 }
 0x4e1   : > { %v7369_v48 = vmul.f32 %v5724_v30, %v6974_v42  ;;  %9392 = vst [vmem:[#allocation119_spill] sm:$0xff] %v7371_v45  ;;  %v7373_v26 = vpop.f32.mrb[101].mxu1 }
 0x4e2   : > { %v5726_v47 = vpop.eup %5725  ;;  %9393 = vst [vmem:[#allocation120_spill] sm:$0xff] %v7373_v26  ;;  %v7385_v17 = vpop.f32.mrb[100].mxu0 }
 0x4e3   : > { %2101 = vst.msk [vmem:[%s7082_s12 + $0x70] sm:$0xff] %vm1910_vm1, %v7369_v48  ;;  %v7379_v20 = vmul.f32 %v5726_v47, %v6978_v1  ;;  %5266 = vmatmul.mubr.msk.f32.gmra.mrb[140].mxu1 %vm1910_vm1, %v7369_v48  ;;  %5284 = vmatmul.mubr.msk.f32.gmra.mrb[140].mxu0 %vm1910_vm1, %v7369_v48  ;;  %9394 = vst [vmem:[#allocation121_spill] sm:$0xff] %v7385_v17  ;;  %v7387_v42 = vpop.f32.mrb[102].mxu1  ;;  %v7391_v30 = vpop.f32.mrb[101].mxu0 }
 0x4e4   : > { %9395 = vst [vmem:[#allocation122_spill] sm:$0xff] %v7387_v42  ;;  %4022 = vmatprep.mubr.f32.mxu1 %v9342_v15  ;;  %4183 = vmatprep.mubr.f32.mxu0 %v9342_v15  ;;  %9396 = vst [vmem:[#allocation123_spill] sm:$0xff] %v7391_v30  ;;  %v7393_v26 = vpop.f32.mrb[103].mxu1  ;;  %v7398_v1 = vpop.f32.mrb[102].mxu0 }
 0x4e5   : > { %9397 = vst [vmem:[#allocation124_spill] sm:$0xff] %v7393_v26  ;;  %2102 = vst.msk [vmem:[%s7082_s12 + $0x78] sm:$0xff] %vm1910_vm1, %v7379_v20  ;;  %v7400_v47 = vpop.f32.mrb[103].mxu0 }
 0x4e6   : > { %9398 = vst [vmem:[#allocation125_spill] sm:$0xff] %v7398_v1  ;;  %9399 = vst [vmem:[#allocation126_spill] sm:$0xff] %v7400_v47 }
 0x4e7   : > { %5267 = vmatmul.mubr.msk.f32.gmra.mrb[142].mxu1 %vm1910_vm1, %v7379_v20  ;;  %5285 = vmatmul.mubr.msk.f32.gmra.mrb[142].mxu0 %vm1910_vm1, %v7379_v20 }
 0x4e8   : > { %4254 = vmatprep.mubr.f32.mxu1 %v9342_v15  ;;  %4415 = vmatprep.mubr.f32.mxu0 %v9342_v15  ;;  %v7408_v30 = vpop.f32.mrb[104].mxu1 }
 0x4e9   : > { %9400 = vst [vmem:[#allocation127_spill] sm:$0xff] %v7408_v30  ;;  %v7410_v26 = vpop.f32.mrb[105].mxu1 }
 0x4ea   : > { %9401 = vst [vmem:[#allocation128_spill] sm:$0xff] %v7410_v26  ;;  %v7416_v47 = vpop.f32.mrb[104].mxu0  ;;  %v7418_v1 = vpop.f32.mrb[106].mxu1 }
 0x4eb   : > { %5288 = vmatmul.mubr.msk.f32.vlgmr.msra.gmra.mrb[144].mxu1 %vm1910_vm1, %v7085_v55  ;;  %5306 = vmatmul.mubr.msk.f32.vlgmr.msra.gmra.mrb[144].mxu0 %vm1910_vm1, %v7085_v55  ;;  %9402 = vst [vmem:[#allocation129_spill] sm:$0xff] %v7416_v47  ;;  %9403 = vst [vmem:[#allocation130_spill] sm:$0xff] %v7418_v1  ;;  %v7422_v42 = vpop.f32.mrb[105].mxu0  ;;  %v7424_v17 = vpop.f32.mrb[107].mxu1 }
 0x4ec   : > { %4260 = vmatprep.mubr.f32.mxu1 %v9342_v15  ;;  %4421 = vmatprep.mubr.f32.mxu0 %v9342_v15  ;;  %9404 = vst [vmem:[#allocation131_spill] sm:$0xff] %v7422_v42  ;;  %9405 = vst [vmem:[#allocation132_spill] sm:$0xff] %v7424_v17  ;;  %v7426_v30 = vpop.f32.mrb[106].mxu0  ;;  %v9435_v42 = vld [vmem:[#allocation53_spill] sm:$0xff] }
 0x4ed   : > { %9406 = vst [vmem:[#allocation133_spill] sm:$0xff] %v7426_v30  ;;  %v7428_v26 = vpop.f32.mrb[107].mxu0 }
 0x4ee   : > { %9407 = vst [vmem:[#allocation134_spill] sm:$0xff] %v7428_v26 }
 0x4ef   : > { %5289 = vmatmul.mubr.msk.f32.gmra.mrb[146].mxu1 %vm1910_vm1, %v7111_v10  ;;  %5307 = vmatmul.mubr.msk.f32.gmra.mrb[146].mxu0 %vm1910_vm1, %v7111_v10 }
 0x4f0   : > { %4266 = vmatprep.mubr.f32.mxu1 %v9342_v15  ;;  %4427 = vmatprep.mubr.f32.mxu0 %v9342_v15  ;;  %v7436_v55 = vpop.f32.mrb[108].mxu1 }
 0x4f1   : > { %9408 = vst [vmem:[#allocation135_spill] sm:$0xff] %v7436_v55  ;;  %v7438_v1 = vpop.f32.mrb[109].mxu1 }
 0x4f2   : > { %9409 = vst [vmem:[#allocation136_spill] sm:$0xff] %v7438_v1  ;;  %v7444_v26 = vpop.f32.mrb[108].mxu0  ;;  %v7446_v30 = vpop.f32.mrb[110].mxu1 }
 0x4f3   : > { %5290 = vmatmul.mubr.msk.f32.gmra.mrb[148].mxu1 %vm1910_vm1, %v7129_v53  ;;  %5308 = vmatmul.mubr.msk.f32.gmra.mrb[148].mxu0 %vm1910_vm1, %v7129_v53  ;;  %9410 = vst [vmem:[#allocation137_spill] sm:$0xff] %v7444_v26  ;;  %9411 = vst [vmem:[#allocation138_spill] sm:$0xff] %v7446_v30  ;;  %v7450_v10 = vpop.f32.mrb[109].mxu0  ;;  %v7452_v17 = vpop.f32.mrb[111].mxu1 }
 0x4f4   : > { %4272 = vmatprep.mubr.f32.mxu1 %v9342_v15  ;;  %4433 = vmatprep.mubr.f32.mxu0 %v9342_v15  ;;  %9412 = vst [vmem:[#allocation139_spill] sm:$0xff] %v7450_v10  ;;  %9413 = vst [vmem:[#allocation140_spill] sm:$0xff] %v7452_v17  ;;  %v7454_v55 = vpop.f32.mrb[110].mxu0 }
 0x4f5   : > { %9414 = vst [vmem:[#allocation141_spill] sm:$0xff] %v7454_v55  ;;  %v7456_v1 = vpop.f32.mrb[111].mxu0 }
 0x4f6   : > { %9415 = vst [vmem:[#allocation142_spill] sm:$0xff] %v7456_v1 }
 0x4f7   : > { %5291 = vmatmul.mubr.msk.f32.gmra.mrb[150].mxu1 %vm1910_vm1, %v7153_v51  ;;  %5309 = vmatmul.mubr.msk.f32.gmra.mrb[150].mxu0 %vm1910_vm1, %v7153_v51  ;;  %v7546_v51 = vld [vmem:[%s9417_s9] sm:$0xff]  ;;  %s5864_s9 = scalar_lea.vmem %s5863_s15, 8192 }
 0x4f8   : > { %4278 = vmatprep.mubr.f32.mxu1 %v9342_v15  ;;  %4439 = vmatprep.mubr.f32.mxu0 %v9342_v15 }
 0x4fb   : > { %5292 = vmatmul.mubr.msk.f32.gmra.mrb[152].mxu1 %vm1910_vm1, %v7169_v9  ;;  %5310 = vmatmul.mubr.msk.f32.gmra.mrb[152].mxu0 %vm1910_vm1, %v7169_v9  ;;  %v7556_v9 = vrot.slane %v7546_v51, %v6348_v33 }
 0x4fc   : > { %4284 = vmatprep.mubr.f32.mxu1 %v9342_v15  ;;  %4445 = vmatprep.mubr.f32.mxu0 %v9342_v15 }
 0x4ff   : > { %5293 = vmatmul.mubr.msk.f32.gmra.mrb[154].mxu1 %vm1910_vm1, %v7179_v7  ;;  %5311 = vmatmul.mubr.msk.f32.gmra.mrb[154].mxu0 %vm1910_vm1, %v7179_v7  ;;  %v7537_v7 = vld [vmem:[%s9416_s26] sm:$0xff]  ;;  %s5858_s26 = scalar_lea.vmem %s8120_s27, 4096 }
 0x500   : > { %4290 = vmatprep.mubr.f32.mxu1 %v9342_v15  ;;  %4451 = vmatprep.mubr.f32.mxu0 %v9342_v15  ;;  %v7541_v53 = vrot.slane %v7537_v7, %v6348_v33  ;;  %p5859_p3 = scmp.ne.s32.totalorder %s8120_s27, %s5858_s26  ;;  %p5866_p2 = scmp.lt.s32.totalorder %s5864_s9, %s5858_s26 }
 0x502   : > { %p5860_p7 = pnand %p5859_p3, %p6215_p5  ;;  %p5867_p4 = por %p5866_p2, %p5865_p1 }
 0x503   : > { %5294 = vmatmul.mubr.msk.f32.gmra.mrb[156].mxu1 %vm1910_vm1, %v7209_v58  ;;  %5312 = vmatmul.mubr.msk.f32.gmra.mrb[156].mxu0 %vm1910_vm1, %v7209_v58  ;;  %v2948_v58 = vadd.f32 %v6982_v43, %v7541_v53  ;;  %v2958_v43 = vadd.f32 %v6990_v50, %v7541_v53 }
 0x504   : > { %4296 = vmatprep.mubr.f32.mxu1 %v9342_v15  ;;  %4457 = vmatprep.mubr.f32.mxu0 %v9342_v15  ;;  %p5861_p12 = pneg %p5860_p7 }
 0x505   : > { %v3551_v50 = vmul.f32 %v7556_v9, %v2958_v43  ;;  %vm3381_vm6 = vcmp.gt.f32.partialorder %v2958_v43, 0.0 }
 0x506   : > { %p5868_p9 = pnand %p5867_p4, %p5861_p12 }
 0x507   : > { %5295 = vmatmul.mubr.msk.f32.gmra.mrb[158].mxu1 %vm1910_vm1, %v7219_v52  ;;  %5313 = vmatmul.mubr.msk.f32.gmra.mrb[158].mxu0 %vm1910_vm1, %v7219_v52  ;;  %v7609_v30 = vsel %vm3381_vm6, %v2958_v43, %v3551_v50 }
 0x508   : > { %4302 = vmatprep.mubr.f32.mxu1 %v9342_v15  ;;  %4463 = vmatprep.mubr.f32.mxu0 %v9342_v15 }
 0x50b   : > { %5296 = vmatmul.mubr.msk.f32.gmra.mrb[160].mxu1 %vm1910_vm1, %v7249_v40  ;;  %5314 = vmatmul.mubr.msk.f32.gmra.mrb[160].mxu0 %vm1910_vm1, %v7249_v40  ;;  %v7562_v40 = vrot.slane %v7546_v51, %v6354_v35 }
 0x50c   : > { %4308 = vmatprep.mubr.f32.mxu1 %v9342_v15  ;;  %4469 = vmatprep.mubr.f32.mxu0 %v9342_v15 }
 0x50f   : > { %5297 = vmatmul.mubr.msk.f32.gmra.mrb[162].mxu1 %vm1910_vm1, %v7259_v13  ;;  %5315 = vmatmul.mubr.msk.f32.gmra.mrb[162].mxu0 %vm1910_vm1, %v7259_v13  ;;  %v2952_v13 = vadd.f32 %v6986_v3, %v7541_v53 }
 0x510   : > { %4314 = vmatprep.mubr.f32.mxu1 %v9342_v15  ;;  %4475 = vmatprep.mubr.f32.mxu0 %v9342_v15 }
 0x511   : > { %v3543_v3 = vmul.f32 %v7556_v9, %v2952_v13  ;;  %vm3373_vm4 = vcmp.gt.f32.partialorder %v2952_v13, 0.0 }
 0x513   : > { %5298 = vmatmul.mubr.msk.f32.gmra.mrb[164].mxu1 %vm1910_vm1, %v7289_v16  ;;  %5316 = vmatmul.mubr.msk.f32.gmra.mrb[164].mxu0 %vm1910_vm1, %v7289_v16  ;;  %v7599_v17 = vsel %vm3373_vm4, %v2952_v13, %v3543_v3 }
 0x514   : > { %4320 = vmatprep.mubr.f32.mxu1 %v9342_v15  ;;  %4481 = vmatprep.mubr.f32.mxu0 %v9342_v15 }
 0x517   : > { %5299 = vmatmul.mubr.msk.f32.gmra.mrb[166].mxu1 %vm1910_vm1, %v7299_v31  ;;  %5317 = vmatmul.mubr.msk.f32.gmra.mrb[166].mxu0 %vm1910_vm1, %v7299_v31  ;;  %v2962_v31 = vadd.f32 %v6994_v23, %v7541_v53 }
 0x518   : > { %4326 = vmatprep.mubr.f32.mxu1 %v9342_v15  ;;  %4487 = vmatprep.mubr.f32.mxu0 %v9342_v15 }
 0x519   : > { %v3559_v23 = vmul.f32 %v7556_v9, %v2962_v31  ;;  %vm3389_vm8 = vcmp.gt.f32.partialorder %v2962_v31, 0.0 }
 0x51b   : > { %5300 = vmatmul.mubr.msk.f32.gmra.mrb[168].mxu1 %vm1910_vm1, %v7329_v0  ;;  %5318 = vmatmul.mubr.msk.f32.gmra.mrb[168].mxu0 %vm1910_vm1, %v7329_v0 }
 0x51c   : > { %4332 = vmatprep.mubr.f32.mxu1 %v9342_v15  ;;  %4493 = vmatprep.mubr.f32.mxu0 %v9342_v15 }
 0x51f   : > { %5301 = vmatmul.mubr.msk.f32.gmra.mrb[170].mxu1 %vm1910_vm1, %v7339_v61  ;;  %5319 = vmatmul.mubr.msk.f32.gmra.mrb[170].mxu0 %vm1910_vm1, %v7339_v61 }
 0x520   : > { %4338 = vmatprep.mubr.f32.mxu1 %v9342_v15  ;;  %4499 = vmatprep.mubr.f32.mxu0 %v9342_v15 }
 0x523   : > { %5302 = vmatmul.mubr.msk.f32.gmra.mrb[172].mxu1 %vm1910_vm1, %v7369_v48  ;;  %5320 = vmatmul.mubr.msk.f32.gmra.mrb[172].mxu0 %vm1910_vm1, %v7369_v48 }
 0x524   : > { %4344 = vmatprep.mubr.f32.mxu1 %v9342_v15  ;;  %4505 = vmatprep.mubr.f32.mxu0 %v9342_v15  ;;  %v7550_v15 = vrot.slane %v7537_v7, %v6354_v35  ;;  %v3535_v35 = vmul.f32 %v7556_v9, %v2948_v58 }
 0x526   : > { %v2950_v52 = vadd.f32 %v6984_v36, %v7550_v15  ;;  %v2954_v16 = vadd.f32 %v6988_v18, %v7550_v15  ;;  %v2960_v33 = vadd.f32 %v6992_v11, %v7550_v15  ;;  %v2964_v36 = vadd.f32 %v6996_v14, %v7550_v15 }
 0x527   : > { %5303 = vmatmul.mubr.msk.f32.gmra.mrb[174].mxu1 %vm1910_vm1, %v7379_v20  ;;  %5321 = vmatmul.mubr.msk.f32.gmra.mrb[174].mxu0 %vm1910_vm1, %v7379_v20  ;;  %vm3365_vm1 = vcmp.gt.f32.partialorder %v2948_v58, 0.0  ;;  %v2968_v14 = vadd.f32 %v6998_v8, %v7541_v53  ;;  %v2970_v48 = vadd.f32 %v7000_v57, %v7550_v15  ;;  %v2972_v20 = vadd.f32 %v7002_v38, %v7541_v53 }
 0x528   : > { %v3536_v0 = vmul.f32 %v7562_v40, %v2950_v52  ;;  %v3544_v18 = vmul.f32 %v7562_v40, %v2954_v16  ;;  %vm3366_vm3 = vcmp.gt.f32.partialorder %v2950_v52, 0.0  ;;  %vm3374_vm5 = vcmp.gt.f32.partialorder %v2954_v16, 0.0 }
 0x529   : > { %v3552_v11 = vmul.f32 %v7562_v40, %v2960_v33  ;;  %v3560_v61 = vmul.f32 %v7562_v40, %v2964_v36  ;;  %vm3382_vm7 = vcmp.gt.f32.partialorder %v2960_v33, 0.0  ;;  %v2974_v1 = vadd.f32 %v7004_v46, %v7550_v15 }
 0x52a   : > { %vm3390_vm9 = vcmp.gt.f32.partialorder %v2964_v36, 0.0  ;;  %v7593_v55 = vsel %vm3365_vm1, %v2948_v58, %v3535_v35  ;;  %v7596_v8 = vsel %vm3366_vm3, %v2950_v52, %v3536_v0  ;;  %v7602_v10 = vsel %vm3374_vm5, %v2954_v16, %v3544_v18 }
 0x52b   : > { %v3567_v57 = vmul.f32 %v7556_v9, %v2968_v14  ;;  %v2978_v38 = vadd.f32 %v7006_v24, %v7541_v53  ;;  %v2980_v46 = vadd.f32 %v7008_v39, %v7550_v15  ;;  %v7611_v58 = vsel %vm3382_vm7, %v2960_v33, %v3552_v11 }
 0x52c   : > { %v7613_v52 = vsel %vm3389_vm8, %v2962_v31, %v3559_v23  ;;  %v7615_v35 = vsel %vm3390_vm9, %v2964_v36, %v3560_v61  ;;  %vm3397_vm10 = vcmp.gt.f32.partialorder %v2968_v14, 0.0  ;;  %v3568_v13 = vmul.f32 %v7562_v40, %v2970_v48 }
 0x52d   : > { %v3575_v16 = vmul.f32 %v7556_v9, %v2972_v20  ;;  %v3576_v0 = vmul.f32 %v7562_v40, %v2974_v1  ;;  %vm3398_vm11 = vcmp.gt.f32.partialorder %v2970_v48, 0.0  ;;  %v2982_v24 = vadd.f32 %v7010_v59, %v7541_v53 }
 0x52e   : > { %v2984_v39 = vadd.f32 %v7012_v2, %v7550_v15  ;;  %vm3405_vm12 = vcmp.gt.f32.partialorder %v2972_v20, 0.0  ;;  %vm3406_vm13 = vcmp.gt.f32.partialorder %v2974_v1, 0.0  ;;  %v3583_v43 = vmul.f32 %v7556_v9, %v2978_v38 }
 0x52f   : > { %v3584_v33 = vmul.f32 %v7562_v40, %v2980_v46  ;;  %v7626_v31 = vsel %vm3397_vm10, %v2968_v14, %v3567_v57  ;;  %vm3413_vm14 = vcmp.gt.f32.partialorder %v2978_v38, 0.0  ;;  %v2988_v36 = vadd.f32 %v7014_v5, %v7541_v53 }
 0x530   : > { %v2990_v3 = vadd.f32 %v7016_v25, %v7550_v15  ;;  %v2992_v59 = vadd.f32 %v7018_v22, %v7541_v53  ;;  %vm3414_vm15 = vcmp.gt.f32.partialorder %v2980_v46, 0.0  ;;  %v2994_v2 = vadd.f32 %v7020_v49, %v7550_v15 }
 0x531   : > { %v7636_v18 = vsel %vm3398_vm11, %v2970_v48, %v3568_v13  ;;  %v7638_v50 = vsel %vm3405_vm12, %v2972_v20, %v3575_v16  ;;  %v7640_v11 = vsel %vm3406_vm13, %v2974_v1, %v3576_v0  ;;  %v3591_v23 = vmul.f32 %v7556_v9, %v2982_v24 }
 0x532   : > { %9418 = vst [vmem:[#allocation143_spill] sm:$0xff] %v7638_v50  ;;  %9419 = vst [vmem:[#allocation144_spill] sm:$0xff] %v7640_v11  ;;  %v3592_v5 = vmul.f32 %v7562_v40, %v2984_v39  ;;  %v2998_v25 = vadd.f32 %v7022_v21, %v7541_v53  ;;  %v3000_v22 = vadd.f32 %v7024_v34, %v7550_v15  ;;  %vm3421_vm0 = vcmp.gt.f32.partialorder %v2982_v24, 0.0 }
 0x533   : > { %v7648_v14 = vsel %vm3413_vm14, %v2978_v38, %v3583_v43  ;;  %v7650_v61 = vsel %vm3414_vm15, %v2980_v46, %v3584_v33  ;;  %vm3422_vm2 = vcmp.gt.f32.partialorder %v2984_v39, 0.0  ;;  %v3599_v49 = vmul.f32 %v7556_v9, %v2988_v36 }
 0x534   : > { %9420 = vst [vmem:[#allocation145_spill] sm:$0xff] %v7648_v14  ;;  %9421 = vst [vmem:[#allocation146_spill] sm:$0xff] %v7650_v61  ;;  %v3600_v1 = vmul.f32 %v7562_v40, %v2990_v3  ;;  %v3607_v48 = vmul.f32 %v7556_v9, %v2992_v59  ;;  %v3002_v20 = vadd.f32 %v7026_v4, %v7541_v53  ;;  %vm3429_vm1 = vcmp.gt.f32.partialorder %v2988_v36, 0.0 }
 0x535   : > { %v3608_v21 = vmul.f32 %v7562_v40, %v2994_v2  ;;  %vm3430_vm3 = vcmp.gt.f32.partialorder %v2990_v3, 0.0  ;;  %vm3437_vm4 = vcmp.gt.f32.partialorder %v2992_v59, 0.0  ;;  %v3615_v34 = vmul.f32 %v7556_v9, %v2998_v25 }
 0x536   : > { %v3616_v57 = vmul.f32 %v7562_v40, %v3000_v22  ;;  %v3004_v38 = vadd.f32 %v7028_v62, %v7550_v15  ;;  %vm3438_vm5 = vcmp.gt.f32.partialorder %v2994_v2, 0.0  ;;  %v7662_v46 = vsel %vm3421_vm0, %v2982_v24, %v3591_v23 }
 0x537   : > { %9422 = vst [vmem:[#allocation147_spill] sm:$0xff] %v7662_v46  ;;  %v7664_v13 = vsel %vm3422_vm2, %v2984_v39, %v3592_v5  ;;  %vm3445_vm6 = vcmp.gt.f32.partialorder %v2998_v25, 0.0  ;;  %vm3446_vm7 = vcmp.gt.f32.partialorder %v3000_v22, 0.0  ;;  %v3623_v4 = vmul.f32 %v7556_v9, %v3002_v20 }
 0x538   : > { %9423 = vst [vmem:[#allocation148_spill] sm:$0xff] %v7664_v13  ;;  %v3008_v16 = vadd.f32 %v7030_v41, %v7541_v53  ;;  %v3010_v0 = vadd.f32 %v7032_v12, %v7550_v15  ;;  %v7671_v43 = vsel %vm3429_vm1, %v2988_v36, %v3599_v49  ;;  %v7673_v33 = vsel %vm3430_vm3, %v2990_v3, %v3600_v1  ;;  %v9457_v13 = vld [vmem:[#allocation67_spill] sm:$0xff] }
 0x539   : > { %9424 = vst [vmem:[#allocation149_spill] sm:$0xff] %v7671_v43  ;;  %9425 = vst [vmem:[#allocation150_spill] sm:$0xff] %v7673_v33  ;;  %v7675_v62 = vsel %vm3437_vm4, %v2992_v59, %v3607_v48  ;;  %v7677_v24 = vsel %vm3438_vm5, %v2994_v2, %v3608_v21  ;;  %vm3453_vm8 = vcmp.gt.f32.partialorder %v3002_v20, 0.0  ;;  %v3624_v39 = vmul.f32 %v7562_v40, %v3004_v38 }
 0x53a   : > { %9426 = vst [vmem:[#allocation151_spill] sm:$0xff] %v7675_v62  ;;  %9427 = vst [vmem:[#allocation152_spill] sm:$0xff] %v7677_v24  ;;  %v7680_v23 = vsel %vm3445_vm6, %v2998_v25, %v3615_v34  ;;  %v7682_v5 = vsel %vm3446_vm7, %v3000_v22, %v3616_v57  ;;  %vm3454_vm9 = vcmp.gt.f32.partialorder %v3004_v38, 0.0  ;;  %v3012_v41 = vadd.f32 %v7034_v6, %v7541_v53 }
 0x53b   : > { %9428 = vst [vmem:[#allocation153_spill] sm:$0xff] %v7680_v23  ;;  %9429 = vst [vmem:[#allocation154_spill] sm:$0xff] %v7682_v5  ;;  %v3014_v12 = vadd.f32 %v7036_v44, %v7550_v15  ;;  %v2251_v36 = vsub.s32 4, %v6345_v32  ;;  %v2255_v3 = vsub.s32 5, %v6345_v32  ;;  %v3631_v59 = vmul.f32 %v7556_v9, %v3008_v16 }
 0x53c   : > { %v3632_v2 = vmul.f32 %v7562_v40, %v3010_v0  ;;  %v2243_v25 = vsub.s32 2, %v6345_v32  ;;  %v7693_v49 = vsel %vm3453_vm8, %v3002_v20, %v3623_v4  ;;  %v3018_v22 = vadd.f32 %v7038_v19, %v7541_v53 }
 0x53d   : > { %9430 = vst [vmem:[#allocation155_spill] sm:$0xff] %v7693_v49  ;;  %v3020_v6 = vadd.f32 %v7040_v54, %v7550_v15  ;;  %v2247_v44 = vsub.s32 3, %v6345_v32  ;;  %vm3461_vm10 = vcmp.gt.f32.partialorder %v3008_v16, 0.0  ;;  %v3022_v1 = vadd.f32 %v7042_v27, %v7541_v53 }
 0x53e   : > { %v3024_v48 = vadd.f32 %v7044_v29, %v7550_v15  ;;  %v7704_v21 = vsel %vm3454_vm9, %v3004_v38, %v3624_v39  ;;  %vm3462_vm11 = vcmp.gt.f32.partialorder %v3010_v0, 0.0  ;;  %v3639_v20 = vmul.f32 %v7556_v9, %v3012_v41 }
 0x53f   : > { %9431 = vst [vmem:[#allocation156_spill] sm:$0xff] %v7704_v21  ;;  %v3640_v34 = vmul.f32 %v7562_v40, %v3014_v12  ;;  %v7709_v19 = vrot.slane %v7537_v7, %v2251_v36  ;;  %v7712_v54 = vrot.slane %v7537_v7, %v2255_v3  ;;  %v7715_v57 = vrot.slane %v7537_v7, %v2243_v25 }
 0x540   : > { %v7717_v27 = vsel %vm3461_vm10, %v3008_v16, %v3631_v59  ;;  %vm3469_vm12 = vcmp.gt.f32.partialorder %v3012_v41, 0.0  ;;  %vm3470_vm13 = vcmp.gt.f32.partialorder %v3014_v12, 0.0  ;;  %v3647_v29 = vmul.f32 %v7556_v9, %v3018_v22  ;;  %v9434_v16 = vld [vmem:[#allocation52_spill] sm:$0xff] }
 0x541   : > { %9432 = vst [vmem:[#allocation157_spill] sm:$0xff] %v7717_v27  ;;  %v3648_v53 = vmul.f32 %v7562_v40, %v3020_v6  ;;  %v7722_v15 = vrot.slane %v7537_v7, %v2247_v44  ;;  %v7724_v38 = vsel %vm3462_vm11, %v3010_v0, %v3632_v2  ;;  %v3655_v4 = vmul.f32 %v7556_v9, %v3022_v1  ;;  %v9436_v0 = vld [vmem:[#allocation54_spill] sm:$0xff] }
 0x542   : > { %9433 = vst [vmem:[#allocation158_spill] sm:$0xff] %v7724_v38  ;;  %v3656_v39 = vmul.f32 %v7562_v40, %v3024_v48  ;;  %vm3477_vm14 = vcmp.gt.f32.partialorder %v3018_v22, 0.0  ;;  %vm3478_vm15 = vcmp.gt.f32.partialorder %v3020_v6, 0.0  ;;  %v3174_v59 = vadd.f32 %v9434_v16, %v7709_v19  ;;  %v9437_v40 = vld [vmem:[#allocation55_spill] sm:$0xff] }
 0x543   : > { %v7731_v26 = vrot.slane %v7546_v51, %v2251_v36  ;;  %v3176_v47 = vadd.f32 %v9435_v42, %v7712_v54  ;;  %v7736_v27 = vrot.slane %v7546_v51, %v2255_v3  ;;  %v3061_v2 = vadd.f32 %v9436_v0, %v7715_v57  ;;  %v9438_v36 = vld [vmem:[#allocation56_spill] sm:$0xff]  ;;  %v9439_v42 = vld [vmem:[#allocation57_spill] sm:$0xff]  ;;  %v9440_v0 = vld [vmem:[#allocation58_spill] sm:$0xff] }
 0x544   : > { %v7741_v9 = vrot.slane %v7546_v51, %v2243_v25  ;;  %v7745_v38 = vadd.f32 %v9437_v40, %v7709_v19  ;;  %vm3485_vm0 = vcmp.gt.f32.partialorder %v3022_v1, 0.0  ;;  %v3063_v16 = vadd.f32 %v9438_v36, %v7722_v15 }
 0x545   : > { %v7750_v21 = vrot.slane %v7546_v51, %v2247_v44  ;;  %v7754_v3 = vadd.f32 %v9439_v42, %v7712_v54  ;;  %vm3486_vm2 = vcmp.gt.f32.partialorder %v3024_v48, 0.0  ;;  %v3065_v25 = vadd.f32 %v9440_v0, %v7715_v57 }
 0x546   : > { %v7759_v45 = vsel %vm3469_vm12, %v3012_v41, %v3639_v20  ;;  %v7762_v40 = vsel %vm3470_vm13, %v3014_v12, %v3640_v34  ;;  %v7765_v49 = vsel %vm3477_vm14, %v3018_v22, %v3647_v29  ;;  %v3539_v44 = vmul.f32 %v7731_v26, %v3174_v59  ;;  %v9446_v12 = vld [vmem:[#allocation59_spill] sm:$0xff] }
 0x547   : > { %9441 = vst [vmem:[#allocation52_spill] sm:$0xff] %v7759_v45  ;;  %9442 = vst [vmem:[#allocation53_spill] sm:$0xff] %v7762_v40  ;;  %v3540_v36 = vmul.f32 %v7736_v27, %v3176_v47  ;;  %v7770_v42 = vsel %vm3478_vm15, %v3020_v6, %v3648_v53  ;;  %v7772_v5 = vsel %vm3485_vm0, %v3022_v1, %v3655_v4  ;;  %vm3369_vm1 = vcmp.gt.f32.partialorder %v3174_v59, 0.0  ;;  %v9448_v4 = vld [vmem:[#allocation60_spill] sm:$0xff] }
 0x548   : > { %9443 = vst [vmem:[#allocation54_spill] sm:$0xff] %v7765_v49  ;;  %9444 = vst [vmem:[#allocation55_spill] sm:$0xff] %v7770_v42  ;;  %v3537_v0 = vmul.f32 %v7741_v9, %v3061_v2  ;;  %v7777_v41 = vmul.f32 %v7731_v26, %v7745_v38  ;;  %v3067_v20 = vadd.f32 %v9446_v12, %v7722_v15  ;;  %vm3367_vm3 = vcmp.gt.f32.partialorder %v3061_v2, 0.0  ;;  %v9449_v12 = vld [vmem:[#allocation61_spill] sm:$0xff]  ;;  %v9451_v42 = vld [vmem:[#allocation63_spill] sm:$0xff] }
 0x549   : > { %9445 = vst [vmem:[#allocation56_spill] sm:$0xff] %v7772_v5  ;;  %v7781_v22 = vsel %vm3486_vm2, %v3024_v48, %v3656_v39  ;;  %v3538_v34 = vmul.f32 %v7750_v21, %v3063_v16  ;;  %v7786_v29 = vmul.f32 %v7736_v27, %v7754_v3  ;;  %v7790_v6 = vadd.f32 %v7063_v60, %v7709_v19  ;;  %v9450_v5 = vld [vmem:[#allocation62_spill] sm:$0xff] }
 0x54a   : > { %9447 = vst [vmem:[#allocation57_spill] sm:$0xff] %v7781_v22  ;;  %v3545_v1 = vmul.f32 %v7741_v9, %v3065_v25  ;;  %v7795_v53 = vadd.f32 %v7065_v28, %v7712_v54  ;;  %vm3368_vm4 = vcmp.gt.f32.partialorder %v3063_v16, 0.0  ;;  %v3071_v48 = vadd.f32 %v7067_v37, %v7715_v57 }
 0x54b   : > { %v7801_v39 = vadd.f32 %v9448_v4, %v7709_v19  ;;  %vm3375_vm5 = vcmp.gt.f32.partialorder %v3065_v25, 0.0  ;;  %vm3370_vm6 = vcmp.gt.f32.partialorder %v3176_v47, 0.0  ;;  %v3546_v60 = vmul.f32 %v7750_v21, %v3067_v20 }
 0x54c   : > { %v3073_v22 = vadd.f32 %v9449_v12, %v7722_v15  ;;  %v7808_v28 = vadd.f32 %v9450_v5, %v7712_v54  ;;  %v3075_v49 = vadd.f32 %v9451_v42, %v7715_v57  ;;  %v7814_v37 = vmul.f32 %v7731_v26, %v7790_v6  ;;  %v9453_v5 = vld [vmem:[#allocation64_spill] sm:$0xff] }
 0x54d   : > { %v7816_v4 = vsel %vm3367_vm3, %v3061_v2, %v3537_v0  ;;  %v7818_v40 = vsel %vm3368_vm4, %v3063_v16, %v3538_v34  ;;  %v7821_v45 = vsel %vm3369_vm1, %v3174_v59, %v3539_v44  ;;  %v7825_v12 = vmul.f32 %v7736_v27, %v7795_v53  ;;  %v9454_v34 = vld [vmem:[#allocation65_spill] sm:$0xff] }
 0x54e   : > { %9452 = vst [vmem:[#allocation58_spill] sm:$0xff] %v7821_v45  ;;  %v3077_v23 = vadd.f32 %v9453_v5, %v7722_v15  ;;  %v7829_v24 = vsel %vm3375_vm5, %v3065_v25, %v3545_v1  ;;  %vm3376_vm7 = vcmp.gt.f32.partialorder %v3067_v20, 0.0  ;;  %v3553_v42 = vmul.f32 %v7741_v9, %v3071_v48  ;;  %v9455_v5 = vld [vmem:[#allocation66_spill] sm:$0xff] }
 0x54f   : > { %v7834_v2 = vmul.f32 %v7731_v26, %v7801_v39  ;;  %v2259_v16 = vsub.s32 6, %v6345_v32  ;;  %v2263_v59 = vsub.s32 7, %v6345_v32  ;;  %v3554_v44 = vmul.f32 %v7750_v21, %v3073_v22 }
 0x550   : > { %v7841_v0 = vmul.f32 %v7736_v27, %v7808_v28  ;;  %v3561_v25 = vmul.f32 %v7741_v9, %v3075_v49  ;;  %v7846_v1 = vadd.f32 %v9454_v34, %v7709_v19  ;;  %v7850_v45 = vadd.f32 %v9455_v5, %v7712_v54  ;;  %v9459_v34 = vld [vmem:[#allocation68_spill] sm:$0xff]  ;;  %v9460_v5 = vld [vmem:[#allocation69_spill] sm:$0xff] }
 0x551   : > { %v3081_v62 = vadd.f32 %v7098_v56, %v7715_v57  ;;  %v7854_v32 = vsel %vm3376_vm7, %v3067_v20, %v3546_v60  ;;  %v7857_v33 = vsel %vm3370_vm6, %v3176_v47, %v3540_v36  ;;  %v3562_v43 = vmul.f32 %v7750_v21, %v3077_v23 }
 0x552   : > { %9456 = vst [vmem:[#allocation59_spill] sm:$0xff] %v7857_v33  ;;  %v7862_v46 = vadd.f32 %v9457_v13, %v7709_v19  ;;  %v3083_v61 = vadd.f32 %v9459_v34, %v7722_v15  ;;  %v7868_v14 = vadd.f32 %v9460_v5, %v7712_v54  ;;  %v7871_v56 = vrot.slane %v7537_v7, %v2259_v16  ;;  %v9468_v34 = vld [vmem:[#allocation70_spill] sm:$0xff]  ;;  %v9471_v33 = vld [vmem:[#allocation71_spill] sm:$0xff] }
 0x553   : > { %v7874_v20 = vrot.slane %v7546_v51, %v2259_v16  ;;  %v7877_v47 = vrot.slane %v7537_v7, %v2263_v59  ;;  %v7880_v36 = vrot.slane %v7546_v51, %v2263_v59  ;;  %v7884_v13 = vmul.f32 %v7731_v26, %v7846_v1 }
 0x554   : > { %9458 = vst [vmem:[#allocation60_spill] sm:$0xff] %v7862_v46  ;;  %9461 = vst [vmem:[#allocation61_spill] sm:$0xff] %v7868_v14  ;;  %vm3383_vm8 = vcmp.gt.f32.partialorder %v3071_v48, 0.0  ;;  %vm3384_vm9 = vcmp.gt.f32.partialorder %v3073_v22, 0.0  ;;  %vm3391_vm10 = vcmp.gt.f32.partialorder %v3075_v49, 0.0  ;;  %v7888_v60 = vmul.f32 %v7736_v27, %v7850_v45 }
 0x555   : > { %9462 = vst [vmem:[#allocation62_spill] sm:$0xff] %v7871_v56  ;;  %9463 = vst [vmem:[#allocation63_spill] sm:$0xff] %v7874_v20  ;;  %v3569_v16 = vmul.f32 %v7741_v9, %v3081_v62  ;;  %v3085_v7 = vadd.f32 %v9468_v34, %v7715_v57  ;;  %vm3392_vm11 = vcmp.gt.f32.partialorder %v3077_v23, 0.0  ;;  %v7895_v51 = vmul.f32 %v7731_v26, %v7862_v46  ;;  %v9472_v34 = vld [vmem:[#allocation72_spill] sm:$0xff]  ;;  %v9474_v56 = vld [vmem:[#allocation73_spill] sm:$0xff] }
 0x556   : > { %9464 = vst [vmem:[#allocation64_spill] sm:$0xff] %v7877_v47  ;;  %9465 = vst [vmem:[#allocation65_spill] sm:$0xff] %v7880_v36  ;;  %v3570_v59 = vmul.f32 %v7750_v21, %v3083_v61  ;;  %v7900_v5 = vmul.f32 %v7736_v27, %v7868_v14  ;;  %v3087_v36 = vadd.f32 %v9471_v33, %v7722_v15  ;;  %vm3377_vm12 = vcmp.gt.f32.partialorder %v7745_v38, 0.0  ;;  %v9477_v46 = vld [vmem:[#allocation75_spill] sm:$0xff] }
 0x557   : > { %9466 = vst [vmem:[#allocation66_spill] sm:$0xff] %v7884_v13  ;;  %9467 = vst [vmem:[#allocation67_spill] sm:$0xff] %v7888_v60  ;;  %vm3378_vm13 = vcmp.gt.f32.partialorder %v7754_v3, 0.0  ;;  %v7908_v20 = vadd.f32 %v9472_v34, %v7709_v19  ;;  %v7910_v47 = vsel %vm3383_vm8, %v3071_v48, %v3553_v42  ;;  %vm3399_vm14 = vcmp.gt.f32.partialorder %v3081_v62, 0.0 }
 0x558   : > { %9469 = vst [vmem:[#allocation68_spill] sm:$0xff] %v7895_v51  ;;  %9470 = vst [vmem:[#allocation69_spill] sm:$0xff] %v7900_v5  ;;  %v7912_v51 = vsel %vm3384_vm9, %v3073_v22, %v3554_v44  ;;  %v7916_v14 = vadd.f32 %v9474_v56, %v7712_v54  ;;  %v9476_v5 = vld [vmem:[#allocation74_spill] sm:$0xff]  ;;  %v7922_v60 = vadd.f32 %v9477_v46, %v7709_v19  ;;  %vm3400_vm15 = vcmp.gt.f32.partialorder %v3083_v61, 0.0  ;;  %v9479_v22 = vld [vmem:[#allocation76_spill] sm:$0xff] }
 0x559   : > { %9473 = vst [vmem:[#allocation70_spill] sm:$0xff] %v7908_v20  ;;  %v3091_v33 = vadd.f32 %v9476_v5, %v7715_v57  ;;  %v3577_v34 = vmul.f32 %v7741_v9, %v3085_v7  ;;  %v3093_v48 = vadd.f32 %v7148_v63, %v7722_v15  ;;  %v7929_v42 = vadd.f32 %v9479_v22, %v7712_v54  ;;  %v9481_v44 = vld [vmem:[#allocation77_spill] sm:$0xff] }
 0x55a   : > { %9475 = vst [vmem:[#allocation71_spill] sm:$0xff] %v7916_v14  ;;  %9478 = vst [vmem:[#allocation72_spill] sm:$0xff] %v7922_v60  ;;  %v3095_v56 = vadd.f32 %v9481_v44, %v7715_v57  ;;  %v3578_v13 = vmul.f32 %v7750_v21, %v3087_v36  ;;  %v7935_v5 = vsel %vm3391_vm10, %v3075_v49, %v3561_v25  ;;  %vm3407_vm0 = vcmp.gt.f32.partialorder %v3085_v7, 0.0 }
 0x55b   : > { %9480 = vst [vmem:[#allocation73_spill] sm:$0xff] %v7929_v42  ;;  %v7938_v46 = vsel %vm3392_vm11, %v3077_v23, %v3562_v43  ;;  %v7940_v11 = vsel %vm3399_vm14, %v3081_v62, %v3569_v16  ;;  %v7944_v63 = vmul.f32 %v7731_v26, %v7908_v20  ;;  %v7946_v50 = vsel %vm3400_vm15, %v3083_v61, %v3570_v59  ;;  %v9485_v62 = vld [vmem:[#allocation78_spill] sm:$0xff]  ;;  %v9487_v59 = vld [vmem:[#allocation79_spill] sm:$0xff] }
 0x55c   : > { %vm3408_vm2 = vcmp.gt.f32.partialorder %v3087_v36, 0.0  ;;  %vm3385_vm1 = vcmp.gt.f32.partialorder %v7790_v6, 0.0  ;;  %v7951_v22 = vmul.f32 %v7736_v27, %v7916_v14  ;;  %v3585_v49 = vmul.f32 %v7741_v9, %v3091_v33  ;;  %v9495_v14 = vld [vmem:[#allocation83_spill] sm:$0xff] }
 0x55d   : > { %9482 = vst [vmem:[#allocation74_spill] sm:$0xff] %v7944_v63  ;;  %v7956_v43 = vmul.f32 %v7731_v26, %v7922_v60  ;;  %v3097_v23 = vadd.f32 %v9485_v62, %v7722_v15  ;;  %v3586_v61 = vmul.f32 %v7750_v21, %v3093_v48  ;;  %v7963_v25 = vmul.f32 %v7736_v27, %v7929_v42  ;;  %v9492_v62 = vld [vmem:[#allocation81_spill] sm:$0xff] }
 0x55e   : > { %9483 = vst [vmem:[#allocation75_spill] sm:$0xff] %v7951_v22  ;;  %v3593_v16 = vmul.f32 %v7741_v9, %v3095_v56  ;;  %vm3386_vm3 = vcmp.gt.f32.partialorder %v7795_v53, 0.0  ;;  %v7969_v44 = vadd.f32 %v9487_v59, %v7709_v19  ;;  %v9489_v22 = vld [vmem:[#allocation80_spill] sm:$0xff]  ;;  %v7975_v63 = vsel %vm3407_vm0, %v3085_v7, %v3577_v34 }
 0x55f   : > { %9484 = vst [vmem:[#allocation76_spill] sm:$0xff] %v7956_v43  ;;  %9486 = vst [vmem:[#allocation77_spill] sm:$0xff] %v7963_v25  ;;  %v7973_v43 = vadd.f32 %v9489_v22, %v7712_v54  ;;  %vm3415_vm4 = vcmp.gt.f32.partialorder %v3091_v33, 0.0  ;;  %v3101_v60 = vadd.f32 %v9492_v62, %v7715_v57  ;;  %v9493_v25 = vld [vmem:[#allocation82_spill] sm:$0xff]  ;;  %v7985_v20 = vadd.f32 %v9495_v14, %v7722_v15  ;;  %v9496_v7 = vld [vmem:[#allocation84_spill] sm:$0xff] }
 0x560   : > { %9488 = vst [vmem:[#allocation78_spill] sm:$0xff] %v7969_v44  ;;  %9491 = vst [vmem:[#allocation80_spill] sm:$0xff] %v7975_v63  ;;  %v7981_v42 = vadd.f32 %v9493_v25, %v7709_v19  ;;  %v7988_v59 = vsel %vm3408_vm2, %v3087_v36, %v3578_v13  ;;  %v3594_v22 = vmul.f32 %v7750_v21, %v3097_v23  ;;  %v9498_v63 = vld [vmem:[#allocation85_spill] sm:$0xff]  ;;  %vm3416_vm5 = vcmp.gt.f32.partialorder %v3093_v48, 0.0 }
 0x561   : > { %9490 = vst [vmem:[#allocation79_spill] sm:$0xff] %v7973_v43  ;;  %v7993_v34 = vadd.f32 %v9496_v7, %v7712_v54  ;;  %v7997_v62 = vadd.f32 %v9498_v63, %v7715_v57  ;;  %v7999_v25 = vsel %vm3415_vm4, %v3091_v33, %v3585_v49  ;;  %vm3423_vm6 = vcmp.gt.f32.partialorder %v3095_v56, 0.0  ;;  %v9503_v63 = vld [vmem:[#allocation86_spill] sm:$0xff] }
 0x562   : > { %9494 = vst [vmem:[#allocation81_spill] sm:$0xff] %v7981_v42  ;;  %v8005_v14 = vsel %vm3377_vm12, %v7745_v38, %v7777_v41  ;;  %v8011_v36 = vsel %vm3378_vm13, %v7754_v3, %v7786_v29  ;;  %v8015_v13 = vmul.f32 %v7731_v26, %v7969_v44  ;;  %v8019_v33 = vmul.f32 %v7736_v27, %v7973_v43 }
 0x563   : > { %9497 = vst [vmem:[#allocation82_spill] sm:$0xff] %v7993_v34  ;;  %9499 = vst [vmem:[#allocation83_spill] sm:$0xff] %v8005_v14  ;;  %v8023_v49 = vadd.f32 %v9503_v63, %v7722_v15  ;;  %vm3424_vm7 = vcmp.gt.f32.partialorder %v3097_v23, 0.0  ;;  %v3601_v38 = vmul.f32 %v7741_v9, %v3101_v60  ;;  %v8028_v41 = vmul.f32 %v7731_v26, %v7981_v42 }
 0x564   : > { %9500 = vst [vmem:[#allocation84_spill] sm:$0xff] %v8011_v36  ;;  %9501 = vst [vmem:[#allocation85_spill] sm:$0xff] %v8015_v13  ;;  %v8032_v3 = vmul.f32 %v7750_v21, %v7985_v20  ;;  %v8034_v36 = vsel %vm3416_vm5, %v3093_v48, %v3586_v61  ;;  %v8038_v14 = vmul.f32 %v7736_v27, %v7993_v34  ;;  %vm3431_vm8 = vcmp.gt.f32.partialorder %v3101_v60, 0.0 }
 0x565   : > { %9502 = vst [vmem:[#allocation159_spill] sm:$0xff] %v8019_v33  ;;  %9504 = vst [vmem:[#allocation86_spill] sm:$0xff] %v8028_v41  ;;  %v8042_v63 = vmul.f32 %v7741_v9, %v7997_v62  ;;  %v8049_v48 = vsel %vm3423_vm6, %v3095_v56, %v3593_v16  ;;  %v8052_v61 = vsel %vm3424_vm7, %v3097_v23, %v3594_v22  ;;  %vm3393_vm9 = vcmp.gt.f32.partialorder %v7801_v39, 0.0 }
 0x566   : > { %9505 = vst [vmem:[#allocation160_spill] sm:$0xff] %v8038_v14  ;;  %v8056_v14 = vmul.f32 %v7750_v21, %v8023_v49  ;;  %vm3394_vm10 = vcmp.gt.f32.partialorder %v7808_v28, 0.0  ;;  %vm3432_vm11 = vcmp.gt.f32.partialorder %v7985_v20, 0.0  ;;  %vm3439_vm12 = vcmp.gt.f32.partialorder %v7997_v62, 0.0 }
 0x567   : > { %vm3440_vm13 = vcmp.gt.f32.partialorder %v8023_v49, 0.0 }
 0x57e   : > { %v3934_v29 = vpop.f32.mrb[112].mxu1  ;;  %v4095_v7 = vpop.f32.mrb[112].mxu0 }
 0x57f   : > { %v4512_v33 = vmul.f32 %v3934_v29, %v7593_v55  ;;  %v4514_v41 = vmul.f32 %v4095_v7, %v7816_v4  ;;  %v3936_v42 = vpop.f32.mrb[113].mxu1  ;;  %v4097_v13 = vpop.f32.mrb[113].mxu0  ;;  %v8064_v55 = vsel %vm3385_vm1, %v7790_v6, %v7814_v37  ;;  %v8079_v6 = vsel %vm3386_vm3, %v7795_v53, %v7825_v12  ;;  %v9507_v37 = vld [vmem:[#allocation88_spill] sm:$0xff]  ;;  %v9513_v29 = vld [vmem:[#allocation91_spill] sm:$0xff] }
 0x580   : > { %v4513_v43 = vmul.f32 %v3936_v42, %v7596_v8  ;;  %v4515_v44 = vmul.f32 %v4097_v13, %v7818_v40  ;;  %v9506_v8 = vld [vmem:[#allocation87_spill] sm:$0xff]  ;;  %v8083_v23 = vadd.f32 %v9507_v37, %v7712_v54  ;;  %v9509_v13 = vld [vmem:[#allocation89_spill] sm:$0xff]  ;;  %v8112_v7 = vadd.f32 %v9513_v29, %v7722_v15 }
 0x581   : > { %v8058_v34 = vadd.f32 %v4514_v41, %v4512_v33  ;;  %v8070_v40 = vadd.f32 %v9506_v8, %v7709_v19  ;;  %v8092_v33 = vadd.f32 %v9509_v13, %v7715_v57  ;;  %v8097_v41 = vsel %vm3431_vm8, %v3101_v60, %v3601_v38  ;;  %v9517_v8 = vld [vmem:[#allocation93_spill] sm:$0xff] }
 0x582   : > { %v8072_v4 = vadd.f32 %v4515_v44, %v4513_v43  ;;  %v3940_v42 = vpop.f32.mrb[114].mxu1  ;;  %v4101_v56 = vpop.f32.mrb[114].mxu0  ;;  %9508 = vst [vmem:[#allocation87_spill] sm:$0xff] %v8083_v23 }
 0x583   : > { %v4520_v16 = vmul.f32 %v3940_v42, %v7599_v17  ;;  %v4522_v43 = vmul.f32 %v4101_v56, %v7829_v24  ;;  %v3942_v44 = vpop.f32.mrb[115].mxu1  ;;  %v4103_v22 = vpop.f32.mrb[115].mxu0  ;;  %v9511_v17 = vld [vmem:[#allocation90_spill] sm:$0xff]  ;;  %v8124_v38 = vmul.f32 %v7731_v26, %v8070_v40  ;;  %v8128_v42 = vadd.f32 %v9517_v8, %v7715_v57 }
 0x584   : > { %v4521_v53 = vmul.f32 %v3942_v44, %v7602_v10  ;;  %v4523_v12 = vmul.f32 %v4103_v22, %v7854_v32  ;;  %v8108_v24 = vadd.f32 %v9511_v17, %v7709_v19  ;;  %v9514_v10 = vld [vmem:[#allocation92_spill] sm:$0xff] }
 0x585   : > { %v8116_v32 = vadd.f32 %v9514_v10, %v7712_v54  ;;  %v8118_v60 = vadd.f32 %v4522_v43, %v4520_v16  ;;  %9516 = vst [vmem:[#allocation90_spill] sm:$0xff] %v8124_v38  ;;  %v8135_v16 = vmul.f32 %v7736_v27, %v8083_v23  ;;  %v9519_v43 = vld [vmem:[#allocation94_spill] sm:$0xff] }
 0x586   : > { %9512 = vst [vmem:[#allocation88_spill] sm:$0xff] %v8108_v24  ;;  %v8130_v56 = vadd.f32 %v4523_v12, %v4521_v53  ;;  %v3946_v37 = vpop.f32.mrb[116].mxu1  ;;  %v4107_v44 = vpop.f32.mrb[116].mxu0  ;;  %v8139_v22 = vadd.f32 %v9519_v43, %v7722_v15 }
 0x587   : > { %9515 = vst [vmem:[#allocation89_spill] sm:$0xff] %v8116_v32  ;;  %9518 = vst [vmem:[#allocation91_spill] sm:$0xff] %v8135_v16  ;;  %v4528_v13 = vmul.f32 %v3946_v37, %v7609_v30  ;;  %v4530_v17 = vmul.f32 %v4107_v44, %v7910_v47  ;;  %v3948_v29 = vpop.f32.mrb[117].mxu1  ;;  %v4109_v53 = vpop.f32.mrb[117].mxu0 }
 0x588   : > { %5871 = shalt.err (!%p5868_p9)
}
 0x589   : > { %s5872_s21 = scalar_lea.hbm %s8104_s28, 4096  ;;  %s5876_s0 = scalar_lea.hbm %s9510_s20, 8192 }
 0x58a   : > { %p5873_p0 = scmp.ne.s32.totalorder %s8104_s28, %s5872_s21  ;;  %p5877_p13 = scmp.lt.u32.totalorder %s8104_s28, %s9510_s20 }
 0x58b   : > { %p5878_p6 = scmp.lt.u32.totalorder %s5876_s0, %s5872_s21  ;;  %p5880_p3 = scmp.lt.u32.totalorder %s5872_s21, %s8104_s28 }
 0x58c   : > { %p5874_p11 = pnand %p5873_p0, %p6215_p5 }
 0x58d   : > { %p5879_p10 = por %p5878_p6, %p5877_p13 }
 0x58e   : > { %p5875_p8 = pneg %p5874_p11 }
 0x58f   : > { %p5881_p7 = por %p5880_p3, %p5879_p10 }
 0x591   : > { %p5882_p12 = pnand %p5881_p7, %p5875_p8 }
 0x593   : > { %5885 = shalt.err (!%p5882_p12)
}
 0x594   : > { %s9261_s26 = smov 256   ;;  %s9262_s9 = smov 16   ;;  %v3617_v30 = vmul.f32 %v7741_v9, %v8092_v33  ;;  %v4529_v47 = vmul.f32 %v3948_v29, %v7611_v58  ;;  %v4531_v12 = vmul.f32 %v4109_v53, %v7912_v51  ;;  %v8178_v10 = vsel %vm3432_vm11, %v7985_v20, %v8032_v3  ;;  %v3952_v20 = vpop.f32.mrb[118].mxu1  ;;  %v4113_v3 = vpop.f32.mrb[118].mxu0 }
 0x595   : > { %5448 = dma.vmem_to_hbm [thread:$0]  (%p6215_p5), %s8120_s27, 4096, %s8104_s28, %s4801_s16, %s9261_s26, %s9261_s26, %s9262_s9   ;;  %v8182_v8 = vmul.f32 %v7731_v26, %v8108_v24  ;;  %v3618_v37 = vmul.f32 %v7750_v21, %v8112_v7  ;;  %v8188_v44 = vmul.f32 %v7736_v27, %v8116_v32  ;;  %v8190_v58 = vadd.f32 %v4530_v17, %v4528_v13  ;;  %v9530_v32 = vld [vmem:[#allocation100_spill] sm:$0xff] }
 0x596   : > { %v3625_v51 = vmul.f32 %v7741_v9, %v8128_v42  ;;  %v8194_v43 = vadd.f32 %v4531_v12, %v4529_v47  ;;  %v8200_v29 = vsel %vm3439_vm12, %v7997_v62, %v8042_v63  ;;  %v8206_v53 = vsel %vm3440_vm13, %v8023_v49, %v8056_v14  ;;  %v3954_v12 = vpop.f32.mrb[119].mxu1  ;;  %s9673_s11 = sshll.u32 %s6266_s14, 8  ;;  %s9773_s28 = sshll.u32 %s6085_s25, 12 }
 0x597   : > { %9520 = vst [vmem:[#allocation92_spill] sm:$0xff] %v8182_v8  ;;  %9521 = vst [vmem:[#allocation93_spill] sm:$0xff] %v8188_v44  ;;  %v3626_v13 = vmul.f32 %v7750_v21, %v8139_v22  ;;  %v4536_v17 = vmul.f32 %v3952_v20, %v7613_v52  ;;  %v4538_v47 = vmul.f32 %v4113_v3, %v7935_v5  ;;  %v4115_v44 = vpop.f32.mrb[119].mxu0  ;;  %vm3447_vm14 = vcmp.gt.f32.partialorder %v8092_v33, 0.0  ;;  %v9522_v5 = vld [vmem:[#allocation95_spill] sm:$0xff]  ;;  %s8821_s17 = scalar_lea.vmem [#allocation11], %s9673_s11 }
 0x598   : > { %vm3401_vm15 = vcmp.gt.f32.partialorder %v7846_v1, 0.0  ;;  %vm3402_vm0 = vcmp.gt.f32.partialorder %v7850_v45, 0.0  ;;  %v4537_v62 = vmul.f32 %v3954_v12, %v7615_v35  ;;  %v4539_v14 = vmul.f32 %v4115_v44, %v7938_v46  ;;  %v9524_v35 = vld [vmem:[#allocation96_spill] sm:$0xff]  ;;  %v9529_v12 = vld [vmem:[#allocation99_spill] sm:$0xff]  ;;  %s4842_s27 = sshll.u32 %s8821_s17, 4  ;;  %s9774_s12 = sld [smem:[#allocation167_spill]]  ;;  %s9097_s27 = int_to_ptr.vmem [resolvable:$true] %s4842_s27 }
 0x599   : > { %v8221_v49 = vsel %vm3393_vm9, %v7801_v39, %v7834_v2  ;;  %v8227_v52 = vsel %vm3394_vm10, %v7808_v28, %v7841_v0  ;;  %v8231_v63 = vadd.f32 %v9522_v5, %v7709_v19  ;;  %v8233_v20 = vadd.f32 %v4538_v47, %v4536_v17  ;;  %v9526_v2 = vld [vmem:[#allocation97_spill] sm:$0xff]  ;;  %v3958_v28 = vpop.f32.mrb[120].mxu1  ;;  %v4119_v0 = vpop.f32.mrb[120].mxu0  ;;  %v9527_v17 = vld [vmem:[#allocation98_spill] sm:$0xff]  ;;  %s4806_s15 = scalar_lea.sflag [#allocation12], %s6266_s14  ;;  %s5886_s11 = scalar_lea.vmem %s9097_s27, 4096 }
 0x59a   : > { %vm3448_vm2 = vcmp.gt.f32.partialorder %v8112_v7, 0.0  ;;  %vm3455_vm1 = vcmp.gt.f32.partialorder %v8128_v42, 0.0  ;;  %v8239_v39 = vadd.f32 %v9524_v35, %v7712_v54  ;;  %v3121_v46 = vadd.f32 %v9526_v2, %v7715_v57  ;;  %v4121_v2 = vpop.f32.mrb[121].mxu0  ;;  %p5887_p1 = scmp.ne.s32.totalorder %s9097_s27, %s5886_s11  ;;  %s5978_s26 = smov [#allocation11]  }
 0x59b   : > { %9523 = vst [vmem:[#allocation94_spill] sm:$0xff] %v8231_v63  ;;  %v8243_v44 = vadd.f32 %v4539_v14, %v4537_v62  ;;  %v8248_v3 = vsel %vm3447_vm14, %v8092_v33, %v3617_v30  ;;  %v8252_v47 = vadd.f32 %v9527_v17, %v7709_v19  ;;  %v8256_v5 = vadd.f32 %v9529_v12, %v7722_v15  ;;  %v3960_v14 = vpop.f32.mrb[121].mxu1  ;;  %v9532_v33 = vld [vmem:[#allocation101_spill] sm:$0xff]  ;;  %s5890_s25 = sshll.u32 %s5978_s26, 4  ;;  %s5891_s25 = int_to_ptr.vmem [resolvable:$false] %s5890_s25 }
 0x59c   : > { %9525 = vst [vmem:[#allocation95_spill] sm:$0xff] %v8239_v39  ;;  %v4544_v35 = vmul.f32 %v3958_v28, %v7626_v31  ;;  %v4546_v62 = vmul.f32 %v4119_v0, %v7940_v11  ;;  %v8262_v8 = vadd.f32 %v9530_v32, %v7712_v54  ;;  %v8266_v30 = vadd.f32 %v9532_v33, %v7715_v57  ;;  %v9534_v31 = vld [vmem:[#allocation102_spill] sm:$0xff]  ;;  %v9537_v33 = vld [vmem:[#allocation143_spill] sm:$0xff]  ;;  %p5888_p2 = pnand %p5887_p1, %p6215_p5  ;;  %s5892_s9 = scalar_lea.vmem %s5891_s25, 8192 }
 0x59d   : > { %9528 = vst [vmem:[#allocation96_spill] sm:$0xff] %v8252_v47  ;;  %v4545_v17 = vmul.f32 %v3960_v14, %v7636_v18  ;;  %v4547_v16 = vmul.f32 %v4121_v2, %v7946_v50  ;;  %v8272_v12 = vmul.f32 %v7731_v26, %v8231_v63  ;;  %v8276_v11 = vadd.f32 %v9534_v31, %v7722_v15  ;;  %v3964_v50 = vpop.f32.mrb[122].mxu1  ;;  %v4125_v14 = vpop.f32.mrb[122].mxu0  ;;  %p5893_p9 = scmp.lt.s32.totalorder %s9097_s27, %s5891_s25  ;;  %p5894_p0 = scmp.lt.s32.totalorder %s5892_s9, %s5886_s11 }
 0x59e   : > { %9531 = vst [vmem:[#allocation97_spill] sm:$0xff] %v8262_v8  ;;  %v8278_v28 = vadd.f32 %v4546_v62, %v4544_v35  ;;  %vm3456_vm3 = vcmp.gt.f32.partialorder %v8139_v22, 0.0  ;;  %v8283_v32 = vmul.f32 %v7736_v27, %v8239_v39  ;;  %v3633_v18 = vmul.f32 %v7741_v9, %v3121_v46  ;;  %s9095_s0 = scalar_lea.hbm %s9774_s12, %s9773_s28  ;;  %p5889_p4 = pneg %p5888_p2 }
 0x59f   : > { %9533 = vst [vmem:[#allocation98_spill] sm:$0xff] %v8272_v12  ;;  %v8286_v0 = vadd.f32 %v4547_v16, %v4545_v17  ;;  %v8291_v2 = vsel %vm3448_vm2, %v8112_v7, %v3618_v37  ;;  %v8295_v35 = vmul.f32 %v7731_v26, %v8252_v47  ;;  %v3634_v62 = vmul.f32 %v7750_v21, %v8256_v5  ;;  %v3966_v16 = vpop.f32.mrb[123].mxu1  ;;  %v4127_v17 = vpop.f32.mrb[123].mxu0  ;;  %v9540_v37 = vld [vmem:[#allocation144_spill] sm:$0xff]  ;;  %p5895_p11 = por %p5894_p0, %p5893_p9 }
 0x5a0   : > { %9535 = vst [vmem:[#allocation99_spill] sm:$0xff] %v8283_v32  ;;  %v4552_v31 = vmul.f32 %v3964_v50, %v9537_v33  ;;  %v9538_v32 = vld [vmem:[#allocation80_spill] sm:$0xff]  ;;  %v8303_v39 = vmul.f32 %v7736_v27, %v8262_v8  ;;  %v3641_v7 = vmul.f32 %v7741_v9, %v8266_v30  ;;  %v4553_v63 = vmul.f32 %v3966_v16, %v9540_v37  ;;  %v3970_v33 = vpop.f32.mrb[124].mxu1  ;;  %v4131_v16 = vpop.f32.mrb[124].mxu0 }
 0x5a1   : > { %9536 = vst [vmem:[#allocation100_spill] sm:$0xff] %v8295_v35  ;;  %v4554_v12 = vmul.f32 %v4125_v14, %v9538_v32  ;;  %v4555_v35 = vmul.f32 %v4127_v17, %v7988_v59  ;;  %v3642_v47 = vmul.f32 %v7750_v21, %v8276_v11  ;;  %v8316_v32 = vsel %vm3455_vm1, %v8128_v42, %v3625_v51  ;;  %v9543_v59 = vld [vmem:[#allocation66_spill] sm:$0xff]  ;;  %v9545_v51 = vld [vmem:[#allocation60_spill] sm:$0xff]  ;;  %p5896_p8 = pnand %p5895_p11, %p5889_p4 }
 0x5a2   : > { %9539 = vst [vmem:[#allocation101_spill] sm:$0xff] %v8303_v39  ;;  %v8321_v50 = vsel %vm3456_vm3, %v8139_v22, %v3626_v13  ;;  %vm3463_vm4 = vcmp.gt.f32.partialorder %v3121_v46, 0.0  ;;  %vm3409_vm5 = vcmp.gt.f32.partialorder %v9545_v51, 0.0  ;;  %v9546_v22 = vld [vmem:[#allocation61_spill] sm:$0xff]  ;;  %v9547_v13 = vld [vmem:[#allocation103_spill] sm:$0xff]  ;;  %v4562_v37 = vmul.f32 %v4131_v16, %v7999_v25  ;;  %v9550_v39 = vld [vmem:[#allocation104_spill] sm:$0xff] }
 0x5a3   : > { %v8311_v24 = vadd.f32 %v4554_v12, %v4552_v31  ;;  %v8323_v14 = vadd.f32 %v4555_v35, %v4553_v63  ;;  %v8329_v12 = vsel %vm3401_vm15, %v7846_v1, %v9543_v59  ;;  %v9544_v31 = vld [vmem:[#allocation67_spill] sm:$0xff]  ;;  %vm3410_vm6 = vcmp.gt.f32.partialorder %v9546_v22, 0.0  ;;  %v9549_v35 = vld [vmem:[#allocation145_spill] sm:$0xff]  ;;  %v3972_v1 = vpop.f32.mrb[125].mxu1  ;;  %v4133_v59 = vpop.f32.mrb[125].mxu0 }
 0x5a4   : > { %v8335_v42 = vsel %vm3402_vm0, %v7850_v45, %v9544_v31  ;;  %v8341_v63 = vadd.f32 %v9547_v13, %v7709_v19  ;;  %v4560_v17 = vmul.f32 %v3970_v33, %v9549_v35  ;;  %vm3464_vm7 = vcmp.gt.f32.partialorder %v8256_v5, 0.0  ;;  %v9552_v31 = vld [vmem:[#allocation146_spill] sm:$0xff]  ;;  %v9553_v13 = vld [vmem:[#allocation105_spill] sm:$0xff] }
 0x5a5   : > { %9541 = vst [vmem:[#allocation102_spill] sm:$0xff] %v8311_v24  ;;  %9542 = vst [vmem:[#allocation143_spill] sm:$0xff] %v8323_v14  ;;  %v8348_v45 = vadd.f32 %v9550_v39, %v7712_v54  ;;  %v4561_v8 = vmul.f32 %v3972_v1, %v9552_v31  ;;  %v4563_v23 = vmul.f32 %v4133_v59, %v8034_v36  ;;  %vm3471_vm8 = vcmp.gt.f32.partialorder %v8266_v30, 0.0  ;;  %v9554_v33 = vld [vmem:[#allocation106_spill] sm:$0xff]  ;;  %v9557_v39 = vld [vmem:[#allocation107_spill] sm:$0xff] }
 0x5a6   : > { %9548 = vst [vmem:[#allocation80_spill] sm:$0xff] %v8341_v63  ;;  %v3131_v38 = vadd.f32 %v9553_v13, %v7715_v57  ;;  %v8357_v25 = vadd.f32 %v9554_v33, %v7709_v19  ;;  %v8359_v16 = vadd.f32 %v4562_v37, %v4560_v17  ;;  %v8362_v35 = vsel %vm3463_vm4, %v3121_v46, %v3633_v18  ;;  %v9558_v36 = vld [vmem:[#allocation108_spill] sm:$0xff]  ;;  %v9560_v59 = vld [vmem:[#allocation109_spill] sm:$0xff]  ;;  %v3976_v19 = vpop.f32.mrb[126].mxu1  ;;  %v4137_v17 = vpop.f32.mrb[126].mxu0  ;;  %v9563_v18 = vld [vmem:[#allocation147_spill] sm:$0xff] }
 0x5a7   : > { %9551 = vst [vmem:[#allocation144_spill] sm:$0xff] %v8348_v45  ;;  %v8366_v14 = vadd.f32 %v9557_v39, %v7722_v15  ;;  %v8370_v1 = vadd.f32 %v9558_v36, %v7712_v54  ;;  %v8374_v31 = vadd.f32 %v9560_v59, %v7715_v57  ;;  %v8376_v13 = vadd.f32 %v4563_v23, %v4561_v8  ;;  %v3978_v39 = vpop.f32.mrb[127].mxu1  ;;  %v9565_v57 = vld [vmem:[#allocation110_spill] sm:$0xff]  ;;  %v9566_v8 = vld [vmem:[#allocation148_spill] sm:$0xff] }
 0x5a8   : > { %9555 = vst [vmem:[#allocation66_spill] sm:$0xff] %v8357_v25  ;;  %9556 = vst [vmem:[#allocation67_spill] sm:$0xff] %v8359_v16  ;;  %v8380_v46 = vmul.f32 %v7731_v26, %v8341_v63  ;;  %v4568_v37 = vmul.f32 %v3976_v19, %v9563_v18  ;;  %v4570_v33 = vmul.f32 %v4137_v17, %v8049_v48  ;;  %v4139_v16 = vpop.f32.mrb[127].mxu0  ;;  %vm3472_vm9 = vcmp.gt.f32.partialorder %v8276_v11, 0.0 }
 0x5a9   : > { %9559 = vst [vmem:[#allocation60_spill] sm:$0xff] %v8370_v1  ;;  %9561 = vst [vmem:[#allocation61_spill] sm:$0xff] %v8376_v13  ;;  %v8387_v54 = vmul.f32 %v7736_v27, %v8348_v45  ;;  %v8391_v23 = vadd.f32 %v9565_v57, %v7722_v15  ;;  %v4569_v36 = vmul.f32 %v3978_v39, %v9566_v8  ;;  %vm3479_vm11 = vcmp.gt.f32.partialorder %v3131_v38, 0.0  ;;  %v9588_v45 = vld [vmem:[#allocation152_spill] sm:$0xff] }
 0x5aa   : > { %9562 = vst [vmem:[#allocation103_spill] sm:$0xff] %v8380_v46  ;;  %v4571_v59 = vmul.f32 %v4139_v16, %v8052_v61  ;;  %v3649_v19 = vmul.f32 %v7741_v9, %v3131_v38  ;;  %v8398_v48 = vmul.f32 %v7731_v26, %v8357_v25  ;;  %v8400_v17 = vadd.f32 %v4570_v33, %v4568_v37  ;;  %v3982_v26 = vpop.f32.mrb[128].mxu1  ;;  %v4143_v37 = vpop.f32.mrb[128].mxu0  ;;  %v9571_v33 = vld [vmem:[#allocation149_spill] sm:$0xff] }
 0x5ab   : > { %9564 = vst [vmem:[#allocation145_spill] sm:$0xff] %v8387_v54  ;;  %v8405_v18 = vsel %vm3464_vm7, %v8256_v5, %v3634_v62  ;;  %v3650_v15 = vmul.f32 %v7750_v21, %v8366_v14  ;;  %v8411_v39 = vmul.f32 %v7736_v27, %v8370_v1  ;;  %v3657_v61 = vmul.f32 %v7741_v9, %v8374_v31  ;;  %v3984_v5 = vpop.f32.mrb[129].mxu1  ;;  %v4145_v62 = vpop.f32.mrb[129].mxu0  ;;  %v9572_v9 = vld [vmem:[#allocation70_spill] sm:$0xff] }
 0x5ac   : > { %9567 = vst [vmem:[#allocation104_spill] sm:$0xff] %v8398_v48  ;;  %9568 = vst [vmem:[#allocation146_spill] sm:$0xff] %v8400_v17  ;;  %v8415_v16 = vadd.f32 %v4571_v59, %v4569_v36  ;;  %v4576_v57 = vmul.f32 %v3982_v26, %v9571_v33  ;;  %v4578_v8 = vmul.f32 %v4143_v37, %v8097_v41  ;;  %vm3417_vm10 = vcmp.gt.f32.partialorder %v9572_v9, 0.0  ;;  %v9573_v59 = vld [vmem:[#allocation150_spill] sm:$0xff]  ;;  %v9575_v33 = vld [vmem:[#allocation111_spill] sm:$0xff] }
 0x5ad   : > { %9569 = vst [vmem:[#allocation105_spill] sm:$0xff] %v8411_v39  ;;  %v8422_v48 = vsel %vm3471_vm8, %v8266_v30, %v3641_v7  ;;  %v8427_v27 = vsel %vm3472_vm9, %v8276_v11, %v3642_v47  ;;  %v3658_v36 = vmul.f32 %v7750_v21, %v8391_v23  ;;  %v4577_v26 = vmul.f32 %v3984_v5, %v9573_v59  ;;  %v9574_v37 = vld [vmem:[#allocation62_spill] sm:$0xff]  ;;  %v9577_v7 = vld [vmem:[#allocation68_spill] sm:$0xff]  ;;  %v9579_v11 = vld [vmem:[#allocation69_spill] sm:$0xff] }
 0x5ae   : > { %9570 = vst [vmem:[#allocation106_spill] sm:$0xff] %v8415_v16  ;;  %v4579_v41 = vmul.f32 %v4145_v62, %v8178_v10  ;;  %v8436_v39 = vadd.f32 %v9575_v33, %v9574_v37  ;;  %v8438_v30 = vadd.f32 %v4578_v8, %v4576_v57  ;;  %v8444_v47 = vsel %vm3409_vm5, %v9545_v51, %v9577_v7  ;;  %v9581_v10 = vld [vmem:[#allocation71_spill] sm:$0xff]  ;;  %v9582_v5 = vld [vmem:[#allocation64_spill] sm:$0xff]  ;;  %v3988_v8 = vpop.f32.mrb[130].mxu1  ;;  %v4149_v33 = vpop.f32.mrb[130].mxu0  ;;  %v9597_v16 = vld [vmem:[#allocation118_spill] sm:$0xff] }
 0x5af   : > { %9578 = vst [vmem:[#allocation108_spill] sm:$0xff] %v8444_v47  ;;  %v8450_v21 = vsel %vm3410_vm6, %v9546_v22, %v9579_v11  ;;  %vm3418_vm12 = vcmp.gt.f32.partialorder %v9581_v10, 0.0  ;;  %v9583_v62 = vld [vmem:[#allocation112_spill] sm:$0xff]  ;;  %vm3480_vm13 = vcmp.gt.f32.partialorder %v8366_v14, 0.0  ;;  %vm3487_vm14 = vcmp.gt.f32.partialorder %v8374_v31, 0.0  ;;  %v9585_v51 = vld [vmem:[#allocation151_spill] sm:$0xff] }
 0x5b0   : > { %9576 = vst [vmem:[#allocation107_spill] sm:$0xff] %v8438_v30  ;;  %9580 = vst [vmem:[#allocation109_spill] sm:$0xff] %v8450_v21  ;;  %v8455_v59 = vadd.f32 %v9583_v62, %v9582_v5  ;;  %v8457_v57 = vadd.f32 %v4579_v41, %v4577_v26  ;;  %v4584_v7 = vmul.f32 %v3988_v8, %v9585_v51  ;;  %v3990_v22 = vpop.f32.mrb[131].mxu1  ;;  %v4151_v11 = vpop.f32.mrb[131].mxu0  ;;  %vm3488_vm15 = vcmp.gt.f32.partialorder %v8391_v23, 0.0  ;;  %v9586_v26 = vld [vmem:[#allocation113_spill] sm:$0xff] }
 0x5b1   : > { %v4586_v1 = vmul.f32 %v4149_v33, %v8200_v29  ;;  %v8464_v25 = vsel %vm3479_vm11, %v3131_v38, %v3649_v19  ;;  %v3287_v41 = vadd.f32 %v9586_v26, %v9574_v37  ;;  %v9587_v62 = vld [vmem:[#allocation114_spill] sm:$0xff]  ;;  %v4585_v46 = vmul.f32 %v3990_v22, %v9588_v45  ;;  %v9589_v29 = vld [vmem:[#allocation63_spill] sm:$0xff]  ;;  %v9591_v51 = vld [vmem:[#allocation116_spill] sm:$0xff]  ;;  %v4155_v30 = vpop.f32.mrb[132].mxu0 }
 0x5b2   : > { %9584 = vst [vmem:[#allocation147_spill] sm:$0xff] %v8457_v57  ;;  %v8471_v54 = vadd.f32 %v9587_v62, %v9574_v37  ;;  %v4587_v8 = vmul.f32 %v4151_v11, %v8206_v53  ;;  %v8477_v33 = vmul.f32 %v9589_v29, %v8436_v39  ;;  %v9590_v38 = vld [vmem:[#allocation115_spill] sm:$0xff]  ;;  %v8485_v63 = vadd.f32 %v9591_v51, %v9582_v5  ;;  %v9593_v62 = vld [vmem:[#allocation65_spill] sm:$0xff]  ;;  %v3994_v11 = vpop.f32.mrb[132].mxu1  ;;  %v4157_v13 = vpop.f32.mrb[133].mxu0 }
 0x5b3   : > { %v8481_v19 = vadd.f32 %v9590_v38, %v9582_v5  ;;  %v8487_v26 = vadd.f32 %v4586_v1, %v4584_v7  ;;  %v8491_v57 = vmul.f32 %v9593_v62, %v8455_v59  ;;  %v9594_v53 = vld [vmem:[#allocation117_spill] sm:$0xff]  ;;  %v9596_v38 = vld [vmem:[#allocation72_spill] sm:$0xff]  ;;  %v8502_v51 = vadd.f32 %v9597_v16, %v9582_v5  ;;  %v3996_v17 = vpop.f32.mrb[133].mxu1 }
 0x5b4   : > { %v8495_v45 = vadd.f32 %v9594_v53, %v9574_v37  ;;  %v8497_v22 = vadd.f32 %v4587_v8, %v4585_v46  ;;  %vm3425_vm0 = vcmp.gt.f32.partialorder %v9596_v38, 0.0  ;;  %v9598_v1 = vld [vmem:[#allocation153_spill] sm:$0xff]  ;;  %v8509_v53 = vsel %vm3480_vm13, %v8366_v14, %v3650_v15 }
 0x5b5   : > { %9592 = vst [vmem:[#allocation110_spill] sm:$0xff] %v8487_v26  ;;  %v4592_v7 = vmul.f32 %v3994_v11, %v9598_v1  ;;  %v4594_v26 = vmul.f32 %v4155_v30, %v8248_v3  ;;  %v3541_v46 = vmul.f32 %v9589_v29, %v3287_v41  ;;  %v8514_v8 = vmul.f32 %v9589_v29, %v8471_v54  ;;  %v9603_v1 = vld [vmem:[#allocation74_spill] sm:$0xff] }
 0x5b6   : > { %9595 = vst [vmem:[#allocation148_spill] sm:$0xff] %v8497_v22  ;;  %v9599_v22 = vld [vmem:[#allocation154_spill] sm:$0xff]  ;;  %v4595_v24 = vmul.f32 %v4157_v13, %v8291_v2  ;;  %v3542_v3 = vmul.f32 %v9593_v62, %v8481_v19  ;;  %v8522_v30 = vmul.f32 %v9593_v62, %v8485_v63  ;;  %v8529_v14 = vsel %vm3487_vm14, %v8374_v31, %v3657_v61  ;;  %v4000_v2 = vpop.f32.mrb[134].mxu1  ;;  %v4161_v13 = vpop.f32.mrb[134].mxu0  ;;  %v9605_v61 = vld [vmem:[#allocation155_spill] sm:$0xff] }
 0x5b7   : > { %v4593_v16 = vmul.f32 %v3996_v17, %v9599_v22  ;;  %v8524_v11 = vadd.f32 %v4594_v26, %v4592_v7  ;;  %v3549_v15 = vmul.f32 %v9589_v29, %v8495_v45  ;;  %v8538_v22 = vsel %vm3488_vm15, %v8391_v23, %v3658_v36  ;;  %v9607_v23 = vld [vmem:[#allocation119_spill] sm:$0xff] }
 0x5b8   : > { %9600 = vst [vmem:[#allocation149_spill] sm:$0xff] %v8522_v30  ;;  %v8544_v26 = vsel %vm3417_vm10, %v9572_v9, %v9603_v1  ;;  %v3550_v31 = vmul.f32 %v9593_v62, %v8502_v51  ;;  %v4600_v7 = vmul.f32 %v4000_v2, %v9605_v61  ;;  %vm3371_vm2 = vcmp.gt.f32.partialorder %v3287_v41, 0.0  ;;  %v9608_v30 = vld [vmem:[#allocation156_spill] sm:$0xff]  ;;  %v9609_v1 = vld [vmem:[#allocation75_spill] sm:$0xff] }
 0x5b9   : > { %9601 = vst [vmem:[#allocation70_spill] sm:$0xff] %v8524_v11  ;;  %v8533_v17 = vadd.f32 %v4595_v24, %v4593_v16  ;;  %9604 = vst [vmem:[#allocation62_spill] sm:$0xff] %v8544_v26  ;;  %v4602_v24 = vmul.f32 %v4161_v13, %v8316_v32  ;;  %v4002_v16 = vpop.f32.mrb[135].mxu1  ;;  %v9606_v11 = vld [vmem:[#allocation73_spill] sm:$0xff]  ;;  %v8553_v36 = vadd.f32 %v9607_v23, %v9574_v37  ;;  %vm3372_vm3 = vcmp.gt.f32.partialorder %v8481_v19, 0.0  ;;  %v9612_v13 = vld [vmem:[#allocation76_spill] sm:$0xff] }
 0x5ba   : > { %vm3426_vm1 = vcmp.gt.f32.partialorder %v9606_v11, 0.0  ;;  %v4601_v21 = vmul.f32 %v4002_v16, %v9608_v30  ;;  %v8561_v2 = vsel %vm3418_vm12, %v9581_v10, %v9609_v1  ;;  %vm3379_vm4 = vcmp.gt.f32.partialorder %v8495_v45, 0.0  ;;  %v9614_v30 = vld [vmem:[#allocation78_spill] sm:$0xff]  ;;  %v9618_v23 = vld [vmem:[#allocation121_spill] sm:$0xff] }
 0x5bb   : > { %9602 = vst [vmem:[#allocation150_spill] sm:$0xff] %v8533_v17  ;;  %v4163_v17 = vpop.f32.mrb[135].mxu0  ;;  %9610 = vst [vmem:[#allocation111_spill] sm:$0xff] %v8561_v2  ;;  %v8563_v32 = vadd.f32 %v4602_v24, %v4600_v7  ;;  %v8571_v61 = vsel %vm3425_vm0, %v9596_v38, %v9612_v13  ;;  %vm3433_vm5 = vcmp.gt.f32.partialorder %v9614_v30, 0.0  ;;  %v4006_v7 = vpop.f32.mrb[136].mxu1  ;;  %v8580_v16 = vsel %vm3371_vm2, %v3287_v41, %v3541_v46  ;;  %v9619_v38 = vld [vmem:[#allocation122_spill] sm:$0xff] }
 0x5bc   : > { %v4603_v9 = vmul.f32 %v4163_v17, %v8321_v50  ;;  %9613 = vst [vmem:[#allocation69_spill] sm:$0xff] %v8571_v61  ;;  %v9615_v50 = vld [vmem:[#allocation120_spill] sm:$0xff]  ;;  %v4167_v24 = vpop.f32.mrb[136].mxu0  ;;  %vm3380_vm6 = vcmp.gt.f32.partialorder %v8502_v51, 0.0  ;;  %v3297_v1 = vadd.f32 %v9618_v23, %v9574_v37  ;;  %v8587_v13 = vadd.f32 %v9619_v38, %v9574_v37  ;;  %v4008_v2 = vpop.f32.mrb[137].mxu1  ;;  %v9622_v41 = vld [vmem:[#allocation123_spill] sm:$0xff] }
 0x5bd   : > { %9611 = vst [vmem:[#allocation68_spill] sm:$0xff] %v8563_v32  ;;  %v8576_v17 = vadd.f32 %v9615_v50, %v9582_v5  ;;  %v9620_v32 = vld [vmem:[#allocation157_spill] sm:$0xff]  ;;  %v4610_v50 = vmul.f32 %v4167_v24, %v8362_v35  ;;  %v3299_v46 = vadd.f32 %v9622_v41, %v9582_v5  ;;  %v9624_v38 = vld [vmem:[#allocation124_spill] sm:$0xff]  ;;  %vm3435_vm7 = vcmp.gt.f32.partialorder %v8436_v39, 0.0 }
 0x5be   : > { %v8578_v10 = vadd.f32 %v4603_v9, %v4601_v21  ;;  %v4608_v61 = vmul.f32 %v4006_v7, %v9620_v32  ;;  %v4169_v21 = vpop.f32.mrb[137].mxu0  ;;  %v8593_v9 = vmul.f32 %v9589_v29, %v8553_v36  ;;  %v8601_v47 = vadd.f32 %v9624_v38, %v9582_v5  ;;  %v9625_v32 = vld [vmem:[#allocation125_spill] sm:$0xff] }
 0x5bf   : > { %9616 = vst [vmem:[#allocation71_spill] sm:$0xff] %v8576_v17  ;;  %v4611_v23 = vmul.f32 %v4169_v21, %v8405_v18  ;;  %v8605_v35 = vadd.f32 %v9625_v32, %v9574_v37  ;;  %v8612_v24 = vmul.f32 %v9593_v62, %v8576_v17  ;;  %v4012_v21 = vpop.f32.mrb[138].mxu1  ;;  %v4173_v41 = vpop.f32.mrb[138].mxu0  ;;  %v8623_v38 = vsel %vm3372_vm3, %v8481_v19, %v3542_v3  ;;  %v9631_v32 = vld [vmem:[#allocation52_spill] sm:$0xff] }
 0x5c0   : > { %9617 = vst [vmem:[#allocation64_spill] sm:$0xff] %v8578_v10  ;;  %9621 = vst [vmem:[#allocation112_spill] sm:$0xff] %v8593_v9  ;;  %v9623_v10 = vld [vmem:[#allocation158_spill] sm:$0xff]  ;;  %v8607_v7 = vadd.f32 %v4610_v50, %v4608_v61  ;;  %v3557_v61 = vmul.f32 %v9589_v29, %v3297_v1  ;;  %v8628_v50 = vmul.f32 %v9589_v29, %v8587_v13  ;;  %vm3387_vm9 = vcmp.gt.f32.partialorder %v3297_v1, 0.0 }
 0x5c1   : > { %v4609_v26 = vmul.f32 %v4008_v2, %v9623_v10  ;;  %9627 = vst [vmem:[#allocation113_spill] sm:$0xff] %v8612_v24  ;;  %v9628_v2 = vld [vmem:[#allocation126_spill] sm:$0xff]  ;;  %v4014_v24 = vpop.f32.mrb[139].mxu1  ;;  %v8638_v19 = vsel %vm3379_vm4, %v8495_v45, %v3549_v15  ;;  %v8642_v3 = vmul.f32 %v9593_v62, %v8601_v47  ;;  %v8656_v45 = vsel %vm3380_vm6, %v8502_v51, %v3550_v31  ;;  %v9637_v15 = vld [vmem:[#allocation77_spill] sm:$0xff]  ;;  %v9640_v31 = vld [vmem:[#allocation55_spill] sm:$0xff] }
 0x5c2   : > { %9626 = vst [vmem:[#allocation151_spill] sm:$0xff] %v8607_v7  ;;  %v8616_v10 = vadd.f32 %v9628_v2, %v9582_v5  ;;  %9630 = vst [vmem:[#allocation152_spill] sm:$0xff] %v8628_v50  ;;  %v4616_v7 = vmul.f32 %v4012_v21, %v9631_v32  ;;  %v4618_v2 = vmul.f32 %v4173_v41, %v8422_v48  ;;  %v9635_v41 = vld [vmem:[#allocation79_spill] sm:$0xff]  ;;  %vm3388_vm10 = vcmp.gt.f32.partialorder %v3299_v46, 0.0 }
 0x5c3   : > { %v8618_v18 = vadd.f32 %v4611_v23, %v4609_v26  ;;  %v4175_v26 = vpop.f32.mrb[139].mxu0  ;;  %v3558_v23 = vmul.f32 %v9593_v62, %v3299_v46  ;;  %9633 = vst [vmem:[#allocation63_spill] sm:$0xff] %v8642_v3  ;;  %v3565_v48 = vmul.f32 %v9589_v29, %v8605_v35  ;;  %vm3434_vm8 = vcmp.gt.f32.partialorder %v9635_v41, 0.0 }
 0x5c4   : > { %v4619_v9 = vmul.f32 %v4175_v26, %v8427_v27  ;;  %v8646_v21 = vadd.f32 %v4618_v2, %v4616_v7  ;;  %v4179_v32 = vpop.f32.mrb[140].mxu0  ;;  %v8662_v7 = vsel %vm3426_vm1, %v9606_v11, %v9637_v15  ;;  %v9638_v2 = vld [vmem:[#allocation54_spill] sm:$0xff]  ;;  %vm3436_vm11 = vcmp.gt.f32.partialorder %v8455_v59, 0.0  ;;  %v9641_v11 = vld [vmem:[#allocation85_spill] sm:$0xff]  ;;  %v9643_v15 = vld [vmem:[#allocation159_spill] sm:$0xff] }
 0x5c5   : > { %9629 = vst [vmem:[#allocation114_spill] sm:$0xff] %v8618_v18  ;;  %v9632_v18 = vld [vmem:[#allocation53_spill] sm:$0xff]  ;;  %vm3395_vm12 = vcmp.gt.f32.partialorder %v8605_v35, 0.0  ;;  %vm3396_vm13 = vcmp.gt.f32.partialorder %v8616_v10, 0.0  ;;  %vm3443_vm15 = vcmp.gt.f32.partialorder %v8471_v54, 0.0  ;;  %vm3449_vm6 = vcmp.gt.f32.partialorder %v8070_v40, 0.0 }
 0x5c6   : > { %v4617_v17 = vmul.f32 %v4014_v24, %v9632_v18  ;;  %9634 = vst [vmem:[#allocation115_spill] sm:$0xff] %v8646_v21  ;;  %v3566_v24 = vmul.f32 %v9593_v62, %v8616_v10  ;;  %v4018_v18 = vpop.f32.mrb[140].mxu1  ;;  %v4626_v21 = vmul.f32 %v4179_v32, %v8464_v25  ;;  %v8686_v32 = vsel %vm3435_vm7, %v8436_v39, %v8477_v33  ;;  %v9647_v39 = vld [vmem:[#allocation129_spill] sm:$0xff] }
 0x5c7   : > { %v4624_v26 = vmul.f32 %v4018_v18, %v9638_v2  ;;  %v4020_v3 = vpop.f32.mrb[141].mxu1  ;;  %v8677_v18 = vsel %vm3433_vm5, %v9614_v30, %v9641_v11  ;;  %v8706_v33 = vadd.f32 %v9647_v39, %v9574_v37  ;;  %v9649_v11 = vld [vmem:[#allocation56_spill] sm:$0xff]  ;;  %v9652_v39 = vld [vmem:[#allocation131_spill] sm:$0xff]  ;;  %vm3444_vm5 = vcmp.gt.f32.partialorder %v8485_v63, 0.0 }
 0x5c8   : > { %v8651_v27 = vadd.f32 %v4619_v9, %v4617_v17  ;;  %v4181_v17 = vpop.f32.mrb[141].mxu0  ;;  %v9639_v9 = vld [vmem:[#allocation127_spill] sm:$0xff]  ;;  %v4024_v2 = vpop.f32.mrb[142].mxu1 }
 0x5c9   : > { %v8669_v51 = vadd.f32 %v9639_v9, %v9574_v37  ;;  %v4627_v50 = vmul.f32 %v4181_v17, %v8509_v53  ;;  %v8679_v25 = vadd.f32 %v4626_v21, %v4624_v26  ;;  %v8692_v53 = vsel %vm3434_vm8, %v9635_v41, %v9643_v15  ;;  %v4185_v26 = vpop.f32.mrb[142].mxu0 }
 0x5ca   : > { %9636 = vst [vmem:[#allocation116_spill] sm:$0xff] %v8651_v27  ;;  %v4625_v27 = vmul.f32 %v4020_v3, %v9640_v31  ;;  %v9644_v3 = vld [vmem:[#allocation128_spill] sm:$0xff]  ;;  %v8700_v17 = vsel %vm3387_vm9, %v3297_v1, %v3557_v61  ;;  %v8702_v9 = vsel %vm3388_vm10, %v3299_v46, %v3558_v23  ;;  %v9648_v31 = vld [vmem:[#allocation130_spill] sm:$0xff]  ;;  %v4632_v15 = vmul.f32 %v4024_v2, %v9649_v11  ;;  %v9651_v46 = vld [vmem:[#allocation57_spill] sm:$0xff] }
 0x5cb   : > { %9642 = vst [vmem:[#allocation65_spill] sm:$0xff] %v8679_v25  ;;  %v8696_v30 = vadd.f32 %v9644_v3, %v9582_v5  ;;  %v8710_v41 = vadd.f32 %v9648_v31, %v9574_v37  ;;  %v4634_v3 = vmul.f32 %v4185_v26, %v8529_v14  ;;  %v8716_v1 = vmul.f32 %v9589_v29, %v8669_v51  ;;  %v9653_v2 = vld [vmem:[#allocation132_spill] sm:$0xff]  ;;  %v9656_v26 = vld [vmem:[#allocation81_spill] sm:$0xff] }
 0x5cc   : > { %v8698_v21 = vadd.f32 %v4627_v50, %v4625_v27  ;;  %v4026_v50 = vpop.f32.mrb[143].mxu1  ;;  %v4187_v27 = vpop.f32.mrb[143].mxu0  ;;  %v8723_v31 = vadd.f32 %v9652_v39, %v9582_v5  ;;  %v8727_v11 = vadd.f32 %v9653_v2, %v9582_v5  ;;  %vm3441_vm14 = vcmp.gt.f32.partialorder %v9656_v26, 0.0 }
 0x5cd   : > { %9645 = vst [vmem:[#allocation117_spill] sm:$0xff] %v8696_v30  ;;  %9650 = vst [vmem:[#allocation118_spill] sm:$0xff] %v8716_v1  ;;  %v4633_v61 = vmul.f32 %v4026_v50, %v9651_v46  ;;  %v4635_v23 = vmul.f32 %v4187_v27, %v8538_v22  ;;  %v8729_v14 = vadd.f32 %v4634_v3, %v4632_v15  ;;  %v9658_v22 = vld [vmem:[#allocation133_spill] sm:$0xff]  ;;  %v4256_v46 = vpop.f32.mrb[144].mxu1  ;;  %v4417_v39 = vpop.f32.mrb[144].mxu0  ;;  %vm3403_vm2 = vcmp.gt.f32.partialorder %v8706_v33, 0.0 }
 0x5ce   : > { %9646 = vst [vmem:[#allocation72_spill] sm:$0xff] %v8698_v21  ;;  %9654 = vst [vmem:[#allocation153_spill] sm:$0xff] %v8727_v11  ;;  %v8734_v21 = vmul.f32 %v9593_v62, %v8696_v30  ;;  %v8738_v50 = vadd.f32 %v9658_v22, %v9574_v37  ;;  %v8745_v2 = vsel %vm3395_vm12, %v8605_v35, %v3565_v48  ;;  %v9663_v30 = vld [vmem:[#allocation59_spill] sm:$0xff]  ;;  %vm3404_vm1 = vcmp.gt.f32.partialorder %v8723_v31, 0.0 }
 0x5cf   : > { %9655 = vst [vmem:[#allocation154_spill] sm:$0xff] %v8729_v14  ;;  %v8740_v27 = vadd.f32 %v4635_v23, %v4633_v61  ;;  %v3573_v15 = vmul.f32 %v9589_v29, %v8706_v33  ;;  %v8751_v3 = vmul.f32 %v9589_v29, %v8710_v41  ;;  %v9661_v14 = vld [vmem:[#allocation58_spill] sm:$0xff]  ;;  %v4518_v22 = vmul.f32 %v4417_v39, %v8580_v16  ;;  %v4258_v61 = vpop.f32.mrb[145].mxu1  ;;  %v4419_v23 = vpop.f32.mrb[145].mxu0 }
 0x5d0   : > { %9657 = vst [vmem:[#allocation74_spill] sm:$0xff] %v8734_v21  ;;  %v4516_v25 = vmul.f32 %v4256_v46, %v9661_v14  ;;  %v4517_v35 = vmul.f32 %v4258_v61, %v9663_v30  ;;  %v4519_v48 = vmul.f32 %v4419_v23, %v8623_v38  ;;  %v8764_v1 = vsel %vm3396_vm13, %v8616_v10, %v3566_v24  ;;  %v4423_v10 = vpop.f32.mrb[146].mxu0  ;;  %v9665_v39 = vld [vmem:[#allocation82_spill] sm:$0xff] }
 0x5d1   : > { %9659 = vst [vmem:[#allocation155_spill] sm:$0xff] %v8740_v27  ;;  %9660 = vst [vmem:[#allocation73_spill] sm:$0xff] %v8751_v3  ;;  %v9662_v27 = vld [vmem:[#allocation134_spill] sm:$0xff]  ;;  %v3574_v14 = vmul.f32 %v9593_v62, %v8723_v31  ;;  %v8770_v16 = vmul.f32 %v9593_v62, %v8727_v11  ;;  %v8776_v30 = vmul.f32 %v9589_v29, %v8738_v50  ;;  %vm3442_vm0 = vcmp.gt.f32.partialorder %v9665_v39, 0.0  ;;  %v4425_v11 = vpop.f32.mrb[147].mxu0 }
 0x5d2   : > { %v8757_v21 = vadd.f32 %v9662_v27, %v9582_v5  ;;  %v4672_v46 = vadd.f32 %v8058_v34, %v4516_v25  ;;  %v4673_v38 = vadd.f32 %v8072_v4, %v4517_v35  ;;  %v4262_v27 = vpop.f32.mrb[146].mxu1  ;;  %v8783_v24 = vsel %vm3436_vm11, %v8455_v59, %v8491_v57  ;;  %v9666_v34 = vld [vmem:[#allocation83_spill] sm:$0xff]  ;;  %v9667_v3 = vld [vmem:[#allocation86_spill] sm:$0xff]  ;;  %v9668_v35 = vld [vmem:[#allocation84_spill] sm:$0xff] }
 0x5d3   : > { %9664 = vst [vmem:[#allocation119_spill] sm:$0xff] %v8770_v16  ;;  %v4524_v25 = vmul.f32 %v4262_v27, %v9666_v34  ;;  %v4526_v23 = vmul.f32 %v4423_v10, %v8638_v19  ;;  %v4264_v16 = vpop.f32.mrb[147].mxu1  ;;  %v8792_v4 = vsel %vm3441_vm14, %v9656_v26, %v9667_v3  ;;  %v9669_v27 = vld [vmem:[#allocation23_spill] sm:$0xff]  ;;  %v8806_v34 = vsel %vm3443_vm15, %v8471_v54, %v8514_v8  ;;  %v9670_v26 = vld [vmem:[#allocation160_spill] sm:$0xff] }
 0x5d4   : > { %v4704_v61 = vadd.f32 %v4672_v46, %v4518_v22  ;;  %v8796_v59 = vmul.f32 %v9593_v62, %v8757_v21  ;;  %v4705_v57 = vadd.f32 %v4673_v38, %v4519_v48  ;;  %v4525_v22 = vmul.f32 %v4264_v16, %v9668_v35  ;;  %v9671_v48 = vld [vmem:[#allocation135_spill] sm:$0xff]  ;;  %v9672_v16 = vld [vmem:[#allocation21_spill] sm:$0xff] }
 0x5d5   : > { %v4527_v46 = vmul.f32 %v4425_v11, %v8656_v45  ;;  %v4674_v10 = vadd.f32 %v8118_v60, %v4524_v25  ;;  %v8810_v3 = vsel %vm3442_vm0, %v9665_v39, %v9670_v26  ;;  %v8814_v38 = vadd.f32 %v9671_v48, %v9574_v37  ;;  %v4429_v60 = vpop.f32.mrb[148].mxu0 }
 0x5d6   : > { %v4736_v19 = vadd.f32 %v4704_v61, %v9669_v27  ;;  %v4737_v45 = vadd.f32 %v4705_v57, %v9672_v16  ;;  %v4675_v11 = vadd.f32 %v8130_v56, %v4525_v22  ;;  %v4268_v61 = vpop.f32.mrb[148].mxu1  ;;  %v4534_v39 = vmul.f32 %v4429_v60, %v8700_v17  ;;  %v4431_v35 = vpop.f32.mrb[149].mxu0  ;;  %v9674_v27 = vld [vmem:[#allocation136_spill] sm:$0xff] }
 0x5d7   : > { %v4706_v54 = vadd.f32 %v4674_v10, %v4526_v23  ;;  %v4532_v8 = vmul.f32 %v4268_v61, %v8064_v55  ;;  %v4270_v25 = vpop.f32.mrb[149].mxu1  ;;  %v4535_v22 = vmul.f32 %v4431_v35, %v8702_v9  ;;  %vm3411_vm3 = vcmp.gt.f32.partialorder %v8738_v50, 0.0  ;;  %v9675_v55 = vld [vmem:[#allocation20_spill] sm:$0xff]  ;;  %v4435_v48 = vpop.f32.mrb[150].mxu0 }
 0x5d8   : > { %4768 = vst [vmem:[%s8821_s17] sm:$0xff] %v4736_v19  ;;  %4769 = vst [vmem:[%s8821_s17 + $0x8] sm:$0xff] %v4737_v45  ;;  %v4707_v56 = vadd.f32 %v4675_v11, %v4527_v46  ;;  %v4533_v57 = vmul.f32 %v4270_v25, %v8079_v6  ;;  %v8833_v23 = vadd.f32 %v9674_v27, %v9582_v5  ;;  %v9676_v46 = vld [vmem:[#allocation22_spill] sm:$0xff]  ;;  %v4274_v9 = vpop.f32.mrb[150].mxu1  ;;  %vm3412_vm4 = vcmp.gt.f32.partialorder %v8757_v21, 0.0  ;;  %v4437_v61 = vpop.f32.mrb[151].mxu0 }
 0x5d9   : > { %v4738_v19 = vadd.f32 %v4706_v54, %v9675_v55  ;;  %v4676_v17 = vadd.f32 %v8190_v58, %v4532_v8  ;;  %v3701_v10 = vsel %vm3403_vm2, %v8706_v33, %v3573_v15  ;;  %v3702_v16 = vsel %vm3404_vm1, %v8723_v31, %v3574_v14  ;;  %v4276_v15 = vpop.f32.mrb[151].mxu1 }
 0x5da   : > { %v4739_v26 = vadd.f32 %v4707_v56, %v9676_v46  ;;  %v4677_v6 = vadd.f32 %v8194_v43, %v4533_v57  ;;  %v8846_v45 = vmul.f32 %v9589_v29, %v8814_v38  ;;  %v4540_v11 = vmul.f32 %v4274_v9, %v8221_v49  ;;  %v9677_v43 = vld [vmem:[#allocation137_spill] sm:$0xff]  ;;  %v9678_v49 = vld [vmem:[#allocation138_spill] sm:$0xff]  ;;  %v9680_v56 = vld [vmem:[#allocation139_spill] sm:$0xff] }
 0x5db   : > { %4770 = vst [vmem:[%s8821_s17 + $0x10] sm:$0xff] %v4738_v19  ;;  %v4708_v58 = vadd.f32 %v4676_v17, %v4534_v39  ;;  %v4542_v33 = vmul.f32 %v4435_v48, %v8745_v2  ;;  %v3317_v60 = vadd.f32 %v9677_v43, %v9574_v37  ;;  %v4541_v14 = vmul.f32 %v4276_v15, %v8227_v52  ;;  %v9679_v2 = vld [vmem:[#allocation27_spill] sm:$0xff]  ;;  %v9681_v52 = vld [vmem:[#allocation140_spill] sm:$0xff]  ;;  %v4280_v19 = vpop.f32.mrb[152].mxu1  ;;  %v4441_v17 = vpop.f32.mrb[152].mxu0 }
 0x5dc   : > { %4771 = vst [vmem:[%s8821_s17 + $0x18] sm:$0xff] %v4739_v26  ;;  %v4709_v31 = vadd.f32 %v4677_v6, %v4535_v22  ;;  %v4543_v54 = vmul.f32 %v4437_v61, %v8764_v1  ;;  %v8858_v8 = vmul.f32 %v9593_v62, %v8833_v23  ;;  %v8862_v39 = vadd.f32 %v9678_v49, %v9574_v37  ;;  %v9682_v1 = vld [vmem:[#allocation25_spill] sm:$0xff]  ;;  %v4282_v9 = vpop.f32.mrb[153].mxu1  ;;  %v9685_v43 = vld [vmem:[#allocation24_spill] sm:$0xff] }
 0x5dd   : > { %v4740_v25 = vadd.f32 %v4708_v58, %v9679_v2  ;;  %v4678_v35 = vadd.f32 %v8233_v20, %v4540_v11  ;;  %v3319_v57 = vadd.f32 %v9680_v56, %v9582_v5  ;;  %v8870_v22 = vadd.f32 %v9681_v52, %v9582_v5  ;;  %v4443_v20 = vpop.f32.mrb[153].mxu0  ;;  %v9688_v52 = vld [vmem:[#allocation109_spill] sm:$0xff] }
 0x5de   : > { %v4741_v27 = vadd.f32 %v4709_v31, %v9682_v1  ;;  %v4679_v55 = vadd.f32 %v8243_v44, %v4541_v14  ;;  %v4548_v26 = vmul.f32 %v4280_v19, %v8329_v12  ;;  %v4550_v6 = vmul.f32 %v4441_v17, %v3701_v10  ;;  %v9684_v12 = vld [vmem:[#allocation142_spill] sm:$0xff]  ;;  %v4447_v49 = vpop.f32.mrb[154].mxu0 }
 0x5df   : > { %4772 = vst [vmem:[%s8821_s17 + $0x20] sm:$0xff] %v4740_v25  ;;  %v4710_v46 = vadd.f32 %v4678_v35, %v4542_v33  ;;  %v3709_v48 = vsel %vm3411_vm3, %v8738_v50, %v8776_v30  ;;  %v3589_v58 = vmul.f32 %v9589_v29, %v3317_v60  ;;  %v4549_v44 = vmul.f32 %v4282_v9, %v8335_v42  ;;  %v9683_v33 = vld [vmem:[#allocation141_spill] sm:$0xff]  ;;  %v9686_v30 = vld [vmem:[#allocation26_spill] sm:$0xff]  ;;  %v4449_v56 = vpop.f32.mrb[155].mxu0  ;;  %v9692_v9 = vld [vmem:[#allocation143_spill] sm:$0xff] }
 0x5e0   : > { %4773 = vst [vmem:[%s8821_s17 + $0x28] sm:$0xff] %v4741_v27  ;;  %v4711_v11 = vadd.f32 %v4679_v55, %v4543_v54  ;;  %v4551_v15 = vmul.f32 %v4443_v20, %v3702_v16  ;;  %v3321_v61 = vadd.f32 %v9683_v33, %v9574_v37  ;;  %v3323_v10 = vadd.f32 %v9684_v12, %v9582_v5  ;;  %v4286_v16 = vpop.f32.mrb[154].mxu1  ;;  %v9687_v5 = vld [vmem:[#allocation108_spill] sm:$0xff]  ;;  %v9690_v17 = vld [vmem:[#allocation102_spill] sm:$0xff] }
 0x5e1   : > { %v4742_v31 = vadd.f32 %v4710_v46, %v9685_v43  ;;  %v4680_v14 = vadd.f32 %v8278_v28, %v4548_v26  ;;  %v3590_v50 = vmul.f32 %v9593_v62, %v3319_v57  ;;  %v4681_v42 = vadd.f32 %v8286_v0, %v4549_v44  ;;  %v4288_v35 = vpop.f32.mrb[155].mxu1  ;;  %v9691_v26 = vld [vmem:[#allocation29_spill] sm:$0xff]  ;;  %v4453_v44 = vpop.f32.mrb[156].mxu0  ;;  %v9693_v33 = vld [vmem:[#allocation62_spill] sm:$0xff] }
 0x5e2   : > { %v4743_v54 = vadd.f32 %v4711_v11, %v9686_v30  ;;  %v3710_v37 = vsel %vm3412_vm4, %v8757_v21, %v8796_v59  ;;  %v4556_v2 = vmul.f32 %v4286_v16, %v9687_v5  ;;  %v4558_v25 = vmul.f32 %v4447_v49, %v3709_v48  ;;  %v9689_v59 = vld [vmem:[#allocation31_spill] sm:$0xff]  ;;  %v4292_v48 = vpop.f32.mrb[156].mxu1  ;;  %v4455_v30 = vpop.f32.mrb[157].mxu0  ;;  %v9697_v5 = vld [vmem:[#allocation30_spill] sm:$0xff] }
 0x5e3   : > { %4774 = vst [vmem:[%s8821_s17 + $0x30] sm:$0xff] %v4742_v31  ;;  %v4712_v28 = vadd.f32 %v4680_v14, %v4550_v6  ;;  %vm3419_vm7 = vcmp.gt.f32.partialorder %v3317_v60, 0.0  ;;  %v4713_v0 = vadd.f32 %v4681_v42, %v4551_v15  ;;  %v4557_v1 = vmul.f32 %v4288_v35, %v9688_v52  ;;  %v4294_v31 = vpop.f32.mrb[157].mxu1  ;;  %v9694_v42 = vld [vmem:[#allocation111_spill] sm:$0xff]  ;;  %v4459_v52 = vpop.f32.mrb[158].mxu0 }
 0x5e4   : > { %4775 = vst [vmem:[%s8821_s17 + $0x38] sm:$0xff] %v4743_v54  ;;  %v4559_v27 = vmul.f32 %v4449_v56, %v3710_v37  ;;  %vm3420_vm8 = vcmp.gt.f32.partialorder %v3319_v57, 0.0  ;;  %v3597_v55 = vmul.f32 %v9589_v29, %v3321_v61  ;;  %v3598_v21 = vmul.f32 %v9593_v62, %v3323_v10  ;;  %v9695_v37 = vld [vmem:[#allocation28_spill] sm:$0xff]  ;;  %v4298_v56 = vpop.f32.mrb[158].mxu1 }
 0x5e5   : > { %v4744_v19 = vadd.f32 %v4712_v28, %v9689_v59  ;;  %v4682_v46 = vadd.f32 %v9690_v17, %v4556_v2  ;;  %v4745_v6 = vadd.f32 %v4713_v0, %v9691_v26  ;;  %v4683_v20 = vadd.f32 %v9692_v9, %v4557_v1  ;;  %v9699_v1 = vld [vmem:[#allocation69_spill] sm:$0xff]  ;;  %v4300_v59 = vpop.f32.mrb[159].mxu1  ;;  %v4461_v17 = vpop.f32.mrb[159].mxu0 }
 0x5e6   : > { %v3717_v11 = vsel %vm3419_vm7, %v3317_v60, %v3589_v58  ;;  %vm3427_vm9 = vcmp.gt.f32.partialorder %v3321_v61, 0.0  ;;  %v4564_v12 = vmul.f32 %v4292_v48, %v9693_v33  ;;  %v3718_v14 = vsel %vm3420_vm8, %v3319_v57, %v3590_v50  ;;  %v9696_v57 = vld [vmem:[#allocation67_spill] sm:$0xff]  ;;  %v9700_v9 = vld [vmem:[#allocation149_spill] sm:$0xff]  ;;  %v9702_v48 = vld [vmem:[#allocation146_spill] sm:$0xff] }
 0x5e7   : > { %4776 = vst [vmem:[%s8821_s17 + $0x40] sm:$0xff] %v4744_v19  ;;  %v4714_v15 = vadd.f32 %v4682_v46, %v4558_v25  ;;  %v4566_v43 = vmul.f32 %v4453_v44, %v3717_v11  ;;  %4777 = vst [vmem:[%s8821_s17 + $0x48] sm:$0xff] %v4745_v6  ;;  %v4715_v54 = vadd.f32 %v4683_v20, %v4559_v27  ;;  %vm3428_vm10 = vcmp.gt.f32.partialorder %v3323_v10, 0.0  ;;  %v9698_v25 = vld [vmem:[#allocation61_spill] sm:$0xff]  ;;  %v9703_v44 = vld [vmem:[#allocation90_spill] sm:$0xff] }
 0x5e8   : > { %v4565_v16 = vmul.f32 %v4294_v31, %v9694_v42  ;;  %v4567_v49 = vmul.f32 %v4455_v30, %v3718_v14  ;;  %v8915_v60 = vmul.f32 %v9589_v29, %v8862_v39  ;;  %v8919_v58 = vmul.f32 %v9593_v62, %v8870_v22  ;;  %v9706_v33 = vld [vmem:[#allocation106_spill] sm:$0xff]  ;;  %v4465_v31 = vpop.f32.mrb[160].mxu0  ;;  %v9707_v14 = vld [vmem:[#allocation112_spill] sm:$0xff]  ;;  %v9708_v30 = vld [vmem:[#allocation71_spill] sm:$0xff] }
 0x5e9   : > { %v4746_v28 = vadd.f32 %v4714_v15, %v9695_v37  ;;  %v4684_v50 = vadd.f32 %v9696_v57, %v4564_v12  ;;  %v4747_v2 = vadd.f32 %v4715_v54, %v9697_v5  ;;  %v3725_v0 = vsel %vm3427_vm9, %v3321_v61, %v3597_v55  ;;  %v9701_v55 = vld [vmem:[#allocation35_spill] sm:$0xff]  ;;  %v9705_v15 = vld [vmem:[#allocation33_spill] sm:$0xff]  ;;  %v9709_v37 = vld [vmem:[#allocation88_spill] sm:$0xff] }
 0x5ea   : > { %v4685_v35 = vadd.f32 %v9698_v25, %v4565_v16  ;;  %vm3451_vm11 = vcmp.gt.f32.partialorder %v8553_v36, 0.0  ;;  %v4572_v62 = vmul.f32 %v4298_v56, %v9699_v1  ;;  %v4574_v27 = vmul.f32 %v4459_v52, %v3725_v0  ;;  %v9712_v25 = vld [vmem:[#allocation107_spill] sm:$0xff]  ;;  %v9714_v0 = vld [vmem:[#allocation34_spill] sm:$0xff] }
 0x5eb   : > { %4778 = vst [vmem:[%s8821_s17 + $0x50] sm:$0xff] %v4746_v28  ;;  %v4716_v29 = vadd.f32 %v4684_v50, %v4566_v43  ;;  %v3726_v19 = vsel %vm3428_vm10, %v3323_v10, %v3598_v21  ;;  %4779 = vst [vmem:[%s8821_s17 + $0x58] sm:$0xff] %v4747_v2  ;;  %v4573_v26 = vmul.f32 %v4300_v59, %v8662_v7  ;;  %v9704_v21 = vld [vmem:[#allocation87_spill] sm:$0xff]  ;;  %v4304_v43 = vpop.f32.mrb[160].mxu1  ;;  %vm3452_vm13 = vcmp.gt.f32.partialorder %v9708_v30, 0.0  ;;  %v9711_v2 = vld [vmem:[#allocation32_spill] sm:$0xff] }
 0x5ec   : > { %v4717_v46 = vadd.f32 %v4685_v35, %v4567_v49  ;;  %v4575_v6 = vmul.f32 %v4461_v17, %v3726_v19  ;;  %v3742_v61 = vsel %vm3444_vm5, %v8485_v63, %v9700_v9  ;;  %v4686_v11 = vadd.f32 %v9702_v48, %v4572_v62  ;;  %v4306_v16 = vpop.f32.mrb[161].mxu1  ;;  %v4467_v49 = vpop.f32.mrb[161].mxu0  ;;  %v9713_v35 = vld [vmem:[#allocation113_spill] sm:$0xff]  ;;  %v9716_v62 = vld [vmem:[#allocation92_spill] sm:$0xff] }
 0x5ed   : > { %v4748_v20 = vadd.f32 %v4716_v29, %v9701_v55  ;;  %v3747_v10 = vsel %vm3449_vm6, %v8070_v40, %v9703_v44  ;;  %vm3450_vm12 = vcmp.gt.f32.partialorder %v9704_v21, 0.0  ;;  %v4687_v12 = vadd.f32 %v9706_v33, %v4573_v26  ;;  %v4471_v1 = vpop.f32.mrb[162].mxu0  ;;  %v9717_v59 = vld [vmem:[#allocation89_spill] sm:$0xff]  ;;  %v9718_v48 = vld [vmem:[#allocation152_spill] sm:$0xff]  ;;  %v9719_v44 = vld [vmem:[#allocation39_spill] sm:$0xff] }
 0x5ee   : > { %v4749_v7 = vadd.f32 %v4717_v46, %v9705_v15  ;;  %v3749_v63 = vsel %vm3451_vm11, %v8553_v36, %v9707_v14  ;;  %v4718_v54 = vadd.f32 %v4686_v11, %v4574_v27  ;;  %v4580_v42 = vmul.f32 %v4304_v43, %v8677_v18  ;;  %v9710_v36 = vld [vmem:[#allocation91_spill] sm:$0xff]  ;;  %v9722_v33 = vld [vmem:[#allocation94_spill] sm:$0xff] }
 0x5ef   : > { %4780 = vst [vmem:[%s8821_s17 + $0x60] sm:$0xff] %v4748_v20  ;;  %v4582_v40 = vmul.f32 %v4465_v31, %v8686_v32  ;;  %vm3457_vm14 = vcmp.gt.f32.partialorder %v9709_v37, 0.0  ;;  %v4719_v28 = vadd.f32 %v4687_v12, %v4575_v6  ;;  %v4581_v57 = vmul.f32 %v4306_v16, %v8692_v53  ;;  %v9715_v53 = vld [vmem:[#allocation147_spill] sm:$0xff]  ;;  %v4473_v6 = vpop.f32.mrb[163].mxu0  ;;  %v9723_v12 = vld [vmem:[#allocation37_spill] sm:$0xff]  ;;  %v9724_v31 = vld [vmem:[#allocation148_spill] sm:$0xff] }
 0x5f0   : > { %4781 = vst [vmem:[%s8821_s17 + $0x68] sm:$0xff] %v4749_v7  ;;  %v4583_v50 = vmul.f32 %v4467_v49, %v8783_v24  ;;  %v3748_v5 = vsel %vm3450_vm12, %v9704_v21, %v9710_v36  ;;  %v4750_v18 = vadd.f32 %v4718_v54, %v9711_v2  ;;  %v4688_v32 = vadd.f32 %v9712_v25, %v4580_v42  ;;  %v4310_v24 = vpop.f32.mrb[162].mxu1  ;;  %v4477_v14 = vpop.f32.mrb[164].mxu0  ;;  %v9727_v36 = vld [vmem:[#allocation98_spill] sm:$0xff]  ;;  %v9728_v2 = vld [vmem:[#allocation36_spill] sm:$0xff] }
 0x5f1   : > { %v3750_v56 = vsel %vm3452_vm13, %v9708_v30, %v9713_v35  ;;  %vm3459_vm15 = vcmp.gt.f32.partialorder %v8587_v13, 0.0  ;;  %v4751_v52 = vadd.f32 %v4719_v28, %v9714_v0  ;;  %v4689_v29 = vadd.f32 %v9715_v53, %v4581_v57  ;;  %v4312_v26 = vpop.f32.mrb[163].mxu1  ;;  %v9725_v30 = vld [vmem:[#allocation63_spill] sm:$0xff]  ;;  %v4479_v49 = vpop.f32.mrb[165].mxu0  ;;  %v9729_v25 = vld [vmem:[#allocation70_spill] sm:$0xff]  ;;  %v9731_v35 = vld [vmem:[#allocation117_spill] sm:$0xff] }
 0x5f2   : > { %v3755_v27 = vsel %vm3457_vm14, %v9709_v37, %v9716_v62  ;;  %vm3458_vm0 = vcmp.gt.f32.partialorder %v9717_v59, 0.0  ;;  %4782 = vst [vmem:[%s8821_s17 + $0x70] sm:$0xff] %v4750_v18  ;;  %v4720_v19 = vadd.f32 %v4688_v32, %v4582_v40  ;;  %v4588_v17 = vmul.f32 %v4310_v24, %v8792_v4  ;;  %v9720_v4 = vld [vmem:[#allocation110_spill] sm:$0xff]  ;;  %v9726_v37 = vld [vmem:[#allocation95_spill] sm:$0xff]  ;;  %v9735_v62 = vld [vmem:[#allocation96_spill] sm:$0xff] }
 0x5f3   : > { %v4590_v46 = vmul.f32 %v4471_v1, %v8806_v34  ;;  %vm3460_vm2 = vcmp.gt.f32.partialorder %v8601_v47, 0.0  ;;  %4783 = vst [vmem:[%s8821_s17 + $0x78] sm:$0xff] %v4751_v52  ;;  %v4721_v9 = vadd.f32 %v4689_v29, %v4583_v50  ;;  %v4589_v55 = vmul.f32 %v4312_v26, %v8810_v3  ;;  %v9721_v34 = vld [vmem:[#allocation93_spill] sm:$0xff]  ;;  %v9732_v0 = vld [vmem:[#allocation38_spill] sm:$0xff]  ;;  %v4483_v29 = vpop.f32.mrb[166].mxu0  ;;  %v9734_v24 = vld [vmem:[#allocation99_spill] sm:$0xff] }
 0x5f4   : > { %v4591_v20 = vmul.f32 %v4473_v6, %v3742_v61  ;;  %v3757_v11 = vsel %vm3459_vm15, %v8587_v13, %v9718_v48  ;;  %v4752_v21 = vadd.f32 %v4720_v19, %v9719_v44  ;;  %v4690_v15 = vadd.f32 %v9720_v4, %v4588_v17  ;;  %v4316_v61 = vpop.f32.mrb[164].mxu1  ;;  %v9733_v53 = vld [vmem:[#allocation150_spill] sm:$0xff]  ;;  %v4485_v26 = vpop.f32.mrb[167].mxu0  ;;  %v9737_v48 = vld [vmem:[#allocation43_spill] sm:$0xff] }
 0x5f5   : > { %v3756_v7 = vsel %vm3458_vm0, %v9717_v59, %v9721_v34  ;;  %vm3465_vm1 = vcmp.gt.f32.partialorder %v9722_v33, 0.0  ;;  %v4753_v43 = vadd.f32 %v4721_v9, %v9723_v12  ;;  %v4691_v3 = vadd.f32 %v9724_v31, %v4589_v55  ;;  %v4318_v16 = vpop.f32.mrb[165].mxu1  ;;  %v9736_v55 = vld [vmem:[#allocation74_spill] sm:$0xff]  ;;  %v9741_v34 = vld [vmem:[#allocation41_spill] sm:$0xff]  ;;  %v9742_v12 = vld [vmem:[#allocation64_spill] sm:$0xff]  ;;  %v4489_v31 = vpop.f32.mrb[168].mxu0 }
 0x5f6   : > { %v3758_v54 = vsel %vm3460_vm2, %v8601_v47, %v9725_v30  ;;  %vm3467_vm3 = vcmp.gt.f32.partialorder %v8669_v51, 0.0  ;;  %4784 = vst [vmem:[%s8821_s17 + $0x80] sm:$0xff] %v4752_v21  ;;  %v4722_v13 = vadd.f32 %v4690_v15, %v4590_v46  ;;  %v4596_v42 = vmul.f32 %v4316_v61, %v3747_v10  ;;  %v9730_v10 = vld [vmem:[#allocation118_spill] sm:$0xff]  ;;  %v9738_v21 = vld [vmem:[#allocation68_spill] sm:$0xff]  ;;  %v9740_v15 = vld [vmem:[#allocation97_spill] sm:$0xff] }
 0x5f7   : > { %v4598_v40 = vmul.f32 %v4477_v14, %v3749_v63  ;;  %vm3466_vm4 = vcmp.gt.f32.partialorder %v9726_v37, 0.0  ;;  %4785 = vst [vmem:[%s8821_s17 + $0x88] sm:$0xff] %v4753_v43  ;;  %v4723_v28 = vadd.f32 %v4691_v3, %v4591_v20  ;;  %v4597_v57 = vmul.f32 %v4318_v16, %v3748_v5  ;;  %v9743_v3 = vld [vmem:[#allocation73_spill] sm:$0xff]  ;;  %v9745_v16 = vld [vmem:[#allocation80_spill] sm:$0xff] }
 0x5f8   : > { %v4599_v50 = vmul.f32 %v4479_v49, %v3750_v56  ;;  %v3763_v47 = vsel %vm3465_vm1, %v9722_v33, %v9727_v36  ;;  %v4754_v18 = vadd.f32 %v4722_v13, %v9728_v2  ;;  %v4692_v32 = vadd.f32 %v9729_v25, %v4596_v42  ;;  %v4322_v56 = vpop.f32.mrb[166].mxu1  ;;  %v9744_v14 = vld [vmem:[#allocation153_spill] sm:$0xff]  ;;  %v9748_v2 = vld [vmem:[#allocation151_spill] sm:$0xff] }
 0x5f9   : > { %v3765_v63 = vsel %vm3467_vm3, %v8669_v51, %v9730_v10  ;;  %vm3468_vm5 = vcmp.gt.f32.partialorder %v9731_v35, 0.0  ;;  %v4755_v52 = vadd.f32 %v4723_v28, %v9732_v0  ;;  %v4693_v5 = vadd.f32 %v9733_v53, %v4597_v57  ;;  %v4324_v46 = vpop.f32.mrb[167].mxu1  ;;  %v9746_v57 = vld [vmem:[#allocation101_spill] sm:$0xff]  ;;  %v9752_v53 = vld [vmem:[#allocation103_spill] sm:$0xff] }
 0x5fa   : > { %v3764_v1 = vsel %vm3466_vm4, %v9726_v37, %v9734_v24  ;;  %vm3473_vm6 = vcmp.gt.f32.partialorder %v9735_v62, 0.0  ;;  %4786 = vst [vmem:[%s8821_s17 + $0x90] sm:$0xff] %v4754_v18  ;;  %v4724_v59 = vadd.f32 %v4692_v32, %v4598_v40  ;;  %v4604_v19 = vmul.f32 %v4322_v56, %v3755_v27  ;;  %v9739_v27 = vld [vmem:[#allocation100_spill] sm:$0xff]  ;;  %v4328_v43 = vpop.f32.mrb[168].mxu1  ;;  %v4491_v40 = vpop.f32.mrb[169].mxu0  ;;  %v9750_v32 = vld [vmem:[#allocation42_spill] sm:$0xff] }
 0x5fb   : > { %v4606_v17 = vmul.f32 %v4483_v29, %v3757_v11  ;;  %vm3475_vm7 = vcmp.gt.f32.partialorder %v8710_v41, 0.0  ;;  %4787 = vst [vmem:[%s8821_s17 + $0x98] sm:$0xff] %v4755_v52  ;;  %v4725_v51 = vadd.f32 %v4693_v5, %v4599_v50  ;;  %v4605_v6 = vmul.f32 %v4324_v46, %v3756_v7  ;;  %v4330_v42 = vpop.f32.mrb[169].mxu1  ;;  %v9747_v50 = vld [vmem:[#allocation40_spill] sm:$0xff]  ;;  %v4495_v52 = vpop.f32.mrb[170].mxu0 }
 0x5fc   : > { %v4607_v9 = vmul.f32 %v4485_v26, %v3758_v54  ;;  %v3766_v20 = vsel %vm3468_vm5, %v9731_v35, %v9736_v55  ;;  %v4756_v44 = vadd.f32 %v4724_v59, %v9737_v48  ;;  %v4694_v4 = vadd.f32 %v9738_v21, %v4604_v19  ;;  %v4334_v0 = vpop.f32.mrb[170].mxu1  ;;  %v9753_v56 = vld [vmem:[#allocation144_spill] sm:$0xff]  ;;  %v4497_v59 = vpop.f32.mrb[171].mxu0  ;;  %v9758_v21 = vld [vmem:[#allocation45_spill] sm:$0xff] }
 0x5fd   : > { %v3771_v11 = vsel %vm3473_vm6, %v9735_v62, %v9739_v27  ;;  %vm3474_vm8 = vcmp.gt.f32.partialorder %v9740_v15, 0.0  ;;  %v4757_v33 = vadd.f32 %v4725_v51, %v9741_v34  ;;  %v4695_v7 = vadd.f32 %v9742_v12, %v4605_v6  ;;  %v4336_v62 = vpop.f32.mrb[171].mxu1  ;;  %v9754_v51 = vld [vmem:[#allocation47_spill] sm:$0xff]  ;;  %v9759_v27 = vld [vmem:[#allocation116_spill] sm:$0xff]  ;;  %v4501_v34 = vpop.f32.mrb[172].mxu0 }
 0x5fe   : > { %v3773_v61 = vsel %vm3475_vm7, %v8710_v41, %v9743_v3  ;;  %vm3476_vm9 = vcmp.gt.f32.partialorder %v9744_v14, 0.0  ;;  %4788 = vst [vmem:[%s8821_s17 + $0xa0] sm:$0xff] %v4756_v44  ;;  %v4726_v30 = vadd.f32 %v4694_v4, %v4606_v17  ;;  %v4612_v54 = vmul.f32 %v4328_v43, %v3763_v47  ;;  %v9749_v47 = vld [vmem:[#allocation119_spill] sm:$0xff]  ;;  %v9757_v44 = vld [vmem:[#allocation66_spill] sm:$0xff]  ;;  %v4503_v43 = vpop.f32.mrb[173].mxu0 }
 0x5ff   : > { %v4614_v13 = vmul.f32 %v4489_v31, %v3765_v63  ;;  %vm3481_vm10 = vcmp.gt.f32.partialorder %v9745_v16, 0.0  ;;  %4789 = vst [vmem:[%s8821_s17 + $0xa8] sm:$0xff] %v4757_v33  ;;  %v4727_v49 = vadd.f32 %v4695_v7, %v4607_v9  ;;  %v4613_v37 = vmul.f32 %v4330_v42, %v3764_v1  ;;  %v9751_v63 = vld [vmem:[#allocation114_spill] sm:$0xff]  ;;  %v9755_v9 = vld [vmem:[#allocation115_spill] sm:$0xff]  ;;  %v9760_v31 = vld [vmem:[#allocation60_spill] sm:$0xff] }
 0x600   : > { %v4615_v28 = vmul.f32 %v4491_v40, %v3766_v20  ;;  %v3772_v41 = vsel %vm3474_vm8, %v9740_v15, %v9746_v57  ;;  %v4758_v36 = vadd.f32 %v4726_v30, %v9747_v50  ;;  %v4696_v18 = vadd.f32 %v9748_v2, %v4612_v54  ;;  %v9756_v20 = vld [vmem:[#allocation145_spill] sm:$0xff]  ;;  %v4340_v15 = vpop.f32.mrb[172].mxu1  ;;  %v9761_v30 = vld [vmem:[#allocation44_spill] sm:$0xff]  ;;  %v9764_v40 = vld [vmem:[#allocation46_spill] sm:$0xff] }
 0x601   : > { %v3774_v25 = vsel %vm3476_vm9, %v9744_v14, %v9749_v47  ;;  %vm3483_vm11 = vcmp.gt.f32.partialorder %v8814_v38, 0.0  ;;  %v4759_v10 = vadd.f32 %v4727_v49, %v9750_v32  ;;  %v4697_v35 = vadd.f32 %v9751_v63, %v4613_v37  ;;  %v4342_v7 = vpop.f32.mrb[173].mxu1  ;;  %v9765_v49 = vld [vmem:[#allocation72_spill] sm:$0xff]  ;;  %v9766_v50 = vld [vmem:[#allocation105_spill] sm:$0xff] }
 0x602   : > { %v3779_v5 = vsel %vm3481_vm10, %v9745_v16, %v9752_v53  ;;  %vm3482_vm12 = vcmp.gt.f32.partialorder %v9753_v56, 0.0  ;;  %4790 = vst [vmem:[%s8821_s17 + $0xb0] sm:$0xff] %v4758_v36  ;;  %v4728_v29 = vadd.f32 %v4696_v18, %v4614_v13  ;;  %v4620_v24 = vmul.f32 %v4334_v0, %v3771_v11  ;;  %v9763_v13 = vld [vmem:[#allocation104_spill] sm:$0xff] }
 0x603   : > { %v4622_v1 = vmul.f32 %v4495_v52, %v3773_v61  ;;  %vm3484_vm13 = vcmp.gt.f32.partialorder %v8833_v23, 0.0  ;;  %4791 = vst [vmem:[%s8821_s17 + $0xb8] sm:$0xff] %v4759_v10  ;;  %v4729_v19 = vadd.f32 %v4697_v35, %v4615_v28  ;;  %v4621_v17 = vmul.f32 %v4336_v62, %v3772_v41  ;;  %v4346_v28 = vpop.f32.mrb[174].mxu1  ;;  %v4507_v41 = vpop.f32.mrb[174].mxu0  ;;  %v9767_v35 = vld [vmem:[#allocation51_spill] sm:$0xff]  ;;  %v9768_v52 = vld [vmem:[#allocation154_spill] sm:$0xff] }
 0x604   : > { %v4623_v46 = vmul.f32 %v4497_v59, %v3774_v25  ;;  %v3781_v26 = vsel %vm3483_vm11, %v8814_v38, %v8846_v45  ;;  %v4760_v6 = vadd.f32 %v4728_v29, %v9754_v51  ;;  %v4698_v55 = vadd.f32 %v9755_v9, %v4620_v24  ;;  %v4348_v25 = vpop.f32.mrb[175].mxu1  ;;  %v4509_v10 = vpop.f32.mrb[175].mxu0  ;;  %v9770_v29 = vld [vmem:[#allocation155_spill] sm:$0xff]  ;;  %v9772_v59 = vld [vmem:[#allocation50_spill] sm:$0xff] }
 0x605   : > { %v3780_v48 = vsel %vm3482_vm12, %v9753_v56, %v9756_v20  ;;  %vm3489_vm14 = vcmp.gt.f32.partialorder %v9757_v44, 0.0  ;;  %v4761_v4 = vadd.f32 %v4729_v19, %v9758_v21  ;;  %v4699_v11 = vadd.f32 %v9759_v27, %v4621_v17 }
 0x606   : > { %v3782_v33 = vsel %vm3484_vm13, %v8833_v23, %v8858_v8  ;;  %vm3491_vm15 = vcmp.gt.f32.partialorder %v8862_v39, 0.0  ;;  %4792 = vst [vmem:[%s8821_s17 + $0xc0] sm:$0xff] %v4760_v6  ;;  %v4730_v38 = vadd.f32 %v4698_v55, %v4622_v1  ;;  %v4628_v45 = vmul.f32 %v4340_v15, %v3779_v5  ;;  %v9762_v23 = vld [vmem:[#allocation65_spill] sm:$0xff]  ;;  %v9771_v1 = vld [vmem:[#allocation48_spill] sm:$0xff] }
 0x607   : > { %v4630_v12 = vmul.f32 %v4501_v34, %v3781_v26  ;;  %vm3490_vm0 = vcmp.gt.f32.partialorder %v9760_v31, 0.0  ;;  %4793 = vst [vmem:[%s8821_s17 + $0xc8] sm:$0xff] %v4761_v4  ;;  %v4731_v3 = vadd.f32 %v4699_v11, %v4623_v46  ;;  %v4629_v61 = vmul.f32 %v4342_v7, %v3780_v48  ;;  %v9769_v5 = vld [vmem:[#allocation49_spill] sm:$0xff] }
 0x608   : > { %v4631_v14 = vmul.f32 %v4503_v43, %v3782_v33  ;;  %vm3492_vm2 = vcmp.gt.f32.partialorder %v8870_v22, 0.0  ;;  %v4762_v54 = vadd.f32 %v4730_v38, %v9761_v30  ;;  %v4700_v8 = vadd.f32 %v9762_v23, %v4628_v45 }
 0x609   : > { %v3787_v42 = vsel %vm3489_vm14, %v9757_v44, %v9763_v13  ;;  %v4763_v16 = vadd.f32 %v4731_v3, %v9764_v40  ;;  %v4701_v37 = vadd.f32 %v9765_v49, %v4629_v61  ;;  %v3789_v57 = vsel %vm3491_vm15, %v8862_v39, %v8915_v60 }
 0x60a   : > { %v3788_v36 = vsel %vm3490_vm0, %v9760_v31, %v9766_v50  ;;  %4794 = vst [vmem:[%s8821_s17 + $0xd0] sm:$0xff] %v4762_v54  ;;  %v4732_v2 = vadd.f32 %v4700_v8, %v4630_v12  ;;  %v4636_v18 = vmul.f32 %v4346_v28, %v3787_v42  ;;  %v4638_v47 = vmul.f32 %v4507_v41, %v3789_v57 }
 0x60b   : > { %v3790_v32 = vsel %vm3492_vm2, %v8870_v22, %v8919_v58  ;;  %4795 = vst [vmem:[%s8821_s17 + $0xd8] sm:$0xff] %v4763_v16  ;;  %v4733_v63 = vadd.f32 %v4701_v37, %v4631_v14  ;;  %v4637_v39 = vmul.f32 %v4348_v25, %v3788_v36 }
 0x60c   : > { %v4639_v60 = vmul.f32 %v4509_v10, %v3790_v32  ;;  %v4764_v0 = vadd.f32 %v4732_v2, %v9767_v35  ;;  %v4702_v53 = vadd.f32 %v9768_v52, %v4636_v18 }
 0x60d   : > { %v4765_v56 = vadd.f32 %v4733_v63, %v9769_v5  ;;  %v4703_v24 = vadd.f32 %v9770_v29, %v4637_v39 }
 0x60e   : > { %4796 = vst [vmem:[%s8821_s17 + $0xe0] sm:$0xff] %v4764_v0  ;;  %v4734_v22 = vadd.f32 %v4702_v53, %v4638_v47 }
 0x60f   : > { %4797 = vst [vmem:[%s8821_s17 + $0xe8] sm:$0xff] %v4765_v56  ;;  %v4735_v58 = vadd.f32 %v4703_v24, %v4639_v60 }
 0x610   : > { %v4766_v62 = vadd.f32 %v4734_v22, %v9771_v1 }
 0x611   : > { %v4767_v19 = vadd.f32 %v4735_v58, %v9772_v59 }
 0x612   : > { %4798 = vst [vmem:[%s8821_s17 + $0xf0] sm:$0xff] %v4766_v62 }
 0x613   : > { %4799 = vst [vmem:[%s8821_s17 + $0xf8] sm:$0xff] %v4767_v19 }
 0x614   : > { %5899 = shalt.err (!%p5896_p8)
}
 0x615   : > { %s5900_s17 = scalar_lea.hbm %s9095_s0, 4096  ;;  %s5904_s26 = scalar_lea.hbm %s9774_s12, 8192 }
 0x616   : > { %p5901_p13 = scmp.ne.s32.totalorder %s9095_s0, %s5900_s17  ;;  %p5905_p3 = scmp.lt.u32.totalorder %s9095_s0, %s9774_s12 }
 0x617   : > { %p5906_p7 = scmp.lt.u32.totalorder %s5904_s26, %s5900_s17  ;;  %p5908_p1 = scmp.lt.u32.totalorder %s5900_s17, %s9095_s0 }
 0x618   : > { %p5902_p6 = pnand %p5901_p13, %p6215_p5 }
 0x619   : > { %p5907_p12 = por %p5906_p7, %p5905_p3 }
 0x61a   : > { %p5903_p10 = pneg %p5902_p6 }
 0x61b   : > { %p5909_p2 = por %p5908_p1, %p5907_p12 }
 0x61d   : > { %p5910_p4 = pnand %p5909_p2, %p5903_p10 }
 0x61f   : > { %5913 = shalt.err (!%p5910_p4)
}
 0x620   : > { %s9775_s9 = smov 16   ;;  %s9776_s11 = smov 256  }
 0x621   : > { %5449 = dma.vmem_to_hbm [thread:$0]  (%p6215_p5), %s9097_s27, 4096, %s9095_s0, %s4806_s15, %s9776_s11, %s9776_s11, %s9775_s9  }
 0x622 PF: > { %s9777_s28 = sld [smem:[#allocation18_spill]]  ;;  %s9778_s16 = sld [smem:[#allocation19_spill]] }
 0x623   : > { %p9780_p0 = scmp.ge.s32.totalorder %s5964_s24, 2 }
 0x628   : > { %s4861_s26 = sand.u32 1, %s9777_s28   ;;  %p9779_p9 = scmp.ne.s32.totalorder %s9778_s16, 0 }
 0x629   : > { %s4862_s17 = scalar_lea.sflag [#allocation4], %s4861_s26 }
 0x62a   : > { %p5467_p11 = pnand %p9780_p0, %p9779_p9 }
 0x62c   : > { %5943 = dma.done.wait (!%p5467_p11), %s4862_s17, 4096  }
 0x62d   : > { %5945 = vsyncadd (!%p5467_p11), %s4862_s17, 4294963200  ;;  %s4871_s18 = scalar_lea.sflag [#allocation12], %s4861_s26 }
 0x62e   : > { %5947 = dma.done.wait (!%p5467_p11), %s4871_s18, 4096  }
 0x62f   : > { %5949 = vsyncadd (!%p5467_p11), %s4871_s18, 4294963200  ;;  %p35_p5 = scmp.ge.s32.totalorder %s6201_s13, 4   ;;  %s9781_s21 = smov %s5956_s22 }
 0x630   : > { %s9782_s22 = smov %s5960_s23  ;;  %s9783_s23 = smov %s6211_s30 }
 0x631   : > { %s9784_s24 = smov %s6201_s13  ;;  %37 = sbr.rel (!%p35_p5) target bundleno = 18 (0x12), region = 162 }
 0x638   :  { %4884 = vsyncpa [#allocation3], 1 }
 0x639   :  { %4886 = vsyncpa [#allocation3 + $0x1], 1 }
 0x63a   :  { %4887 = vsyncpa [#allocation6], 1 }
 0x63b   :  { %4888 = vsyncpa [#allocation9], 1 }
 0x63c   :  { %4889 = vsyncpa [#allocation4], 1 }
 0x63d   :  { %4891 = vsyncpa [#allocation4 + $0x1], 1 }
 0x63e   :  { %4892 = vsyncpa [#allocation12], 1 }
 0x63f   :  { %4894 = vsyncpa [#allocation12 + $0x1], 1 }

</bundles_post_ra>
